<compile_context>
chip_gen: v5e
topology: v5e:2x2
jax: 0.10.0
libtpu: 0.0.40
codegen_flags: <defaults>
</compile_context>

<pallas_src>
import numpy as np
import jax
import jax.numpy as jnp
from jax.experimental import pallas as pl
from jax.experimental.pallas import tpu as pltpu

MXU_DTYPE = jnp.bfloat16     # matmul operand dtype (accumulation is f32)
BN_EPS = 1e-5

_VMEM = pl.BlockSpec(memory_space=pltpu.MemorySpace.VMEM)


# --------------------------- static geometry helpers ------------------------

def _tconv_out_len(lin, k, s, p, op):
    return (lin - 1) * s - 2 * p + k + op


def _scatter_stack(lin, lout, stride, padding, K, n_batch, dtype):
    """Host-built stack of K selection matrices, shape (K, N*lin, N*lout),
    G[j, b*lin + i, b*lout + t] = 1 iff t == i*stride + j - padding.
    Block-diagonal over batch; (tmp @ G[j]) scatters conv-tap contributions
    to their output columns on the MXU."""
    G = np.zeros((K, n_batch * lin, n_batch * lout), np.float32)
    for b in range(n_batch):
        for i in range(lin):
            base_t = i * stride - padding
            for j in range(K):
                t = base_t + j
                if 0 <= t < lout:
                    G[j, b * lin + i, b * lout + t] = 1.0
    return jnp.asarray(G).astype(dtype)


# ------------------------------ fused kernel --------------------------------

def _make_fused_kernel(block_geoms, final_geom, n_batch, l_final):
    """One kernel for the whole decoder.  refs = (x, *params, out)."""

    def kernel(*refs):
        x_ref, o_ref = refs[0], refs[-1]
        w = refs[1:-1]

        x = x_ref[...]                                   # (C0, N*L0), f32
        idx = 0
        for g in block_geoms:
            s1, t1, W1p, t2p, Wcomb, bout, G = w[idx:idx + 7]
            idx += 7

            # bn1 + ReLU (eval-mode BN as per-channel scale/shift)
            h = jnp.maximum(x * s1[...] + t1[...], 0.0)
            # conv1 (k=1 pointwise) with bn2's scale folded into the weight
            # and conv1's bias folded into the shift; Dropout = identity.
            h = jnp.dot(W1p[...], h.astype(MXU_DTYPE),
                        preferred_element_type=jnp.float32)
            h = jnp.maximum(h + t2p[...], 0.0)

            # conv2 (*b) and the residual upsample conv (*a, up_bn folded)
            # share channel-mix matmuls and the position scatter.
            hx = jnp.concatenate([h, x], axis=0).astype(MXU_DTYPE)
            acc = None
            for j in range(g['K']):
                contrib = jnp.dot(Wcomb[j], hx,
                                  preferred_element_type=jnp.float32)
                part = jnp.dot(contrib.astype(MXU_DTYPE), G[j],
                               preferred_element_type=jnp.float32)
                acc = part if acc is None else acc + part
            x = acc + bout[...]                           # (Co, N*Lout), f32

        # final projection to vocab
        if final_geom is None:                            # Conv1d, k=1 (L=128 path)
            Wf, bf = w[idx], w[idx + 1]
            logits = jnp.dot(Wf[...], x.astype(MXU_DTYPE),
                             preferred_element_type=jnp.float32) + bf[...]
        else:                                             # ConvTranspose1d (>=512 path)
            Wf, bf, Gf = w[idx], w[idx + 1], w[idx + 2]
            x_m = x.astype(MXU_DTYPE)
            acc = None
            for j in range(final_geom['K']):
                tmp = jnp.dot(Wf[j], x_m, preferred_element_type=jnp.float32)
                part = jnp.dot(tmp.astype(MXU_DTYPE), Gf[j],
                               preferred_element_type=jnp.float32)
                acc = part if acc is None else acc + part
            logits = acc + bf[...]

        # LogSoftmax over the vocab (sublane) axis, sequence on lanes.
        m = jnp.max(logits, axis=0, keepdims=True)
        z = logits - m
        lse = jnp.log(jnp.sum(jnp.exp(z), axis=0, keepdims=True))
        logp = z - lse                                    # (V, N*L), f32

        for n in range(n_batch):                          # lane-dense stores
            o_ref[n] = logp[:, n * l_final:(n + 1) * l_final]

    return kernel


# --------------------------- parameter init & fold --------------------------

def _init_bn(key, c):
    k1, k2, k3, k4 = jax.random.split(key, 4)
    gamma = 1.0 + 0.1 * jax.random.normal(k1, (c,), jnp.float32)
    beta = 0.1 * jax.random.normal(k2, (c,), jnp.float32)
    rmean = 0.1 * jax.random.normal(k3, (c,), jnp.float32)
    rvar = 1.0 + 0.1 * jax.random.uniform(k4, (c,), jnp.float32)
    return (gamma, beta, rmean, rvar)


def _init_res_block(key, ci, co, k):
    keys = jax.random.split(key, 9)
    return {
        'bn1': _init_bn(keys[0], ci),
        'conv1_w': 0.05 * jax.random.normal(keys[1], (ci, ci, 1), jnp.float32),
        'conv1_b': 0.05 * jax.random.normal(keys[2], (ci,), jnp.float32),
        'bn2': _init_bn(keys[3], ci),
        'conv2_w': 0.05 * jax.random.normal(keys[4], (ci, co, k), jnp.float32),
        'conv2_b': 0.05 * jax.random.normal(keys[5], (co,), jnp.float32),
        'up_w': 0.05 * jax.random.normal(keys[6], (ci, co, k), jnp.float32),
        'up_b': 0.05 * jax.random.normal(keys[7], (co,), jnp.float32),
        'up_bn': _init_bn(keys[8], co),
    }


def _bn_scale_shift(bn):
    gamma, beta, rmean, rvar = bn
    scale = gamma / jnp.sqrt(rvar + BN_EPS)
    shift = beta - rmean * scale
    return scale, shift


def _col(v):
    return v.reshape(-1, 1).astype(jnp.float32)


def _fold_block(p, a_val, b_val, geom, n_batch):
    """One-time host-side transform:
       * bn2 scale -> conv1 weight rows, conv1 bias -> bn2 shift,
       * up_bn + a -> upsample conv, b -> conv2,
       * conv2 / upsample weights merged tap-major into one (K, Co, 2*Ci),
       * precompute the (K, N*Lin, N*Lout) position-scatter constants."""
    s1, t1 = _bn_scale_shift(p['bn1'])
    s2, t2 = _bn_scale_shift(p['bn2'])
    su, tu = _bn_scale_shift(p['up_bn'])
    # ConvTranspose1d(k=1): y[co,t] = sum_ci x[ci,t] * w[ci,co,0] + b[co]
    W1 = p['conv1_w'][:, :, 0].T                                    # (out, in)
    W1p = s2[:, None] * W1                                          # bn2 scale folded
    t2p = s2 * p['conv1_b'] + t2                                    # conv1 bias folded
    # tap-major weights, [j, co, ci] = w[ci, co, j]
    W2 = jnp.transpose(p['conv2_w'], (2, 1, 0)) * b_val
    Wu = jnp.transpose(p['up_w'], (2, 1, 0)) * (a_val * su)[None, :, None]
    Wcomb = jnp.concatenate([W2, Wu], axis=2)                       # (K, co, 2ci)
    bout = b_val * p['conv2_b'] + a_val * (su * p['up_b'] + tu)
    G = _scatter_stack(geom['lin'], geom['lout'], geom['stride'],
                       geom['padding'], geom['K'], n_batch, MXU_DTYPE)
    return [_col(s1), _col(t1),
            W1p.astype(MXU_DTYPE), _col(t2p),
            Wcomb.astype(MXU_DTYPE), _col(bout), G]


# ------------------------------- model build ---------------------------------

class Args:
    DIM_text = 8
    len_sequence = 128
    vocab_size = 16


def build_data_generator_text(key, args, batch_size, input_len, a_val=2.0, b_val=0.3):
    d = args.DIM_text
    # (in_channels, out_channels, kernel, stride, padding, output_padding)
    cfgs = [
        (5 * d, 5 * d, 4, 1, 0, 0),
        (5 * d, 5 * d, 4, 2, 1, 0),
        (5 * d, 5 * d, 4, 2, 1, 0),
        (5 * d, 4 * d, 4, 2, 1, 0),
        (4 * d, 4 * d, 4, 2, 1, 0),
    ]
    if args.len_sequence >= 512:
        cfgs += [(4 * d, 3 * d, 4, 2, 1, 0),
                 (3 * d, 2 * d, 4, 2, 1, 0),
                 (2 * d, 1 * d, 4, 2, 1, 0)]
        final_is_tconv = True
    elif args.len_sequence == 128:
        cfgs += [(4 * d, 1 * d, 4, 2, 1, 0)]
        final_is_tconv = False
    else:
        raise NotImplementedError(
            f'len_sequence {args.len_sequence} not supported.')

    # static per-layer geometry for this (batch_size, input_len)
    geoms, L = [], input_len
    for (_, _, k, s, p, op) in cfgs:
        lout = _tconv_out_len(L, k, s, p, op)
        geoms.append(dict(lin=L, lout=lout, stride=s, padding=p, K=k))
        L = lout
    if final_is_tconv:
        final_geom = dict(lin=L, lout=_tconv_out_len(L, 4, 2, 1, 0),
                          stride=2, padding=1, K=4)
        L = final_geom['lout']
    else:
        final_geom = None
    l_final = L

    # raw (PyTorch-layout) parameters, then one-time fold
    keys = jax.random.split(key, len(cfgs) + 2)
    raw_blocks = [_init_res_block(keys[i], ci, co, k)
                  for i, (ci, co, k, _, _, _) in enumerate(cfgs)]
    if final_is_tconv:
        final_w = 0.05 * jax.random.normal(keys[-2], (d, args.vocab_size, 4), jnp.float32)
        folded_final = [jnp.transpose(final_w, (2, 1, 0)).astype(MXU_DTYPE)]
    else:
        final_w = 0.05 * jax.random.normal(keys[-2], (args.vocab_size, d, 1), jnp.float32)
        folded_final = [final_w[:, :, 0].astype(MXU_DTYPE)]
    final_b = 0.05 * jax.random.normal(keys[-1], (args.vocab_size,), jnp.float32)
    folded_final.append(_col(final_b))
    if final_is_tconv:
        folded_final.append(_scatter_stack(final_geom['lin'], final_geom['lout'],
                                           final_geom['stride'], final_geom['padding'],
                                           final_geom['K'], batch_size, MXU_DTYPE))

    folded = []
    for p, g in zip(raw_blocks, geoms):
        folded += _fold_block(p, a_val, b_val, g, batch_size)
    folded += folded_final
    folded = tuple(folded)

    kernel = _make_fused_kernel(geoms, final_geom, batch_size, l_final)
    out_shape = jax.ShapeDtypeStruct((batch_size, args.vocab_size, l_final),
                                     jnp.float32)
    n_inputs = 1 + len(folded)

    def forward(params, feats):
        n, c0, l0 = feats.shape
        # module boundary keeps PyTorch NCL; kernel works on (C, N*L).
        x0 = jnp.transpose(feats, (1, 0, 2)).reshape(c0, n * l0)
        return pl.pallas_call(
            kernel,
            out_shape=out_shape,
            in_specs=[_VMEM] * n_inputs,
            out_specs=_VMEM,
        )(x0, *params)

    return folded, forward


# ----------------------------------- main ------------------------------------

if __name__ == "__main__":
    args = Args()
    key = jax.random.PRNGKey(0)
    k_params, k_feats = jax.random.split(key)

    N, L0 = 2, 1
    params, forward = build_data_generator_text(k_params, args,
                                                batch_size=N, input_len=L0)

    # feats: (batch, 5*DIM_text, L0).  With L0=1 the transpose-conv cascade
    # yields output length exactly args.len_sequence == 128.
    feats = jax.random.normal(k_feats, (N, 5 * args.DIM_text, L0), jnp.float32)

    out = jax.jit(forward)(params, feats)
    out = jax.block_until_ready(out)

    assert out.shape == (N, args.vocab_size, args.len_sequence), out.shape
    assert bool(jnp.all(jnp.isfinite(out)))
    # log-softmax sanity: exp sums to 1 over the channel (vocab) axis
    sums = jnp.sum(jnp.exp(out), axis=1)
    assert bool(jnp.allclose(sums, 1.0, atol=1e-4))

    print("KERNEL_OK")
</pallas_src>

<mosaic_0001>
module attributes {stable_mosaic.version = 11 : i64} {
  func.func @kernel(%arg0: memref<40x2xf32, #tpu.memory_space<vmem>>, %arg1: memref<40x1xf32, #tpu.memory_space<vmem>>, %arg2: memref<40x1xf32, #tpu.memory_space<vmem>>, %arg3: memref<40x40xbf16, #tpu.memory_space<vmem>>, %arg4: memref<40x1xf32, #tpu.memory_space<vmem>>, %arg5: memref<4x40x80xbf16, #tpu.memory_space<vmem>>, %arg6: memref<40x1xf32, #tpu.memory_space<vmem>>, %arg7: memref<4x2x8xbf16, #tpu.memory_space<vmem>>, %arg8: memref<40x1xf32, #tpu.memory_space<vmem>>, %arg9: memref<40x1xf32, #tpu.memory_space<vmem>>, %arg10: memref<40x40xbf16, #tpu.memory_space<vmem>>, %arg11: memref<40x1xf32, #tpu.memory_space<vmem>>, %arg12: memref<4x40x80xbf16, #tpu.memory_space<vmem>>, %arg13: memref<40x1xf32, #tpu.memory_space<vmem>>, %arg14: memref<4x8x16xbf16, #tpu.memory_space<vmem>>, %arg15: memref<40x1xf32, #tpu.memory_space<vmem>>, %arg16: memref<40x1xf32, #tpu.memory_space<vmem>>, %arg17: memref<40x40xbf16, #tpu.memory_space<vmem>>, %arg18: memref<40x1xf32, #tpu.memory_space<vmem>>, %arg19: memref<4x40x80xbf16, #tpu.memory_space<vmem>>, %arg20: memref<40x1xf32, #tpu.memory_space<vmem>>, %arg21: memref<4x16x32xbf16, #tpu.memory_space<vmem>>, %arg22: memref<40x1xf32, #tpu.memory_space<vmem>>, %arg23: memref<40x1xf32, #tpu.memory_space<vmem>>, %arg24: memref<40x40xbf16, #tpu.memory_space<vmem>>, %arg25: memref<40x1xf32, #tpu.memory_space<vmem>>, %arg26: memref<4x32x80xbf16, #tpu.memory_space<vmem>>, %arg27: memref<32x1xf32, #tpu.memory_space<vmem>>, %arg28: memref<4x32x64xbf16, #tpu.memory_space<vmem>>, %arg29: memref<32x1xf32, #tpu.memory_space<vmem>>, %arg30: memref<32x1xf32, #tpu.memory_space<vmem>>, %arg31: memref<32x32xbf16, #tpu.memory_space<vmem>>, %arg32: memref<32x1xf32, #tpu.memory_space<vmem>>, %arg33: memref<4x32x64xbf16, #tpu.memory_space<vmem>>, %arg34: memref<32x1xf32, #tpu.memory_space<vmem>>, %arg35: memref<4x64x128xbf16, #tpu.memory_space<vmem>>, %arg36: memref<32x1xf32, #tpu.memory_space<vmem>>, %arg37: memref<32x1xf32, #tpu.memory_space<vmem>>, %arg38: memref<32x32xbf16, #tpu.memory_space<vmem>>, %arg39: memref<32x1xf32, #tpu.memory_space<vmem>>, %arg40: memref<4x8x64xbf16, #tpu.memory_space<vmem>>, %arg41: memref<8x1xf32, #tpu.memory_space<vmem>>, %arg42: memref<4x128x256xbf16, #tpu.memory_space<vmem>>, %arg43: memref<16x8xbf16, #tpu.memory_space<vmem>>, %arg44: memref<16x1xf32, #tpu.memory_space<vmem>>, %arg45: memref<2x16x128xf32, #tpu.memory_space<vmem>>) attributes {dimension_semantics = [], scalar_prefetch = 0 : i64, scratch_operands = 0 : i64, tpu.core_type = #tpu.core_type<tc>} {
    %c0 = arith.constant 0 : index
    %c0_0 = arith.constant 0 : index
    %0 = vector.load %arg0[%c0, %c0_0] : memref<40x2xf32, #tpu.memory_space<vmem>>, vector<40x2xf32>
    %c0_1 = arith.constant 0 : index
    %c0_2 = arith.constant 0 : index
    %1 = vector.load %arg1[%c0_1, %c0_2] : memref<40x1xf32, #tpu.memory_space<vmem>>, vector<40x1xf32>
    %2 = vector.broadcast %1 : vector<40x1xf32> to vector<40x2xf32>
    %3 = arith.mulf %0, %2 : vector<40x2xf32>
    %c0_3 = arith.constant 0 : index
    %c0_4 = arith.constant 0 : index
    %4 = vector.load %arg2[%c0_3, %c0_4] : memref<40x1xf32, #tpu.memory_space<vmem>>, vector<40x1xf32>
    %5 = vector.broadcast %4 : vector<40x1xf32> to vector<40x2xf32>
    %6 = arith.addf %3, %5 : vector<40x2xf32>
    %cst = arith.constant 0.000000e+00 : f32
    %7 = vector.broadcast %cst : f32 to vector<40x2xf32>
    %8 = arith.maximumf %6, %7 : vector<40x2xf32>
    %c0_5 = arith.constant 0 : index
    %c0_6 = arith.constant 0 : index
    %9 = vector.load %arg3[%c0_5, %c0_6] : memref<40x40xbf16, #tpu.memory_space<vmem>>, vector<40x40xbf16>
    %10 = arith.truncf %8 : vector<40x2xf32> to vector<40x2xbf16>
    %cst_7 = arith.constant dense<0.000000e+00> : vector<40x2xf32>
    %11 = tpu.matmul %9, %10, %cst_7 {dimension_numbers = #tpu.dot_dimension_numbers<[1], [0], [0], [1], [0, 0, 1, 1], [], []>} : vector<40x40xbf16>, vector<40x2xbf16>, vector<40x2xf32> -> vector<40x2xf32>
    %c0_8 = arith.constant 0 : index
    %c0_9 = arith.constant 0 : index
    %12 = vector.load %arg4[%c0_8, %c0_9] : memref<40x1xf32, #tpu.memory_space<vmem>>, vector<40x1xf32>
    %13 = vector.broadcast %12 : vector<40x1xf32> to vector<40x2xf32>
    %14 = arith.addf %11, %13 : vector<40x2xf32>
    %cst_10 = arith.constant 0.000000e+00 : f32
    %15 = vector.broadcast %cst_10 : f32 to vector<40x2xf32>
    %16 = arith.maximumf %14, %15 : vector<40x2xf32>
    %17 = tpu.concatenate %16, %0 in 0 : vector<40x2xf32>, vector<40x2xf32> -> vector<80x2xf32>
    %18 = arith.truncf %17 : vector<80x2xf32> to vector<80x2xbf16>
    %c0_11 = arith.constant 0 : index
    %c0_12 = arith.constant 0 : index
    %c0_13 = arith.constant 0 : index
    %19 = vector.load %arg5[%c0_11, %c0_12, %c0_13] : memref<4x40x80xbf16, #tpu.memory_space<vmem>>, vector<1x40x80xbf16>
    %20 = vector.shape_cast %19 : vector<1x40x80xbf16> to vector<40x80xbf16>
    %cst_14 = arith.constant dense<0.000000e+00> : vector<40x2xf32>
    %21 = tpu.matmul %20, %18, %cst_14 {dimension_numbers = #tpu.dot_dimension_numbers<[1], [0], [0], [1], [0, 0, 1, 1], [], []>} : vector<40x80xbf16>, vector<80x2xbf16>, vector<40x2xf32> -> vector<40x2xf32>
    %22 = arith.truncf %21 : vector<40x2xf32> to vector<40x2xbf16>
    %c0_15 = arith.constant 0 : index
    %c0_16 = arith.constant 0 : index
    %c0_17 = arith.constant 0 : index
    %23 = vector.load %arg7[%c0_15, %c0_16, %c0_17] : memref<4x2x8xbf16, #tpu.memory_space<vmem>>, vector<1x2x8xbf16>
    %24 = vector.shape_cast %23 : vector<1x2x8xbf16> to vector<2x8xbf16>
    %cst_18 = arith.constant dense<0.000000e+00> : vector<40x8xf32>
    %25 = tpu.matmul %22, %24, %cst_18 {dimension_numbers = #tpu.dot_dimension_numbers<[1], [0], [0], [1], [0, 0, 1, 1], [], []>} : vector<40x2xbf16>, vector<2x8xbf16>, vector<40x8xf32> -> vector<40x8xf32>
    %c1 = arith.constant 1 : index
    %c0_19 = arith.constant 0 : index
    %c0_20 = arith.constant 0 : index
    %26 = vector.load %arg5[%c1, %c0_19, %c0_20] : memref<4x40x80xbf16, #tpu.memory_space<vmem>>, vector<1x40x80xbf16>
    %27 = vector.shape_cast %26 : vector<1x40x80xbf16> to vector<40x80xbf16>
    %cst_21 = arith.constant dense<0.000000e+00> : vector<40x2xf32>
    %28 = tpu.matmul %27, %18, %cst_21 {dimension_numbers = #tpu.dot_dimension_numbers<[1], [0], [0], [1], [0, 0, 1, 1], [], []>} : vector<40x80xbf16>, vector<80x2xbf16>, vector<40x2xf32> -> vector<40x2xf32>
    %29 = arith.truncf %28 : vector<40x2xf32> to vector<40x2xbf16>
    %c1_22 = arith.constant 1 : index
    %c0_23 = arith.constant 0 : index
    %c0_24 = arith.constant 0 : index
    %30 = vector.load %arg7[%c1_22, %c0_23, %c0_24] : memref<4x2x8xbf16, #tpu.memory_space<vmem>>, vector<1x2x8xbf16>
    %31 = vector.shape_cast %30 : vector<1x2x8xbf16> to vector<2x8xbf16>
    %cst_25 = arith.constant dense<0.000000e+00> : vector<40x8xf32>
    %32 = tpu.matmul %29, %31, %cst_25 {dimension_numbers = #tpu.dot_dimension_numbers<[1], [0], [0], [1], [0, 0, 1, 1], [], []>} : vector<40x2xbf16>, vector<2x8xbf16>, vector<40x8xf32> -> vector<40x8xf32>
    %33 = arith.addf %25, %32 : vector<40x8xf32>
    %c2 = arith.constant 2 : index
    %c0_26 = arith.constant 0 : index
    %c0_27 = arith.constant 0 : index
    %34 = vector.load %arg5[%c2, %c0_26, %c0_27] : memref<4x40x80xbf16, #tpu.memory_space<vmem>>, vector<1x40x80xbf16>
    %35 = vector.shape_cast %34 : vector<1x40x80xbf16> to vector<40x80xbf16>
    %cst_28 = arith.constant dense<0.000000e+00> : vector<40x2xf32>
    %36 = tpu.matmul %35, %18, %cst_28 {dimension_numbers = #tpu.dot_dimension_numbers<[1], [0], [0], [1], [0, 0, 1, 1], [], []>} : vector<40x80xbf16>, vector<80x2xbf16>, vector<40x2xf32> -> vector<40x2xf32>
    %37 = arith.truncf %36 : vector<40x2xf32> to vector<40x2xbf16>
    %c2_29 = arith.constant 2 : index
    %c0_30 = arith.constant 0 : index
    %c0_31 = arith.constant 0 : index
    %38 = vector.load %arg7[%c2_29, %c0_30, %c0_31] : memref<4x2x8xbf16, #tpu.memory_space<vmem>>, vector<1x2x8xbf16>
    %39 = vector.shape_cast %38 : vector<1x2x8xbf16> to vector<2x8xbf16>
    %cst_32 = arith.constant dense<0.000000e+00> : vector<40x8xf32>
    %40 = tpu.matmul %37, %39, %cst_32 {dimension_numbers = #tpu.dot_dimension_numbers<[1], [0], [0], [1], [0, 0, 1, 1], [], []>} : vector<40x2xbf16>, vector<2x8xbf16>, vector<40x8xf32> -> vector<40x8xf32>
    %41 = arith.addf %33, %40 : vector<40x8xf32>
    %c3 = arith.constant 3 : index
    %c0_33 = arith.constant 0 : index
    %c0_34 = arith.constant 0 : index
    %42 = vector.load %arg5[%c3, %c0_33, %c0_34] : memref<4x40x80xbf16, #tpu.memory_space<vmem>>, vector<1x40x80xbf16>
    %43 = vector.shape_cast %42 : vector<1x40x80xbf16> to vector<40x80xbf16>
    %cst_35 = arith.constant dense<0.000000e+00> : vector<40x2xf32>
    %44 = tpu.matmul %43, %18, %cst_35 {dimension_numbers = #tpu.dot_dimension_numbers<[1], [0], [0], [1], [0, 0, 1, 1], [], []>} : vector<40x80xbf16>, vector<80x2xbf16>, vector<40x2xf32> -> vector<40x2xf32>
    %45 = arith.truncf %44 : vector<40x2xf32> to vector<40x2xbf16>
    %c3_36 = arith.constant 3 : index
    %c0_37 = arith.constant 0 : index
    %c0_38 = arith.constant 0 : index
    %46 = vector.load %arg7[%c3_36, %c0_37, %c0_38] : memref<4x2x8xbf16, #tpu.memory_space<vmem>>, vector<1x2x8xbf16>
    %47 = vector.shape_cast %46 : vector<1x2x8xbf16> to vector<2x8xbf16>
    %cst_39 = arith.constant dense<0.000000e+00> : vector<40x8xf32>
    %48 = tpu.matmul %45, %47, %cst_39 {dimension_numbers = #tpu.dot_dimension_numbers<[1], [0], [0], [1], [0, 0, 1, 1], [], []>} : vector<40x2xbf16>, vector<2x8xbf16>, vector<40x8xf32> -> vector<40x8xf32>
    %49 = arith.addf %41, %48 : vector<40x8xf32>
    %c0_40 = arith.constant 0 : index
    %c0_41 = arith.constant 0 : index
    %50 = vector.load %arg6[%c0_40, %c0_41] : memref<40x1xf32, #tpu.memory_space<vmem>>, vector<40x1xf32>
    %51 = vector.broadcast %50 : vector<40x1xf32> to vector<40x8xf32>
    %52 = arith.addf %49, %51 : vector<40x8xf32>
    %c0_42 = arith.constant 0 : index
    %c0_43 = arith.constant 0 : index
    %53 = vector.load %arg8[%c0_42, %c0_43] : memref<40x1xf32, #tpu.memory_space<vmem>>, vector<40x1xf32>
    %54 = vector.broadcast %53 : vector<40x1xf32> to vector<40x8xf32>
    %55 = arith.mulf %52, %54 : vector<40x8xf32>
    %c0_44 = arith.constant 0 : index
    %c0_45 = arith.constant 0 : index
    %56 = vector.load %arg9[%c0_44, %c0_45] : memref<40x1xf32, #tpu.memory_space<vmem>>, vector<40x1xf32>
    %57 = vector.broadcast %56 : vector<40x1xf32> to vector<40x8xf32>
    %58 = arith.addf %55, %57 : vector<40x8xf32>
    %cst_46 = arith.constant 0.000000e+00 : f32
    %59 = vector.broadcast %cst_46 : f32 to vector<40x8xf32>
    %60 = arith.maximumf %58, %59 : vector<40x8xf32>
    %c0_47 = arith.constant 0 : index
    %c0_48 = arith.constant 0 : index
    %61 = vector.load %arg10[%c0_47, %c0_48] : memref<40x40xbf16, #tpu.memory_space<vmem>>, vector<40x40xbf16>
    %62 = arith.truncf %60 : vector<40x8xf32> to vector<40x8xbf16>
    %cst_49 = arith.constant dense<0.000000e+00> : vector<40x8xf32>
    %63 = tpu.matmul %61, %62, %cst_49 {dimension_numbers = #tpu.dot_dimension_numbers<[1], [0], [0], [1], [0, 0, 1, 1], [], []>} : vector<40x40xbf16>, vector<40x8xbf16>, vector<40x8xf32> -> vector<40x8xf32>
    %c0_50 = arith.constant 0 : index
    %c0_51 = arith.constant 0 : index
    %64 = vector.load %arg11[%c0_50, %c0_51] : memref<40x1xf32, #tpu.memory_space<vmem>>, vector<40x1xf32>
    %65 = vector.broadcast %64 : vector<40x1xf32> to vector<40x8xf32>
    %66 = arith.addf %63, %65 : vector<40x8xf32>
    %cst_52 = arith.constant 0.000000e+00 : f32
    %67 = vector.broadcast %cst_52 : f32 to vector<40x8xf32>
    %68 = arith.maximumf %66, %67 : vector<40x8xf32>
    %69 = tpu.concatenate %68, %52 in 0 : vector<40x8xf32>, vector<40x8xf32> -> vector<80x8xf32>
    %70 = arith.truncf %69 : vector<80x8xf32> to vector<80x8xbf16>
    %c0_53 = arith.constant 0 : index
    %c0_54 = arith.constant 0 : index
    %c0_55 = arith.constant 0 : index
    %71 = vector.load %arg12[%c0_53, %c0_54, %c0_55] : memref<4x40x80xbf16, #tpu.memory_space<vmem>>, vector<1x40x80xbf16>
    %72 = vector.shape_cast %71 : vector<1x40x80xbf16> to vector<40x80xbf16>
    %cst_56 = arith.constant dense<0.000000e+00> : vector<40x8xf32>
    %73 = tpu.matmul %72, %70, %cst_56 {dimension_numbers = #tpu.dot_dimension_numbers<[1], [0], [0], [1], [0, 0, 1, 1], [], []>} : vector<40x80xbf16>, vector<80x8xbf16>, vector<40x8xf32> -> vector<40x8xf32>
    %74 = arith.truncf %73 : vector<40x8xf32> to vector<40x8xbf16>
    %c0_57 = arith.constant 0 : index
    %c0_58 = arith.constant 0 : index
    %c0_59 = arith.constant 0 : index
    %75 = vector.load %arg14[%c0_57, %c0_58, %c0_59] : memref<4x8x16xbf16, #tpu.memory_space<vmem>>, vector<1x8x16xbf16>
    %76 = vector.shape_cast %75 : vector<1x8x16xbf16> to vector<8x16xbf16>
    %cst_60 = arith.constant dense<0.000000e+00> : vector<40x16xf32>
    %77 = tpu.matmul %74, %76, %cst_60 {dimension_numbers = #tpu.dot_dimension_numbers<[1], [0], [0], [1], [0, 0, 1, 1], [], []>} : vector<40x8xbf16>, vector<8x16xbf16>, vector<40x16xf32> -> vector<40x16xf32>
    %c1_61 = arith.constant 1 : index
    %c0_62 = arith.constant 0 : index
    %c0_63 = arith.constant 0 : index
    %78 = vector.load %arg12[%c1_61, %c0_62, %c0_63] : memref<4x40x80xbf16, #tpu.memory_space<vmem>>, vector<1x40x80xbf16>
    %79 = vector.shape_cast %78 : vector<1x40x80xbf16> to vector<40x80xbf16>
    %cst_64 = arith.constant dense<0.000000e+00> : vector<40x8xf32>
    %80 = tpu.matmul %79, %70, %cst_64 {dimension_numbers = #tpu.dot_dimension_numbers<[1], [0], [0], [1], [0, 0, 1, 1], [], []>} : vector<40x80xbf16>, vector<80x8xbf16>, vector<40x8xf32> -> vector<40x8xf32>
    %81 = arith.truncf %80 : vector<40x8xf32> to vector<40x8xbf16>
    %c1_65 = arith.constant 1 : index
    %c0_66 = arith.constant 0 : index
    %c0_67 = arith.constant 0 : index
    %82 = vector.load %arg14[%c1_65, %c0_66, %c0_67] : memref<4x8x16xbf16, #tpu.memory_space<vmem>>, vector<1x8x16xbf16>
    %83 = vector.shape_cast %82 : vector<1x8x16xbf16> to vector<8x16xbf16>
    %cst_68 = arith.constant dense<0.000000e+00> : vector<40x16xf32>
    %84 = tpu.matmul %81, %83, %cst_68 {dimension_numbers = #tpu.dot_dimension_numbers<[1], [0], [0], [1], [0, 0, 1, 1], [], []>} : vector<40x8xbf16>, vector<8x16xbf16>, vector<40x16xf32> -> vector<40x16xf32>
    %85 = arith.addf %77, %84 : vector<40x16xf32>
    %c2_69 = arith.constant 2 : index
    %c0_70 = arith.constant 0 : index
    %c0_71 = arith.constant 0 : index
    %86 = vector.load %arg12[%c2_69, %c0_70, %c0_71] : memref<4x40x80xbf16, #tpu.memory_space<vmem>>, vector<1x40x80xbf16>
    %87 = vector.shape_cast %86 : vector<1x40x80xbf16> to vector<40x80xbf16>
    %cst_72 = arith.constant dense<0.000000e+00> : vector<40x8xf32>
    %88 = tpu.matmul %87, %70, %cst_72 {dimension_numbers = #tpu.dot_dimension_numbers<[1], [0], [0], [1], [0, 0, 1, 1], [], []>} : vector<40x80xbf16>, vector<80x8xbf16>, vector<40x8xf32> -> vector<40x8xf32>
    %89 = arith.truncf %88 : vector<40x8xf32> to vector<40x8xbf16>
    %c2_73 = arith.constant 2 : index
    %c0_74 = arith.constant 0 : index
    %c0_75 = arith.constant 0 : index
    %90 = vector.load %arg14[%c2_73, %c0_74, %c0_75] : memref<4x8x16xbf16, #tpu.memory_space<vmem>>, vector<1x8x16xbf16>
    %91 = vector.shape_cast %90 : vector<1x8x16xbf16> to vector<8x16xbf16>
    %cst_76 = arith.constant dense<0.000000e+00> : vector<40x16xf32>
    %92 = tpu.matmul %89, %91, %cst_76 {dimension_numbers = #tpu.dot_dimension_numbers<[1], [0], [0], [1], [0, 0, 1, 1], [], []>} : vector<40x8xbf16>, vector<8x16xbf16>, vector<40x16xf32> -> vector<40x16xf32>
    %93 = arith.addf %85, %92 : vector<40x16xf32>
    %c3_77 = arith.constant 3 : index
    %c0_78 = arith.constant 0 : index
    %c0_79 = arith.constant 0 : index
    %94 = vector.load %arg12[%c3_77, %c0_78, %c0_79] : memref<4x40x80xbf16, #tpu.memory_space<vmem>>, vector<1x40x80xbf16>
    %95 = vector.shape_cast %94 : vector<1x40x80xbf16> to vector<40x80xbf16>
    %cst_80 = arith.constant dense<0.000000e+00> : vector<40x8xf32>
    %96 = tpu.matmul %95, %70, %cst_80 {dimension_numbers = #tpu.dot_dimension_numbers<[1], [0], [0], [1], [0, 0, 1, 1], [], []>} : vector<40x80xbf16>, vector<80x8xbf16>, vector<40x8xf32> -> vector<40x8xf32>
    %97 = arith.truncf %96 : vector<40x8xf32> to vector<40x8xbf16>
    %c3_81 = arith.constant 3 : index
    %c0_82 = arith.constant 0 : index
    %c0_83 = arith.constant 0 : index
    %98 = vector.load %arg14[%c3_81, %c0_82, %c0_83] : memref<4x8x16xbf16, #tpu.memory_space<vmem>>, vector<1x8x16xbf16>
    %99 = vector.shape_cast %98 : vector<1x8x16xbf16> to vector<8x16xbf16>
    %cst_84 = arith.constant dense<0.000000e+00> : vector<40x16xf32>
    %100 = tpu.matmul %97, %99, %cst_84 {dimension_numbers = #tpu.dot_dimension_numbers<[1], [0], [0], [1], [0, 0, 1, 1], [], []>} : vector<40x8xbf16>, vector<8x16xbf16>, vector<40x16xf32> -> vector<40x16xf32>
    %101 = arith.addf %93, %100 : vector<40x16xf32>
    %c0_85 = arith.constant 0 : index
    %c0_86 = arith.constant 0 : index
    %102 = vector.load %arg13[%c0_85, %c0_86] : memref<40x1xf32, #tpu.memory_space<vmem>>, vector<40x1xf32>
    %103 = vector.broadcast %102 : vector<40x1xf32> to vector<40x16xf32>
    %104 = arith.addf %101, %103 : vector<40x16xf32>
    %c0_87 = arith.constant 0 : index
    %c0_88 = arith.constant 0 : index
    %105 = vector.load %arg15[%c0_87, %c0_88] : memref<40x1xf32, #tpu.memory_space<vmem>>, vector<40x1xf32>
    %106 = vector.broadcast %105 : vector<40x1xf32> to vector<40x16xf32>
    %107 = arith.mulf %104, %106 : vector<40x16xf32>
    %c0_89 = arith.constant 0 : index
    %c0_90 = arith.constant 0 : index
    %108 = vector.load %arg16[%c0_89, %c0_90] : memref<40x1xf32, #tpu.memory_space<vmem>>, vector<40x1xf32>
    %109 = vector.broadcast %108 : vector<40x1xf32> to vector<40x16xf32>
    %110 = arith.addf %107, %109 : vector<40x16xf32>
    %cst_91 = arith.constant 0.000000e+00 : f32
    %111 = vector.broadcast %cst_91 : f32 to vector<40x16xf32>
    %112 = arith.maximumf %110, %111 : vector<40x16xf32>
    %c0_92 = arith.constant 0 : index
    %c0_93 = arith.constant 0 : index
    %113 = vector.load %arg17[%c0_92, %c0_93] : memref<40x40xbf16, #tpu.memory_space<vmem>>, vector<40x40xbf16>
    %114 = arith.truncf %112 : vector<40x16xf32> to vector<40x16xbf16>
    %cst_94 = arith.constant dense<0.000000e+00> : vector<40x16xf32>
    %115 = tpu.matmul %113, %114, %cst_94 {dimension_numbers = #tpu.dot_dimension_numbers<[1], [0], [0], [1], [0, 0, 1, 1], [], []>} : vector<40x40xbf16>, vector<40x16xbf16>, vector<40x16xf32> -> vector<40x16xf32>
    %c0_95 = arith.constant 0 : index
    %c0_96 = arith.constant 0 : index
    %116 = vector.load %arg18[%c0_95, %c0_96] : memref<40x1xf32, #tpu.memory_space<vmem>>, vector<40x1xf32>
    %117 = vector.broadcast %116 : vector<40x1xf32> to vector<40x16xf32>
    %118 = arith.addf %115, %117 : vector<40x16xf32>
    %cst_97 = arith.constant 0.000000e+00 : f32
    %119 = vector.broadcast %cst_97 : f32 to vector<40x16xf32>
    %120 = arith.maximumf %118, %119 : vector<40x16xf32>
    %121 = tpu.concatenate %120, %104 in 0 : vector<40x16xf32>, vector<40x16xf32> -> vector<80x16xf32>
    %122 = arith.truncf %121 : vector<80x16xf32> to vector<80x16xbf16>
    %c0_98 = arith.constant 0 : index
    %c0_99 = arith.constant 0 : index
    %c0_100 = arith.constant 0 : index
    %123 = vector.load %arg19[%c0_98, %c0_99, %c0_100] : memref<4x40x80xbf16, #tpu.memory_space<vmem>>, vector<1x40x80xbf16>
    %124 = vector.shape_cast %123 : vector<1x40x80xbf16> to vector<40x80xbf16>
    %cst_101 = arith.constant dense<0.000000e+00> : vector<40x16xf32>
    %125 = tpu.matmul %124, %122, %cst_101 {dimension_numbers = #tpu.dot_dimension_numbers<[1], [0], [0], [1], [0, 0, 1, 1], [], []>} : vector<40x80xbf16>, vector<80x16xbf16>, vector<40x16xf32> -> vector<40x16xf32>
    %126 = arith.truncf %125 : vector<40x16xf32> to vector<40x16xbf16>
    %c0_102 = arith.constant 0 : index
    %c0_103 = arith.constant 0 : index
    %c0_104 = arith.constant 0 : index
    %127 = vector.load %arg21[%c0_102, %c0_103, %c0_104] : memref<4x16x32xbf16, #tpu.memory_space<vmem>>, vector<1x16x32xbf16>
    %128 = vector.shape_cast %127 : vector<1x16x32xbf16> to vector<16x32xbf16>
    %cst_105 = arith.constant dense<0.000000e+00> : vector<40x32xf32>
    %129 = tpu.matmul %126, %128, %cst_105 {dimension_numbers = #tpu.dot_dimension_numbers<[1], [0], [0], [1], [0, 0, 1, 1], [], []>} : vector<40x16xbf16>, vector<16x32xbf16>, vector<40x32xf32> -> vector<40x32xf32>
    %c1_106 = arith.constant 1 : index
    %c0_107 = arith.constant 0 : index
    %c0_108 = arith.constant 0 : index
    %130 = vector.load %arg19[%c1_106, %c0_107, %c0_108] : memref<4x40x80xbf16, #tpu.memory_space<vmem>>, vector<1x40x80xbf16>
    %131 = vector.shape_cast %130 : vector<1x40x80xbf16> to vector<40x80xbf16>
    %cst_109 = arith.constant dense<0.000000e+00> : vector<40x16xf32>
    %132 = tpu.matmul %131, %122, %cst_109 {dimension_numbers = #tpu.dot_dimension_numbers<[1], [0], [0], [1], [0, 0, 1, 1], [], []>} : vector<40x80xbf16>, vector<80x16xbf16>, vector<40x16xf32> -> vector<40x16xf32>
    %133 = arith.truncf %132 : vector<40x16xf32> to vector<40x16xbf16>
    %c1_110 = arith.constant 1 : index
    %c0_111 = arith.constant 0 : index
    %c0_112 = arith.constant 0 : index
    %134 = vector.load %arg21[%c1_110, %c0_111, %c0_112] : memref<4x16x32xbf16, #tpu.memory_space<vmem>>, vector<1x16x32xbf16>
    %135 = vector.shape_cast %134 : vector<1x16x32xbf16> to vector<16x32xbf16>
    %cst_113 = arith.constant dense<0.000000e+00> : vector<40x32xf32>
    %136 = tpu.matmul %133, %135, %cst_113 {dimension_numbers = #tpu.dot_dimension_numbers<[1], [0], [0], [1], [0, 0, 1, 1], [], []>} : vector<40x16xbf16>, vector<16x32xbf16>, vector<40x32xf32> -> vector<40x32xf32>
    %137 = arith.addf %129, %136 : vector<40x32xf32>
    %c2_114 = arith.constant 2 : index
    %c0_115 = arith.constant 0 : index
    %c0_116 = arith.constant 0 : index
    %138 = vector.load %arg19[%c2_114, %c0_115, %c0_116] : memref<4x40x80xbf16, #tpu.memory_space<vmem>>, vector<1x40x80xbf16>
    %139 = vector.shape_cast %138 : vector<1x40x80xbf16> to vector<40x80xbf16>
    %cst_117 = arith.constant dense<0.000000e+00> : vector<40x16xf32>
    %140 = tpu.matmul %139, %122, %cst_117 {dimension_numbers = #tpu.dot_dimension_numbers<[1], [0], [0], [1], [0, 0, 1, 1], [], []>} : vector<40x80xbf16>, vector<80x16xbf16>, vector<40x16xf32> -> vector<40x16xf32>
    %141 = arith.truncf %140 : vector<40x16xf32> to vector<40x16xbf16>
    %c2_118 = arith.constant 2 : index
    %c0_119 = arith.constant 0 : index
    %c0_120 = arith.constant 0 : index
    %142 = vector.load %arg21[%c2_118, %c0_119, %c0_120] : memref<4x16x32xbf16, #tpu.memory_space<vmem>>, vector<1x16x32xbf16>
    %143 = vector.shape_cast %142 : vector<1x16x32xbf16> to vector<16x32xbf16>
    %cst_121 = arith.constant dense<0.000000e+00> : vector<40x32xf32>
    %144 = tpu.matmul %141, %143, %cst_121 {dimension_numbers = #tpu.dot_dimension_numbers<[1], [0], [0], [1], [0, 0, 1, 1], [], []>} : vector<40x16xbf16>, vector<16x32xbf16>, vector<40x32xf32> -> vector<40x32xf32>
    %145 = arith.addf %137, %144 : vector<40x32xf32>
    %c3_122 = arith.constant 3 : index
    %c0_123 = arith.constant 0 : index
    %c0_124 = arith.constant 0 : index
    %146 = vector.load %arg19[%c3_122, %c0_123, %c0_124] : memref<4x40x80xbf16, #tpu.memory_space<vmem>>, vector<1x40x80xbf16>
    %147 = vector.shape_cast %146 : vector<1x40x80xbf16> to vector<40x80xbf16>
    %cst_125 = arith.constant dense<0.000000e+00> : vector<40x16xf32>
    %148 = tpu.matmul %147, %122, %cst_125 {dimension_numbers = #tpu.dot_dimension_numbers<[1], [0], [0], [1], [0, 0, 1, 1], [], []>} : vector<40x80xbf16>, vector<80x16xbf16>, vector<40x16xf32> -> vector<40x16xf32>
    %149 = arith.truncf %148 : vector<40x16xf32> to vector<40x16xbf16>
    %c3_126 = arith.constant 3 : index
    %c0_127 = arith.constant 0 : index
    %c0_128 = arith.constant 0 : index
    %150 = vector.load %arg21[%c3_126, %c0_127, %c0_128] : memref<4x16x32xbf16, #tpu.memory_space<vmem>>, vector<1x16x32xbf16>
    %151 = vector.shape_cast %150 : vector<1x16x32xbf16> to vector<16x32xbf16>
    %cst_129 = arith.constant dense<0.000000e+00> : vector<40x32xf32>
    %152 = tpu.matmul %149, %151, %cst_129 {dimension_numbers = #tpu.dot_dimension_numbers<[1], [0], [0], [1], [0, 0, 1, 1], [], []>} : vector<40x16xbf16>, vector<16x32xbf16>, vector<40x32xf32> -> vector<40x32xf32>
    %153 = arith.addf %145, %152 : vector<40x32xf32>
    %c0_130 = arith.constant 0 : index
    %c0_131 = arith.constant 0 : index
    %154 = vector.load %arg20[%c0_130, %c0_131] : memref<40x1xf32, #tpu.memory_space<vmem>>, vector<40x1xf32>
    %155 = vector.broadcast %154 : vector<40x1xf32> to vector<40x32xf32>
    %156 = arith.addf %153, %155 : vector<40x32xf32>
    %c0_132 = arith.constant 0 : index
    %c0_133 = arith.constant 0 : index
    %157 = vector.load %arg22[%c0_132, %c0_133] : memref<40x1xf32, #tpu.memory_space<vmem>>, vector<40x1xf32>
    %158 = vector.broadcast %157 : vector<40x1xf32> to vector<40x32xf32>
    %159 = arith.mulf %156, %158 : vector<40x32xf32>
    %c0_134 = arith.constant 0 : index
    %c0_135 = arith.constant 0 : index
    %160 = vector.load %arg23[%c0_134, %c0_135] : memref<40x1xf32, #tpu.memory_space<vmem>>, vector<40x1xf32>
    %161 = vector.broadcast %160 : vector<40x1xf32> to vector<40x32xf32>
    %162 = arith.addf %159, %161 : vector<40x32xf32>
    %cst_136 = arith.constant 0.000000e+00 : f32
    %163 = vector.broadcast %cst_136 : f32 to vector<40x32xf32>
    %164 = arith.maximumf %162, %163 : vector<40x32xf32>
    %c0_137 = arith.constant 0 : index
    %c0_138 = arith.constant 0 : index
    %165 = vector.load %arg24[%c0_137, %c0_138] : memref<40x40xbf16, #tpu.memory_space<vmem>>, vector<40x40xbf16>
    %166 = arith.truncf %164 : vector<40x32xf32> to vector<40x32xbf16>
    %cst_139 = arith.constant dense<0.000000e+00> : vector<40x32xf32>
    %167 = tpu.matmul %165, %166, %cst_139 {dimension_numbers = #tpu.dot_dimension_numbers<[1], [0], [0], [1], [0, 0, 1, 1], [], []>} : vector<40x40xbf16>, vector<40x32xbf16>, vector<40x32xf32> -> vector<40x32xf32>
    %c0_140 = arith.constant 0 : index
    %c0_141 = arith.constant 0 : index
    %168 = vector.load %arg25[%c0_140, %c0_141] : memref<40x1xf32, #tpu.memory_space<vmem>>, vector<40x1xf32>
    %169 = vector.broadcast %168 : vector<40x1xf32> to vector<40x32xf32>
    %170 = arith.addf %167, %169 : vector<40x32xf32>
    %cst_142 = arith.constant 0.000000e+00 : f32
    %171 = vector.broadcast %cst_142 : f32 to vector<40x32xf32>
    %172 = arith.maximumf %170, %171 : vector<40x32xf32>
    %173 = tpu.concatenate %172, %156 in 0 : vector<40x32xf32>, vector<40x32xf32> -> vector<80x32xf32>
    %174 = arith.truncf %173 : vector<80x32xf32> to vector<80x32xbf16>
    %c0_143 = arith.constant 0 : index
    %c0_144 = arith.constant 0 : index
    %c0_145 = arith.constant 0 : index
    %175 = vector.load %arg26[%c0_143, %c0_144, %c0_145] : memref<4x32x80xbf16, #tpu.memory_space<vmem>>, vector<1x32x80xbf16>
    %176 = vector.shape_cast %175 : vector<1x32x80xbf16> to vector<32x80xbf16>
    %cst_146 = arith.constant dense<0.000000e+00> : vector<32x32xf32>
    %177 = tpu.matmul %176, %174, %cst_146 {dimension_numbers = #tpu.dot_dimension_numbers<[1], [0], [0], [1], [0, 0, 1, 1], [], []>} : vector<32x80xbf16>, vector<80x32xbf16>, vector<32x32xf32> -> vector<32x32xf32>
    %178 = arith.truncf %177 : vector<32x32xf32> to vector<32x32xbf16>
    %c0_147 = arith.constant 0 : index
    %c0_148 = arith.constant 0 : index
    %c0_149 = arith.constant 0 : index
    %179 = vector.load %arg28[%c0_147, %c0_148, %c0_149] : memref<4x32x64xbf16, #tpu.memory_space<vmem>>, vector<1x32x64xbf16>
    %180 = vector.shape_cast %179 : vector<1x32x64xbf16> to vector<32x64xbf16>
    %cst_150 = arith.constant dense<0.000000e+00> : vector<32x64xf32>
    %181 = tpu.matmul %178, %180, %cst_150 {dimension_numbers = #tpu.dot_dimension_numbers<[1], [0], [0], [1], [0, 0, 1, 1], [], []>} : vector<32x32xbf16>, vector<32x64xbf16>, vector<32x64xf32> -> vector<32x64xf32>
    %c1_151 = arith.constant 1 : index
    %c0_152 = arith.constant 0 : index
    %c0_153 = arith.constant 0 : index
    %182 = vector.load %arg26[%c1_151, %c0_152, %c0_153] : memref<4x32x80xbf16, #tpu.memory_space<vmem>>, vector<1x32x80xbf16>
    %183 = vector.shape_cast %182 : vector<1x32x80xbf16> to vector<32x80xbf16>
    %cst_154 = arith.constant dense<0.000000e+00> : vector<32x32xf32>
    %184 = tpu.matmul %183, %174, %cst_154 {dimension_numbers = #tpu.dot_dimension_numbers<[1], [0], [0], [1], [0, 0, 1, 1], [], []>} : vector<32x80xbf16>, vector<80x32xbf16>, vector<32x32xf32> -> vector<32x32xf32>
    %185 = arith.truncf %184 : vector<32x32xf32> to vector<32x32xbf16>
    %c1_155 = arith.constant 1 : index
    %c0_156 = arith.constant 0 : index
    %c0_157 = arith.constant 0 : index
    %186 = vector.load %arg28[%c1_155, %c0_156, %c0_157] : memref<4x32x64xbf16, #tpu.memory_space<vmem>>, vector<1x32x64xbf16>
    %187 = vector.shape_cast %186 : vector<1x32x64xbf16> to vector<32x64xbf16>
    %cst_158 = arith.constant dense<0.000000e+00> : vector<32x64xf32>
    %188 = tpu.matmul %185, %187, %cst_158 {dimension_numbers = #tpu.dot_dimension_numbers<[1], [0], [0], [1], [0, 0, 1, 1], [], []>} : vector<32x32xbf16>, vector<32x64xbf16>, vector<32x64xf32> -> vector<32x64xf32>
    %189 = arith.addf %181, %188 : vector<32x64xf32>
    %c2_159 = arith.constant 2 : index
    %c0_160 = arith.constant 0 : index
    %c0_161 = arith.constant 0 : index
    %190 = vector.load %arg26[%c2_159, %c0_160, %c0_161] : memref<4x32x80xbf16, #tpu.memory_space<vmem>>, vector<1x32x80xbf16>
    %191 = vector.shape_cast %190 : vector<1x32x80xbf16> to vector<32x80xbf16>
    %cst_162 = arith.constant dense<0.000000e+00> : vector<32x32xf32>
    %192 = tpu.matmul %191, %174, %cst_162 {dimension_numbers = #tpu.dot_dimension_numbers<[1], [0], [0], [1], [0, 0, 1, 1], [], []>} : vector<32x80xbf16>, vector<80x32xbf16>, vector<32x32xf32> -> vector<32x32xf32>
    %193 = arith.truncf %192 : vector<32x32xf32> to vector<32x32xbf16>
    %c2_163 = arith.constant 2 : index
    %c0_164 = arith.constant 0 : index
    %c0_165 = arith.constant 0 : index
    %194 = vector.load %arg28[%c2_163, %c0_164, %c0_165] : memref<4x32x64xbf16, #tpu.memory_space<vmem>>, vector<1x32x64xbf16>
    %195 = vector.shape_cast %194 : vector<1x32x64xbf16> to vector<32x64xbf16>
    %cst_166 = arith.constant dense<0.000000e+00> : vector<32x64xf32>
    %196 = tpu.matmul %193, %195, %cst_166 {dimension_numbers = #tpu.dot_dimension_numbers<[1], [0], [0], [1], [0, 0, 1, 1], [], []>} : vector<32x32xbf16>, vector<32x64xbf16>, vector<32x64xf32> -> vector<32x64xf32>
    %197 = arith.addf %189, %196 : vector<32x64xf32>
    %c3_167 = arith.constant 3 : index
    %c0_168 = arith.constant 0 : index
    %c0_169 = arith.constant 0 : index
    %198 = vector.load %arg26[%c3_167, %c0_168, %c0_169] : memref<4x32x80xbf16, #tpu.memory_space<vmem>>, vector<1x32x80xbf16>
    %199 = vector.shape_cast %198 : vector<1x32x80xbf16> to vector<32x80xbf16>
    %cst_170 = arith.constant dense<0.000000e+00> : vector<32x32xf32>
    %200 = tpu.matmul %199, %174, %cst_170 {dimension_numbers = #tpu.dot_dimension_numbers<[1], [0], [0], [1], [0, 0, 1, 1], [], []>} : vector<32x80xbf16>, vector<80x32xbf16>, vector<32x32xf32> -> vector<32x32xf32>
    %201 = arith.truncf %200 : vector<32x32xf32> to vector<32x32xbf16>
    %c3_171 = arith.constant 3 : index
    %c0_172 = arith.constant 0 : index
    %c0_173 = arith.constant 0 : index
    %202 = vector.load %arg28[%c3_171, %c0_172, %c0_173] : memref<4x32x64xbf16, #tpu.memory_space<vmem>>, vector<1x32x64xbf16>
    %203 = vector.shape_cast %202 : vector<1x32x64xbf16> to vector<32x64xbf16>
    %cst_174 = arith.constant dense<0.000000e+00> : vector<32x64xf32>
    %204 = tpu.matmul %201, %203, %cst_174 {dimension_numbers = #tpu.dot_dimension_numbers<[1], [0], [0], [1], [0, 0, 1, 1], [], []>} : vector<32x32xbf16>, vector<32x64xbf16>, vector<32x64xf32> -> vector<32x64xf32>
    %205 = arith.addf %197, %204 : vector<32x64xf32>
    %c0_175 = arith.constant 0 : index
    %c0_176 = arith.constant 0 : index
    %206 = vector.load %arg27[%c0_175, %c0_176] : memref<32x1xf32, #tpu.memory_space<vmem>>, vector<32x1xf32>
    %207 = vector.broadcast %206 : vector<32x1xf32> to vector<32x64xf32>
    %208 = arith.addf %205, %207 : vector<32x64xf32>
    %c0_177 = arith.constant 0 : index
    %c0_178 = arith.constant 0 : index
    %209 = vector.load %arg29[%c0_177, %c0_178] : memref<32x1xf32, #tpu.memory_space<vmem>>, vector<32x1xf32>
    %210 = vector.broadcast %209 : vector<32x1xf32> to vector<32x64xf32>
    %211 = arith.mulf %208, %210 : vector<32x64xf32>
    %c0_179 = arith.constant 0 : index
    %c0_180 = arith.constant 0 : index
    %212 = vector.load %arg30[%c0_179, %c0_180] : memref<32x1xf32, #tpu.memory_space<vmem>>, vector<32x1xf32>
    %213 = vector.broadcast %212 : vector<32x1xf32> to vector<32x64xf32>
    %214 = arith.addf %211, %213 : vector<32x64xf32>
    %cst_181 = arith.constant 0.000000e+00 : f32
    %215 = vector.broadcast %cst_181 : f32 to vector<32x64xf32>
    %216 = arith.maximumf %214, %215 : vector<32x64xf32>
    %c0_182 = arith.constant 0 : index
    %c0_183 = arith.constant 0 : index
    %217 = vector.load %arg31[%c0_182, %c0_183] : memref<32x32xbf16, #tpu.memory_space<vmem>>, vector<32x32xbf16>
    %218 = arith.truncf %216 : vector<32x64xf32> to vector<32x64xbf16>
    %cst_184 = arith.constant dense<0.000000e+00> : vector<32x64xf32>
    %219 = tpu.matmul %217, %218, %cst_184 {dimension_numbers = #tpu.dot_dimension_numbers<[1], [0], [0], [1], [0, 0, 1, 1], [], []>} : vector<32x32xbf16>, vector<32x64xbf16>, vector<32x64xf32> -> vector<32x64xf32>
    %c0_185 = arith.constant 0 : index
    %c0_186 = arith.constant 0 : index
    %220 = vector.load %arg32[%c0_185, %c0_186] : memref<32x1xf32, #tpu.memory_space<vmem>>, vector<32x1xf32>
    %221 = vector.broadcast %220 : vector<32x1xf32> to vector<32x64xf32>
    %222 = arith.addf %219, %221 : vector<32x64xf32>
    %cst_187 = arith.constant 0.000000e+00 : f32
    %223 = vector.broadcast %cst_187 : f32 to vector<32x64xf32>
    %224 = arith.maximumf %222, %223 : vector<32x64xf32>
    %225 = tpu.concatenate %224, %208 in 0 : vector<32x64xf32>, vector<32x64xf32> -> vector<64x64xf32>
    %226 = arith.truncf %225 : vector<64x64xf32> to vector<64x64xbf16>
    %c0_188 = arith.constant 0 : index
    %c0_189 = arith.constant 0 : index
    %c0_190 = arith.constant 0 : index
    %227 = vector.load %arg33[%c0_188, %c0_189, %c0_190] : memref<4x32x64xbf16, #tpu.memory_space<vmem>>, vector<1x32x64xbf16>
    %228 = vector.shape_cast %227 : vector<1x32x64xbf16> to vector<32x64xbf16>
    %cst_191 = arith.constant dense<0.000000e+00> : vector<32x64xf32>
    %229 = tpu.matmul %228, %226, %cst_191 {dimension_numbers = #tpu.dot_dimension_numbers<[1], [0], [0], [1], [0, 0, 1, 1], [], []>} : vector<32x64xbf16>, vector<64x64xbf16>, vector<32x64xf32> -> vector<32x64xf32>
    %230 = arith.truncf %229 : vector<32x64xf32> to vector<32x64xbf16>
    %c0_192 = arith.constant 0 : index
    %c0_193 = arith.constant 0 : index
    %c0_194 = arith.constant 0 : index
    %231 = vector.load %arg35[%c0_192, %c0_193, %c0_194] : memref<4x64x128xbf16, #tpu.memory_space<vmem>>, vector<1x64x128xbf16>
    %232 = vector.shape_cast %231 : vector<1x64x128xbf16> to vector<64x128xbf16>
    %cst_195 = arith.constant dense<0.000000e+00> : vector<32x128xf32>
    %233 = tpu.matmul %230, %232, %cst_195 {dimension_numbers = #tpu.dot_dimension_numbers<[1], [0], [0], [1], [0, 0, 1, 1], [], []>} : vector<32x64xbf16>, vector<64x128xbf16>, vector<32x128xf32> -> vector<32x128xf32>
    %c1_196 = arith.constant 1 : index
    %c0_197 = arith.constant 0 : index
    %c0_198 = arith.constant 0 : index
    %234 = vector.load %arg33[%c1_196, %c0_197, %c0_198] : memref<4x32x64xbf16, #tpu.memory_space<vmem>>, vector<1x32x64xbf16>
    %235 = vector.shape_cast %234 : vector<1x32x64xbf16> to vector<32x64xbf16>
    %cst_199 = arith.constant dense<0.000000e+00> : vector<32x64xf32>
    %236 = tpu.matmul %235, %226, %cst_199 {dimension_numbers = #tpu.dot_dimension_numbers<[1], [0], [0], [1], [0, 0, 1, 1], [], []>} : vector<32x64xbf16>, vector<64x64xbf16>, vector<32x64xf32> -> vector<32x64xf32>
    %237 = arith.truncf %236 : vector<32x64xf32> to vector<32x64xbf16>
    %c1_200 = arith.constant 1 : index
    %c0_201 = arith.constant 0 : index
    %c0_202 = arith.constant 0 : index
    %238 = vector.load %arg35[%c1_200, %c0_201, %c0_202] : memref<4x64x128xbf16, #tpu.memory_space<vmem>>, vector<1x64x128xbf16>
    %239 = vector.shape_cast %238 : vector<1x64x128xbf16> to vector<64x128xbf16>
    %cst_203 = arith.constant dense<0.000000e+00> : vector<32x128xf32>
    %240 = tpu.matmul %237, %239, %cst_203 {dimension_numbers = #tpu.dot_dimension_numbers<[1], [0], [0], [1], [0, 0, 1, 1], [], []>} : vector<32x64xbf16>, vector<64x128xbf16>, vector<32x128xf32> -> vector<32x128xf32>
    %241 = arith.addf %233, %240 : vector<32x128xf32>
    %c2_204 = arith.constant 2 : index
    %c0_205 = arith.constant 0 : index
    %c0_206 = arith.constant 0 : index
    %242 = vector.load %arg33[%c2_204, %c0_205, %c0_206] : memref<4x32x64xbf16, #tpu.memory_space<vmem>>, vector<1x32x64xbf16>
    %243 = vector.shape_cast %242 : vector<1x32x64xbf16> to vector<32x64xbf16>
    %cst_207 = arith.constant dense<0.000000e+00> : vector<32x64xf32>
    %244 = tpu.matmul %243, %226, %cst_207 {dimension_numbers = #tpu.dot_dimension_numbers<[1], [0], [0], [1], [0, 0, 1, 1], [], []>} : vector<32x64xbf16>, vector<64x64xbf16>, vector<32x64xf32> -> vector<32x64xf32>
    %245 = arith.truncf %244 : vector<32x64xf32> to vector<32x64xbf16>
    %c2_208 = arith.constant 2 : index
    %c0_209 = arith.constant 0 : index
    %c0_210 = arith.constant 0 : index
    %246 = vector.load %arg35[%c2_208, %c0_209, %c0_210] : memref<4x64x128xbf16, #tpu.memory_space<vmem>>, vector<1x64x128xbf16>
    %247 = vector.shape_cast %246 : vector<1x64x128xbf16> to vector<64x128xbf16>
    %cst_211 = arith.constant dense<0.000000e+00> : vector<32x128xf32>
    %248 = tpu.matmul %245, %247, %cst_211 {dimension_numbers = #tpu.dot_dimension_numbers<[1], [0], [0], [1], [0, 0, 1, 1], [], []>} : vector<32x64xbf16>, vector<64x128xbf16>, vector<32x128xf32> -> vector<32x128xf32>
    %249 = arith.addf %241, %248 : vector<32x128xf32>
    %c3_212 = arith.constant 3 : index
    %c0_213 = arith.constant 0 : index
    %c0_214 = arith.constant 0 : index
    %250 = vector.load %arg33[%c3_212, %c0_213, %c0_214] : memref<4x32x64xbf16, #tpu.memory_space<vmem>>, vector<1x32x64xbf16>
    %251 = vector.shape_cast %250 : vector<1x32x64xbf16> to vector<32x64xbf16>
    %cst_215 = arith.constant dense<0.000000e+00> : vector<32x64xf32>
    %252 = tpu.matmul %251, %226, %cst_215 {dimension_numbers = #tpu.dot_dimension_numbers<[1], [0], [0], [1], [0, 0, 1, 1], [], []>} : vector<32x64xbf16>, vector<64x64xbf16>, vector<32x64xf32> -> vector<32x64xf32>
    %253 = arith.truncf %252 : vector<32x64xf32> to vector<32x64xbf16>
    %c3_216 = arith.constant 3 : index
    %c0_217 = arith.constant 0 : index
    %c0_218 = arith.constant 0 : index
    %254 = vector.load %arg35[%c3_216, %c0_217, %c0_218] : memref<4x64x128xbf16, #tpu.memory_space<vmem>>, vector<1x64x128xbf16>
    %255 = vector.shape_cast %254 : vector<1x64x128xbf16> to vector<64x128xbf16>
    %cst_219 = arith.constant dense<0.000000e+00> : vector<32x128xf32>
    %256 = tpu.matmul %253, %255, %cst_219 {dimension_numbers = #tpu.dot_dimension_numbers<[1], [0], [0], [1], [0, 0, 1, 1], [], []>} : vector<32x64xbf16>, vector<64x128xbf16>, vector<32x128xf32> -> vector<32x128xf32>
    %257 = arith.addf %249, %256 : vector<32x128xf32>
    %c0_220 = arith.constant 0 : index
    %c0_221 = arith.constant 0 : index
    %258 = vector.load %arg34[%c0_220, %c0_221] : memref<32x1xf32, #tpu.memory_space<vmem>>, vector<32x1xf32>
    %259 = vector.broadcast %258 : vector<32x1xf32> to vector<32x128xf32>
    %260 = arith.addf %257, %259 : vector<32x128xf32>
    %c0_222 = arith.constant 0 : index
    %c0_223 = arith.constant 0 : index
    %261 = vector.load %arg36[%c0_222, %c0_223] : memref<32x1xf32, #tpu.memory_space<vmem>>, vector<32x1xf32>
    %262 = vector.broadcast %261 : vector<32x1xf32> to vector<32x128xf32>
    %263 = arith.mulf %260, %262 : vector<32x128xf32>
    %c0_224 = arith.constant 0 : index
    %c0_225 = arith.constant 0 : index
    %264 = vector.load %arg37[%c0_224, %c0_225] : memref<32x1xf32, #tpu.memory_space<vmem>>, vector<32x1xf32>
    %265 = vector.broadcast %264 : vector<32x1xf32> to vector<32x128xf32>
    %266 = arith.addf %263, %265 : vector<32x128xf32>
    %cst_226 = arith.constant 0.000000e+00 : f32
    %267 = vector.broadcast %cst_226 : f32 to vector<32x128xf32>
    %268 = arith.maximumf %266, %267 : vector<32x128xf32>
    %c0_227 = arith.constant 0 : index
    %c0_228 = arith.constant 0 : index
    %269 = vector.load %arg38[%c0_227, %c0_228] : memref<32x32xbf16, #tpu.memory_space<vmem>>, vector<32x32xbf16>
    %270 = arith.truncf %268 : vector<32x128xf32> to vector<32x128xbf16>
    %cst_229 = arith.constant dense<0.000000e+00> : vector<32x128xf32>
    %271 = tpu.matmul %269, %270, %cst_229 {dimension_numbers = #tpu.dot_dimension_numbers<[1], [0], [0], [1], [0, 0, 1, 1], [], []>} : vector<32x32xbf16>, vector<32x128xbf16>, vector<32x128xf32> -> vector<32x128xf32>
    %c0_230 = arith.constant 0 : index
    %c0_231 = arith.constant 0 : index
    %272 = vector.load %arg39[%c0_230, %c0_231] : memref<32x1xf32, #tpu.memory_space<vmem>>, vector<32x1xf32>
    %273 = vector.broadcast %272 : vector<32x1xf32> to vector<32x128xf32>
    %274 = arith.addf %271, %273 : vector<32x128xf32>
    %cst_232 = arith.constant 0.000000e+00 : f32
    %275 = vector.broadcast %cst_232 : f32 to vector<32x128xf32>
    %276 = arith.maximumf %274, %275 : vector<32x128xf32>
    %277 = tpu.concatenate %276, %260 in 0 : vector<32x128xf32>, vector<32x128xf32> -> vector<64x128xf32>
    %278 = arith.truncf %277 : vector<64x128xf32> to vector<64x128xbf16>
    %c0_233 = arith.constant 0 : index
    %c0_234 = arith.constant 0 : index
    %c0_235 = arith.constant 0 : index
    %279 = vector.load %arg40[%c0_233, %c0_234, %c0_235] : memref<4x8x64xbf16, #tpu.memory_space<vmem>>, vector<1x8x64xbf16>
    %280 = vector.shape_cast %279 : vector<1x8x64xbf16> to vector<8x64xbf16>
    %cst_236 = arith.constant dense<0.000000e+00> : vector<8x128xf32>
    %281 = tpu.matmul %280, %278, %cst_236 {dimension_numbers = #tpu.dot_dimension_numbers<[1], [0], [0], [1], [0, 0, 1, 1], [], []>} : vector<8x64xbf16>, vector<64x128xbf16>, vector<8x128xf32> -> vector<8x128xf32>
    %282 = arith.truncf %281 : vector<8x128xf32> to vector<8x128xbf16>
    %c0_237 = arith.constant 0 : index
    %c0_238 = arith.constant 0 : index
    %c0_239 = arith.constant 0 : index
    %283 = vector.load %arg42[%c0_237, %c0_238, %c0_239] : memref<4x128x256xbf16, #tpu.memory_space<vmem>>, vector<1x128x256xbf16>
    %284 = vector.shape_cast %283 : vector<1x128x256xbf16> to vector<128x256xbf16>
    %cst_240 = arith.constant dense<0.000000e+00> : vector<8x256xf32>
    %285 = tpu.matmul %282, %284, %cst_240 {dimension_numbers = #tpu.dot_dimension_numbers<[1], [0], [0], [1], [0, 0, 1, 1], [], []>} : vector<8x128xbf16>, vector<128x256xbf16>, vector<8x256xf32> -> vector<8x256xf32>
    %c1_241 = arith.constant 1 : index
    %c0_242 = arith.constant 0 : index
    %c0_243 = arith.constant 0 : index
    %286 = vector.load %arg40[%c1_241, %c0_242, %c0_243] : memref<4x8x64xbf16, #tpu.memory_space<vmem>>, vector<1x8x64xbf16>
    %287 = vector.shape_cast %286 : vector<1x8x64xbf16> to vector<8x64xbf16>
    %cst_244 = arith.constant dense<0.000000e+00> : vector<8x128xf32>
    %288 = tpu.matmul %287, %278, %cst_244 {dimension_numbers = #tpu.dot_dimension_numbers<[1], [0], [0], [1], [0, 0, 1, 1], [], []>} : vector<8x64xbf16>, vector<64x128xbf16>, vector<8x128xf32> -> vector<8x128xf32>
    %289 = arith.truncf %288 : vector<8x128xf32> to vector<8x128xbf16>
    %c1_245 = arith.constant 1 : index
    %c0_246 = arith.constant 0 : index
    %c0_247 = arith.constant 0 : index
    %290 = vector.load %arg42[%c1_245, %c0_246, %c0_247] : memref<4x128x256xbf16, #tpu.memory_space<vmem>>, vector<1x128x256xbf16>
    %291 = vector.shape_cast %290 : vector<1x128x256xbf16> to vector<128x256xbf16>
    %cst_248 = arith.constant dense<0.000000e+00> : vector<8x256xf32>
    %292 = tpu.matmul %289, %291, %cst_248 {dimension_numbers = #tpu.dot_dimension_numbers<[1], [0], [0], [1], [0, 0, 1, 1], [], []>} : vector<8x128xbf16>, vector<128x256xbf16>, vector<8x256xf32> -> vector<8x256xf32>
    %293 = arith.addf %285, %292 : vector<8x256xf32>
    %c2_249 = arith.constant 2 : index
    %c0_250 = arith.constant 0 : index
    %c0_251 = arith.constant 0 : index
    %294 = vector.load %arg40[%c2_249, %c0_250, %c0_251] : memref<4x8x64xbf16, #tpu.memory_space<vmem>>, vector<1x8x64xbf16>
    %295 = vector.shape_cast %294 : vector<1x8x64xbf16> to vector<8x64xbf16>
    %cst_252 = arith.constant dense<0.000000e+00> : vector<8x128xf32>
    %296 = tpu.matmul %295, %278, %cst_252 {dimension_numbers = #tpu.dot_dimension_numbers<[1], [0], [0], [1], [0, 0, 1, 1], [], []>} : vector<8x64xbf16>, vector<64x128xbf16>, vector<8x128xf32> -> vector<8x128xf32>
    %297 = arith.truncf %296 : vector<8x128xf32> to vector<8x128xbf16>
    %c2_253 = arith.constant 2 : index
    %c0_254 = arith.constant 0 : index
    %c0_255 = arith.constant 0 : index
    %298 = vector.load %arg42[%c2_253, %c0_254, %c0_255] : memref<4x128x256xbf16, #tpu.memory_space<vmem>>, vector<1x128x256xbf16>
    %299 = vector.shape_cast %298 : vector<1x128x256xbf16> to vector<128x256xbf16>
    %cst_256 = arith.constant dense<0.000000e+00> : vector<8x256xf32>
    %300 = tpu.matmul %297, %299, %cst_256 {dimension_numbers = #tpu.dot_dimension_numbers<[1], [0], [0], [1], [0, 0, 1, 1], [], []>} : vector<8x128xbf16>, vector<128x256xbf16>, vector<8x256xf32> -> vector<8x256xf32>
    %301 = arith.addf %293, %300 : vector<8x256xf32>
    %c3_257 = arith.constant 3 : index
    %c0_258 = arith.constant 0 : index
    %c0_259 = arith.constant 0 : index
    %302 = vector.load %arg40[%c3_257, %c0_258, %c0_259] : memref<4x8x64xbf16, #tpu.memory_space<vmem>>, vector<1x8x64xbf16>
    %303 = vector.shape_cast %302 : vector<1x8x64xbf16> to vector<8x64xbf16>
    %cst_260 = arith.constant dense<0.000000e+00> : vector<8x128xf32>
    %304 = tpu.matmul %303, %278, %cst_260 {dimension_numbers = #tpu.dot_dimension_numbers<[1], [0], [0], [1], [0, 0, 1, 1], [], []>} : vector<8x64xbf16>, vector<64x128xbf16>, vector<8x128xf32> -> vector<8x128xf32>
    %305 = arith.truncf %304 : vector<8x128xf32> to vector<8x128xbf16>
    %c3_261 = arith.constant 3 : index
    %c0_262 = arith.constant 0 : index
    %c0_263 = arith.constant 0 : index
    %306 = vector.load %arg42[%c3_261, %c0_262, %c0_263] : memref<4x128x256xbf16, #tpu.memory_space<vmem>>, vector<1x128x256xbf16>
    %307 = vector.shape_cast %306 : vector<1x128x256xbf16> to vector<128x256xbf16>
    %cst_264 = arith.constant dense<0.000000e+00> : vector<8x256xf32>
    %308 = tpu.matmul %305, %307, %cst_264 {dimension_numbers = #tpu.dot_dimension_numbers<[1], [0], [0], [1], [0, 0, 1, 1], [], []>} : vector<8x128xbf16>, vector<128x256xbf16>, vector<8x256xf32> -> vector<8x256xf32>
    %309 = arith.addf %301, %308 : vector<8x256xf32>
    %c0_265 = arith.constant 0 : index
    %c0_266 = arith.constant 0 : index
    %310 = vector.load %arg41[%c0_265, %c0_266] : memref<8x1xf32, #tpu.memory_space<vmem>>, vector<8x1xf32>
    %311 = vector.broadcast %310 : vector<8x1xf32> to vector<8x256xf32>
    %312 = arith.addf %309, %311 : vector<8x256xf32>
    %c0_267 = arith.constant 0 : index
    %c0_268 = arith.constant 0 : index
    %313 = vector.load %arg43[%c0_267, %c0_268] : memref<16x8xbf16, #tpu.memory_space<vmem>>, vector<16x8xbf16>
    %314 = arith.truncf %312 : vector<8x256xf32> to vector<8x256xbf16>
    %cst_269 = arith.constant dense<0.000000e+00> : vector<16x256xf32>
    %315 = tpu.matmul %313, %314, %cst_269 {dimension_numbers = #tpu.dot_dimension_numbers<[1], [0], [0], [1], [0, 0, 1, 1], [], []>} : vector<16x8xbf16>, vector<8x256xbf16>, vector<16x256xf32> -> vector<16x256xf32>
    %c0_270 = arith.constant 0 : index
    %c0_271 = arith.constant 0 : index
    %316 = vector.load %arg44[%c0_270, %c0_271] : memref<16x1xf32, #tpu.memory_space<vmem>>, vector<16x1xf32>
    %317 = vector.broadcast %316 : vector<16x1xf32> to vector<16x256xf32>
    %318 = arith.addf %315, %317 : vector<16x256xf32>
    %cst_272 = arith.constant dense<0xFF800000> : vector<256xf32>
    %319 = vector.multi_reduction <maximumf>, %318, %cst_272 [0] : vector<16x256xf32> to vector<256xf32>
    %320 = vector.shape_cast %319 : vector<256xf32> to vector<1x256xf32>
    %321 = vector.broadcast %320 : vector<1x256xf32> to vector<16x256xf32>
    %322 = arith.subf %318, %321 : vector<16x256xf32>
    %323 = math.exp %322 : vector<16x256xf32>
    %cst_273 = arith.constant dense<0.000000e+00> : vector<256xf32>
    %324 = vector.multi_reduction <add>, %323, %cst_273 [0] : vector<16x256xf32> to vector<256xf32>
    %325 = vector.shape_cast %324 : vector<256xf32> to vector<1x256xf32>
    %326 = math.log %325 : vector<1x256xf32>
    %327 = vector.broadcast %326 : vector<1x256xf32> to vector<16x256xf32>
    %328 = arith.subf %322, %327 : vector<16x256xf32>
    %329 = vector.extract_strided_slice %328 {offsets = [0, 0], sizes = [16, 128], strides = [1, 1]} : vector<16x256xf32> to vector<16x128xf32>
    %c0_274 = arith.constant 0 : index
    %c0_275 = arith.constant 0 : index
    %c0_276 = arith.constant 0 : index
    %330 = vector.load %arg45[%c0_274, %c0_275, %c0_276] : memref<2x16x128xf32, #tpu.memory_space<vmem>>, vector<1x16x128xf32>
    %331 = vector.shape_cast %330 : vector<1x16x128xf32> to vector<16x128xf32>
    %332 = vector.shape_cast %329 : vector<16x128xf32> to vector<1x16x128xf32>
    tpu.vector_store %arg45[%c0_274, %c0_275, %c0_276], %332 {strides = array<i32>} : memref<2x16x128xf32, #tpu.memory_space<vmem>>, vector<1x16x128xf32>,
    %333 = vector.extract_strided_slice %328 {offsets = [0, 128], sizes = [16, 128], strides = [1, 1]} : vector<16x256xf32> to vector<16x128xf32>
    %c1_277 = arith.constant 1 : index
    %c0_278 = arith.constant 0 : index
    %c0_279 = arith.constant 0 : index
    %334 = vector.load %arg45[%c1_277, %c0_278, %c0_279] : memref<2x16x128xf32, #tpu.memory_space<vmem>>, vector<1x16x128xf32>
    %335 = vector.shape_cast %334 : vector<1x16x128xf32> to vector<16x128xf32>
    %336 = vector.shape_cast %333 : vector<16x128xf32> to vector<1x16x128xf32>
    tpu.vector_store %arg45[%c1_277, %c0_278, %c0_279], %336 {strides = array<i32>} : memref<2x16x128xf32, #tpu.memory_space<vmem>>, vector<1x16x128xf32>,
    return
  }
}

</mosaic_0001>

<bundles_post_ra>
// kernel: forward.1
= control target key start
LH: loop header
LB: loop body
LE: loop exit
PB: predicated region body
PF: predicated region fallthrough
CT: control target
= control target key end

     0   :  { %s5072_s6 = smov 1   ;;  %s5073_s10 = smov 2   ;;  %s5811_s0 = inlined_call_operand.smem [shape: u32[46], index: -1, kind: input, shape index: {}] }
   0x1   :  { %s5133_s5 = sld [smem:[%s5811_s0]]   ;;  %s5074_s14 = smov 3  }
   0x2   :  { %s5138_s9 = sld [smem:[%s5811_s0 + %s5072_s6]]   ;;  %s5075_s18 = smov 4  }
   0x3   :  { %s5143_s13 = sld [smem:[%s5811_s0 + %s5073_s10]]   ;;  %s5076_s22 = smov 5  }
   0x4   :  { %s5148_s17 = sld [smem:[%s5811_s0 + %s5074_s14]]   ;;  %s5077_s26 = smov 6  }
   0x5   :  { %s5153_s21 = sld [smem:[%s5811_s0 + %s5075_s18]]   ;;  %s5078_s30 = smov 7  }
   0x6   :  { %s5158_s25 = sld [smem:[%s5811_s0 + %s5076_s22]]   ;;  %s5079_s4 = smov 8  }
   0x7   :  { %s5163_s29 = sld [smem:[%s5811_s0 + %s5077_s26]]   ;;  %s5080_s10 = smov 9  }
   0x8   :  { %s5168_s3 = sld [smem:[%s5811_s0 + %s5078_s30]]   ;;  %s5081_s15 = smov 10  }
   0x9   :  { %s5173_s8 = sld [smem:[%s5811_s0 + %s5079_s4]]   ;;  %s5082_s20 = smov 11  }
   0xa   :  { %5839 = sst [smem:[#allocation11_spill]] %s5148_s17  ;;  %s5083_s26 = smov 12  }
   0xb   :  { %s5178_s14 = sld [smem:[%s5811_s0 + %s5080_s10]]   ;;  %s5084_s1 = smov 13  }
   0xc   :  { %5840 = sst [smem:[#allocation12_spill]] %s5158_s25  ;;  %s5085_s7 = smov 14  }
   0xd   :  { %s5183_s19 = sld [smem:[%s5811_s0 + %s5081_s15]]   ;;  %s5086_s15 = smov 15  }
   0xe   :  { %5841 = sst [smem:[#allocation13_spill]] %s5168_s3  ;;  %s5087_s22 = smov 16  }
   0xf   :  { %s5188_s24 = sld [smem:[%s5811_s0 + %s5082_s20]]   ;;  %s5088_s28 = smov 17  }
  0x10   :  { %s5193_s30 = sld [smem:[%s5811_s0 + %s5083_s26]]  }
  0x11   :  { %s5198_s6 = sld [smem:[%s5811_s0 + %s5084_s1]]  }
  0x12   :  { %s5203_s12 = sld [smem:[%s5811_s0 + %s5085_s7]]   ;;  %s5089_s7 = smov 18  }
  0x13   :  { %5842 = sst [smem:[#allocation14_spill]] %s5183_s19 }
  0x14   :  { %s5208_s20 = sld [smem:[%s5811_s0 + %s5086_s15]]   ;;  %s5090_s15 = smov 19  }
  0x15   :  { %s5213_s27 = sld [smem:[%s5811_s0 + %s5087_s22]]   ;;  %s5091_s22 = smov 20  }
  0x16   :  { %5843 = sst [smem:[#allocation15_spill]] %s5193_s30 }
  0x17   :  { %s5218_s4 = sld [smem:[%s5811_s0 + %s5088_s28]]   ;;  %s5092_s28 = smov 21  }
  0x18   :  { %5844 = sst [smem:[#allocation16_spill]] %s5203_s12 }
  0x19   :  { %s5223_s30 = sld [smem:[%s5811_s0 + %s5089_s7]]   ;;  %s5093_s7 = smov 22  }
  0x1a   :  { %s5228_s19 = sld [smem:[%s5811_s0 + %s5090_s15]]   ;;  %s5094_s15 = smov 23  }
  0x1b   :  { %s5233_s12 = sld [smem:[%s5811_s0 + %s5091_s22]]   ;;  %s5095_s22 = smov 24  }
  0x1c   :  { %s5243_s3 = sld [smem:[%s5811_s0 + %s5093_s7]]   ;;  %s5097_s7 = smov 26  }
  0x1d   :  { %5845 = sst [smem:[#allocation17_spill]] %s5218_s4 }
  0x1e   :  { %s5238_s4 = sld [smem:[%s5811_s0 + %s5092_s28]]   ;;  %s5096_s28 = smov 25  }
  0x1f   :  { %s5253_s25 = sld [smem:[%s5811_s0 + %s5095_s22]]   ;;  %s5099_s22 = smov 28  }
  0x20   :  { %5846 = sst [smem:[#allocation18_spill]] %s5228_s19 }
  0x21   :  { %5847 = sst [smem:[#allocation19_spill]] %s5233_s12 }
  0x22   :  { %s5248_s19 = sld [smem:[%s5811_s0 + %s5094_s15]]   ;;  %s5098_s15 = smov 27  }
  0x23   :  { %s5263_s17 = sld [smem:[%s5811_s0 + %s5097_s7]]   ;;  %s5101_s7 = smov 30  }
  0x24   :  { %5848 = sst [smem:[#allocation20_spill]] %s5238_s4 }
  0x25   :  { %5850 = sst [smem:[#allocation22_spill]] %s5253_s25 }
  0x26   :  { %s5258_s4 = sld [smem:[%s5811_s0 + %s5096_s28]]   ;;  %s5100_s28 = smov 29  }
  0x27   :  { %s5273_s25 = sld [smem:[%s5811_s0 + %s5099_s22]]   ;;  %s5103_s22 = smov 32  }
  0x28   :  { %5849 = sst [smem:[#allocation21_spill]] %s5248_s19 }
  0x29   :  { %5852 = sst [smem:[#allocation24_spill]] %s5263_s17 }
  0x2a   :  { %s5268_s19 = sld [smem:[%s5811_s0 + %s5098_s15]]   ;;  %s5102_s15 = smov 31  }
  0x2b   :  { %s5283_s17 = sld [smem:[%s5811_s0 + %s5101_s7]]   ;;  %s5105_s7 = smov 34  }
  0x2c   :  { %5851 = sst [smem:[#allocation23_spill]] %s5258_s4 }
  0x2d   :  { %5854 = sst [smem:[#allocation26_spill]] %s5273_s25 }
  0x2e   :  { %s5278_s4 = sld [smem:[%s5811_s0 + %s5100_s28]]   ;;  %s5104_s28 = smov 33  }
  0x2f   :  { %s5293_s25 = sld [smem:[%s5811_s0 + %s5103_s22]]   ;;  %s5107_s22 = smov 36  }
  0x30   :  { %5853 = sst [smem:[#allocation25_spill]] %s5268_s19 }
  0x31   :  { %5856 = sst [smem:[#allocation28_spill]] %s5283_s17 }
  0x32   :  { %s5288_s19 = sld [smem:[%s5811_s0 + %s5102_s15]]   ;;  %s5106_s15 = smov 35  }
  0x33   :  { %s5303_s17 = sld [smem:[%s5811_s0 + %s5105_s7]]   ;;  %s5109_s7 = smov 38  }
  0x34   :  { %5855 = sst [smem:[#allocation27_spill]] %s5278_s4 }
  0x35   :  { %5858 = sst [smem:[#allocation30_spill]] %s5293_s25 }
  0x36   :  { %s5298_s4 = sld [smem:[%s5811_s0 + %s5104_s28]]   ;;  %s5108_s28 = smov 37  }
  0x37   :  { %s5313_s25 = sld [smem:[%s5811_s0 + %s5107_s22]]   ;;  %s5111_s22 = smov 40  }
  0x38   :  { %5857 = sst [smem:[#allocation29_spill]] %s5288_s19 }
  0x39   :  { %5860 = sst [smem:[#allocation32_spill]] %s5303_s17 }
  0x3a   :  { %s5308_s19 = sld [smem:[%s5811_s0 + %s5106_s15]]   ;;  %s5110_s15 = smov 39  }
  0x3b   :  { %s5323_s17 = sld [smem:[%s5811_s0 + %s5109_s7]]   ;;  %s5113_s7 = smov 42  }
  0x3c   :  { %5859 = sst [smem:[#allocation31_spill]] %s5298_s4 }
  0x3d   :  { %5861 = sst [smem:[#allocation33_spill]] %s5313_s25 }
  0x3e   :  { %s5318_s4 = sld [smem:[%s5811_s0 + %s5108_s28]]   ;;  %s5112_s28 = smov 41  }
  0x3f   :  { %s5328_s12 = sld [smem:[%s5811_s0 + %s5110_s15]]   ;;  %s5114_s15 = smov 43  }
  0x40   :  { %s5333_s25 = sld [smem:[%s5811_s0 + %s5111_s22]]   ;;  %s5115_s22 = smov 44  }
  0x41   :  { %5863 = sst [smem:[#allocation35_spill]] %s5323_s17 }
  0x42   :  { %s5343_s17 = sld [smem:[%s5811_s0 + %s5113_s7]]  }
  0x44   :  { %5862 = sst [smem:[#allocation34_spill]] %s5318_s4 }
  0x45   :  { %5864 = sst [smem:[#allocation36_spill]] %s5328_s12 }
  0x46   :  { %5865 = sst [smem:[#allocation37_spill]] %s5333_s25 }
  0x47   :  { %s5338_s4 = sld [smem:[%s5811_s0 + %s5112_s28]]   ;;  %s5116_s28 = smov 45  }
  0x48   :  { %s5348_s12 = sld [smem:[%s5811_s0 + %s5114_s15]]  }
  0x49   :  { %s5353_s25 = sld [smem:[%s5811_s0 + %s5115_s22]]  }
  0x4d   :  { %5866 = sst [smem:[#allocation38_spill]] %s5338_s4 }
  0x4e   :  { %s5358_s4 = sld [smem:[%s5811_s0 + %s5116_s28]]  }
  0x4f   :  { %96 = vsyncpa [#allocation3], 0 }
  0x50   :  { %97 = vsyncpa [#allocation6], 0 }
  0x51   :  { %98 = vsyncpa [#allocation4], 0  ;;  %s173_s7 = sshll.u32 %s5308_s19, 4  ;;  %s5117_s10 = smov [#allocation2]   ;;  %s174_s7 = int_to_ptr.hbm [resolvable:$true] %s173_s7 }
  0x52   :  { %s175_s11 = sshll.u32 %s5117_s10, 4  ;;  %s198_s15 = sshll.u32 %s5343_s17, 4  ;;  %s176_s11 = int_to_ptr.vmem [resolvable:$true] %s175_s11  ;;  %s199_s15 = int_to_ptr.hbm [resolvable:$true] %s198_s15 }
  0x53   :  { %s4994_s16 = sshra.s32 %s174_s7, 4  ;;  %s4998_s22 = scalar_lea.hbm %s5308_s19, 128  ;;  %s4995_s16 = int_to_ptr.hbm [resolvable:$true] %s4994_s16 }
  0x54   :  { %s4996_s18 = scalar_lea.hbm %s4995_s16, 128  ;;  %p4999_p1 = scmp.lt.s32.totalorder %s4995_s16, %s5308_s19 }
  0x55   :  { %p4997_p0 = scmp.ne.s32.totalorder %s4995_s16, %s4996_s18  ;;  %p5000_p2 = scmp.lt.s32.totalorder %s4998_s22, %s4996_s18 }
  0x57   :  { %p5001_p3 = por %p5000_p2, %p4999_p1 }
  0x59   :  { %p5002_p4 = pnand %p5001_p3, %p4997_p0 }
  0x5b   :  { %5005 = shalt.err (!%p5002_p4)
}
  0x5c   :  { %s5118_s0 = smov 64   ;;  %s5119_s23 = smov 4  }
  0x5d   :  { %181 = dma.hbm_to_vmem [thread:$0]  %s174_s7, 2048, %s176_s11, [#allocation3], %s5118_s0, %s5118_s0, %s5119_s23  }
  0x5e   :  { %s5120_s26 = smov [#allocation5]   ;;  %s5018_s1 = sshra.s32 %s199_s15, 4  ;;  %s5019_s1 = int_to_ptr.hbm [resolvable:$true] %s5018_s1 }
  0x5f   :  { %s200_s28 = sshll.u32 %s5120_s26, 4  ;;  %s5020_s2 = scalar_lea.hbm %s5019_s1, 512  ;;  %s201_s28 = int_to_ptr.vmem [resolvable:$true] %s200_s28 }
  0x60   :  { %p5021_p5 = scmp.ne.s32.totalorder %s5019_s1, %s5020_s2  ;;  %s5022_s10 = scalar_lea.hbm %s5343_s17, 512 }
  0x61   :  { %p5023_p6 = scmp.lt.s32.totalorder %s5019_s1, %s5343_s17  ;;  %p5024_p7 = scmp.lt.s32.totalorder %s5022_s10, %s5020_s2 }
  0x63   :  { %p5025_p8 = por %p5024_p7, %p5023_p6 }
  0x65   :  { %p5026_p9 = pnand %p5025_p8, %p5021_p5 }
  0x67   :  { %5029 = shalt.err (!%p5026_p9)
}
  0x68   :  { %s5121_s19 = smov 128   ;;  %s5122_s16 = smov 8  }
  0x69   :  { %206 = dma.hbm_to_vmem [thread:$0]  %s199_s15, 8192, %s201_s28, [#allocation6], %s5121_s19, %s5121_s19, %s5122_s16  }
  0x6a   :  { %5066 = dma.done.wait [#allocation3], 2048  }
  0x6b   :  { %5067 = vsyncadd [#allocation3], 4294965248 }
  0x6c   :  { %5068 = dma.done.wait [#allocation6], 8192  }
  0x6d   :  { %5069 = vsyncadd [#allocation6], 4294959104  ;;  %v5123_v0 = vmov 0   ;;  %v262_v1 = vld [vmem:[%s5143_s13 + $0x10] sm:$0xff]  ;;  %v229_v2 = vld [vmem:[%s5138_s9 + $0x20] sm:$0xff]  ;;  %vm361_vm0 = vcmask 1043456  }
  0x6e   :  { %4981 = vset.pattern.permute.xlu2 %v5123_v0  ;;  %4980 = vset.pattern.permute.xlu1 %v5123_v0  ;;  %v227_v3 = vld [vmem:[%s5138_s9 + $0x10] sm:$0xff]  ;;  %v263_v4 = vld [vmem:[%s5143_s13 + $0x18] sm:$0xff]  ;;  %v264_v5 = vld [vmem:[%s5143_s13 + $0x20] sm:$0xff]  ;;  %vm351_vm1 = vcmask 326656   ;;  %s5870_s17 = sld [smem:[#allocation23_spill]]  ;;  %vm416_vm2 = vcmask 654336  }
  0x6f   :  { %4979 = vset.pattern.permute.xlu0 %v5123_v0  ;;  %277 = vperm.xlu2 %4981, %v262_v1   ;;  %v228_v6 = vld [vmem:[%s5138_s9 + $0x18] sm:$0xff]  ;;  %v260_v7 = vld [vmem:[%s5143_s13] sm:$0xff]  ;;  %v226_v9 = vld [vmem:[%s5138_s9 + $0x8] sm:$0xff]  ;;  %vm519_vm3 = vcmask 1040384   ;;  %vm509_vm4 = vcmask 15360   ;;  %s5882_s7 = sld [smem:[#allocation16_spill]] }
  0x70   :  { %252 = vperm.xlu0 %4979, %v229_v2   ;;  %242 = vperm.xlu1 %4980, %v227_v3   ;;  %v225_v8 = vld [vmem:[%s5138_s9] sm:$0xff]  ;;  %v310_v10 = vld [vmem:[%s5153_s21 + $0x10] sm:$0xff]  ;;  %v261_v11 = vld [vmem:[%s5143_s13 + $0x8] sm:$0xff]  ;;  %s5867_s9 = sld [smem:[#allocation19_spill]]  ;;  %vm1089_vm5 = vcmask 64512   ;;  %vm1676_vm6 = vcmask 130048  }
  0x71   :  { %v312_v12 = vld [vmem:[%s5153_s21 + $0x20] sm:$0xff]  ;;  %v309_v13 = vld [vmem:[%s5153_s21 + $0x8] sm:$0xff]  ;;  %v311_v14 = vld [vmem:[%s5153_s21 + $0x18] sm:$0xff]  ;;  %s5868_s13 = sld [smem:[#allocation11_spill]]  ;;  %vm2257_vm7 = vcmask 261120   ;;  %vm2671_vm8 = vcmask 523264  }
  0x72   :  { %v308_v15 = vld [vmem:[%s5153_s21] sm:$0xff]  ;;  %v810_v19 = vld [vmem:[%s5173_s8 + $0x10] sm:$0xff]  ;;  %v776_v21 = vld [vmem:[%s5163_s29 + $0x18] sm:$0xff]  ;;  %s5871_s21 = sld [smem:[#allocation27_spill]] }
  0x73   :  { %v847_v16 = vld [vmem:[%s5178_s14 + $0x20] sm:$0xff]  ;;  %v775_v20 = vld [vmem:[%s5163_s29 + $0x10] sm:$0xff]  ;;  %v774_v22 = vld [vmem:[%s5163_s29 + $0x8] sm:$0xff]  ;;  %s5883_s11 = sld [smem:[#allocation14_spill]] }
  0x74   :  { %v777_v17 = vld [vmem:[%s5163_s29 + $0x20] sm:$0xff]  ;;  %v811_v23 = vld [vmem:[%s5173_s8 + $0x18] sm:$0xff]  ;;  %v845_v26 = vld [vmem:[%s5178_s14 + $0x10] sm:$0xff]  ;;  %s5884_s15 = sld [smem:[#allocation15_spill]] }
  0x75   :  { %v812_v18 = vld [vmem:[%s5173_s8 + $0x20] sm:$0xff]  ;;  %v846_v27 = vld [vmem:[%s5178_s14 + $0x18] sm:$0xff]  ;;  %v844_v28 = vld [vmem:[%s5178_s14 + $0x8] sm:$0xff]  ;;  %s5885_s18 = sld [smem:[#allocation20_spill]] }
  0x76   :  { %v773_v24 = vld [vmem:[%s5163_s29] sm:$0xff]  ;;  %v809_v29 = vld [vmem:[%s5173_s8 + $0x8] sm:$0xff]  ;;  %v894_v31 = vld [vmem:[%s5188_s24 + $0x18] sm:$0xff]  ;;  %s5872_s29 = sld [smem:[#allocation25_spill]] }
  0x77   :  { %282 = vperm.xlu2 %4981, %v263_v4   ;;  %v808_v25 = vld [vmem:[%s5173_s8] sm:$0xff]  ;;  %v893_v33 = vld [vmem:[%s5188_s24 + $0x10] sm:$0xff]  ;;  %v892_v36 = vld [vmem:[%s5188_s24 + $0x8] sm:$0xff]  ;;  %s5874_s8 = sld [smem:[#allocation30_spill]] }
  0x78   :  { %287 = vperm.xlu0 %4979, %v264_v5   ;;  %247 = vperm.xlu1 %4980, %v228_v6   ;;  %v843_v30 = vld [vmem:[%s5178_s14] sm:$0xff]  ;;  %v1354_v37 = vld [vmem:[%s5198_s6 + $0x10] sm:$0xff]  ;;  %v223_v41 = vld [vmem:[%s5133_s5 + $0x18] sm:$0xff]  ;;  %s5875_s14 = sld [smem:[#allocation32_spill]] }
  0x79   :  { %v895_v32 = vld [vmem:[%s5188_s24 + $0x20] sm:$0xff]  ;;  %v222_v43 = vld [vmem:[%s5133_s5 + $0x10] sm:$0xff]  ;;  %v221_v44 = vld [vmem:[%s5133_s5 + $0x8] sm:$0xff]  ;;  %s5886_s22 = sld [smem:[#allocation17_spill]] }
  0x7a   :  { %v1356_v34 = vld [vmem:[%s5198_s6 + $0x20] sm:$0xff]  ;;  %v5416_v45 = vpack.c.bf16 %v222_v43, %v221_v44  ;;  %v1390_v46 = vld [vmem:[%s5208_s20 + $0x18] sm:$0xff]  ;;  %v1389_v48 = vld [vmem:[%s5208_s20 + $0x10] sm:$0xff]  ;;  %s5887_s0 = sld [smem:[#allocation18_spill]] }
  0x7b   :  { %v891_v35 = vld [vmem:[%s5188_s24] sm:$0xff]  ;;  %v1355_v47 = vld [vmem:[%s5198_s6 + $0x18] sm:$0xff]  ;;  %v1424_v49 = vld [vmem:[%s5213_s27 + $0x10] sm:$0xff]  ;;  %s5876_s24 = sld [smem:[#allocation33_spill]] }
  0x7c   :  { %v1391_v38 = vld [vmem:[%s5208_s20 + $0x20] sm:$0xff]  ;;  %v1353_v51 = vld [vmem:[%s5198_s6 + $0x8] sm:$0xff]  ;;  %v1425_v56 = vld [vmem:[%s5213_s27 + $0x18] sm:$0xff]  ;;  %s5888_s23 = sld [smem:[#allocation26_spill]] }
  0x7d   :  { %v1426_v39 = vld [vmem:[%s5213_s27 + $0x20] sm:$0xff]  ;;  %v1388_v55 = vld [vmem:[%s5208_s20 + $0x8] sm:$0xff]  ;;  %s5889_s26 = sld [smem:[#allocation22_spill]] }
  0x7e   :  { %v224_v40 = vld [vmem:[%s5133_s5 + $0x20] sm:$0xff]  ;;  %v1423_v6 = vld [vmem:[%s5213_s27 + $0x8] sm:$0xff]  ;;  %s5890_s28 = sld [smem:[#allocation24_spill]] }
  0x7f   :  { %267 = vperm.xlu2 %4981, %v260_v7   ;;  %v5410_v42 = vpack.c.bf16 %v224_v40, %v223_v41  ;;  %v1352_v50 = vld [vmem:[%s5198_s6] sm:$0xff]  ;;  %s5878_s6 = sld [smem:[#allocation36_spill]] }
  0x80   :  { %232 = vperm.xlu0 %4979, %v225_v8   ;;  %237 = vperm.xlu1 %4980, %v226_v9   ;;  %v1387_v57 = vld [vmem:[%s5208_s20] sm:$0xff]  ;;  %s5879_s20 = sld [smem:[#allocation38_spill]] }
  0x81   :  { %429 = vmatpush.bf16.msra.mxu1 %v5410_v42  ;;  %484 = vmatpush.bf16.msra.mxu2 %v5410_v42  ;;  %v1474_v2 = vld [vmem:[%s5223_s30 + $0x20] sm:$0xff]  ;;  %s5891_s1 = sld [smem:[#allocation29_spill]] }
  0x82   :  { %v1422_v3 = vld [vmem:[%s5213_s27] sm:$0xff]  ;;  %s5880_s27 = sld [smem:[#allocation12_spill]] }
  0x83   :  { %s5892_s2 = sld [smem:[#allocation31_spill]] }
  0x84   :  { %s5893_s10 = sld [smem:[#allocation35_spill]] }
  0x85   :  { %430 = vmatpush.bf16.msra.mxu1 %v5416_v45  ;;  %485 = vmatpush.bf16.msra.mxu2 %v5416_v45 }
  0x87   :  { %325 = vperm.xlu2 %4981, %v310_v10  }
  0x88   :  { %272 = vperm.xlu0 %4979, %v261_v11   ;;  %335 = vperm.xlu1 %4980, %v312_v12   ;;  %v5434_v12 = vld [vmem:[%s5133_s5] sm:$0xff]  ;;  %s5869_s5 = sld [smem:[#allocation21_spill]] }
  0x8f   :  { %320 = vperm.xlu2 %4981, %v309_v13  }
  0x90   :  { %330 = vperm.xlu0 %4979, %v311_v14   ;;  %315 = vperm.xlu1 %4980, %v308_v15   ;;  %v1470_v15 = vld [vmem:[%s5223_s30] sm:$0xff] }
  0x97   :  { %870 = vperm.xlu2 %4981, %v847_v16   ;;  %v1472_v16 = vld [vmem:[%s5223_s30 + $0x10] sm:$0xff] }
  0x98   :  { %800 = vperm.xlu0 %4979, %v777_v17   ;;  %835 = vperm.xlu1 %4980, %v812_v18   ;;  %v1473_v18 = vld [vmem:[%s5223_s30 + $0x18] sm:$0xff] }
  0x9f   :  { %825 = vperm.xlu2 %4981, %v810_v19  }
  0xa0   :  { %790 = vperm.xlu0 %4979, %v775_v20   ;;  %795 = vperm.xlu1 %4980, %v776_v21  }
  0xa7   :  { %785 = vperm.xlu2 %4981, %v774_v22  }
  0xa8   :  { %830 = vperm.xlu0 %4979, %v811_v23   ;;  %780 = vperm.xlu1 %4980, %v773_v24  }
  0xaf   :  { %815 = vperm.xlu2 %4981, %v808_v25  }
  0xb0   :  { %860 = vperm.xlu0 %4979, %v845_v26   ;;  %865 = vperm.xlu1 %4980, %v846_v27   ;;  %v1986_v26 = vld [vmem:[%s5243_s3 + $0x20] sm:$0xff]  ;;  %v1471_v27 = vld [vmem:[%s5223_s30 + $0x8] sm:$0xff]  ;;  %s5877_s30 = sld [smem:[#allocation34_spill]] }
  0xb7   :  { %855 = vperm.xlu2 %4981, %v844_v28   ;;  %v1951_v28 = vld [vmem:[%s5867_s9 + $0x20] sm:$0xff] }
  0xb8   :  { %820 = vperm.xlu0 %4979, %v809_v29   ;;  %850 = vperm.xlu1 %4980, %v843_v30   ;;  %v4781_v30 = vld [vmem:[%s5868_s13] sm:$0xff] }
  0xbf   :  { %913 = vperm.xlu2 %4981, %v894_v31   ;;  %v1950_v31 = vld [vmem:[%s5867_s9 + $0x18] sm:$0xff] }
  0xc0   :  { %918 = vperm.xlu0 %4979, %v895_v32   ;;  %908 = vperm.xlu1 %4980, %v893_v33   ;;  %v2021_v32 = vld [vmem:[%s5869_s5 + $0x20] sm:$0xff]  ;;  %v1949_v33 = vld [vmem:[%s5867_s9 + $0x10] sm:$0xff] }
  0xc7   :  { %1379 = vperm.xlu2 %4981, %v1356_v34   ;;  %v1947_v34 = vld [vmem:[%s5867_s9] sm:$0xff] }
  0xc8   :  { %898 = vperm.xlu0 %4979, %v891_v35   ;;  %903 = vperm.xlu1 %4980, %v892_v36   ;;  %v1984_v35 = vld [vmem:[%s5243_s3 + $0x10] sm:$0xff]  ;;  %v1985_v36 = vld [vmem:[%s5243_s3 + $0x18] sm:$0xff] }
  0xc9   :  { %v278_v53 = vpop.permute.xlu2 %277 }
  0xcf   :  { %1369 = vperm.xlu2 %4981, %v1354_v37   ;;  %v4782_v37 = vld [vmem:[%s5868_s13 + $0x8] sm:$0xff] }
  0xd0   :  { %1414 = vperm.xlu0 %4979, %v1391_v38   ;;  %1449 = vperm.xlu1 %4980, %v1426_v39   ;;  %v2020_v38 = vld [vmem:[%s5869_s5 + $0x18] sm:$0xff]  ;;  %v1948_v39 = vld [vmem:[%s5867_s9 + $0x8] sm:$0xff]  ;;  %s5894_s9 = sld [smem:[#allocation37_spill]] }
  0xd1   :  { %v283_v0 = vpop.permute.xlu2 %282 }
  0xd7   :  { %1409 = vperm.xlu2 %4981, %v1390_v46   ;;  %v1982_v46 = vld [vmem:[%s5243_s3] sm:$0xff] }
  0xd8   :  { %1374 = vperm.xlu0 %4979, %v1355_v47   ;;  %1404 = vperm.xlu1 %4980, %v1389_v48   ;;  %v1983_v47 = vld [vmem:[%s5243_s3 + $0x8] sm:$0xff]  ;;  %s5873_s3 = sld [smem:[#allocation28_spill]] }
  0xd9   :  { %v268_v19 = vpop.permute.xlu2 %267 }
  0xdf   :  { %1439 = vperm.xlu2 %4981, %v1424_v49   ;;  %v2067_v49 = vld [vmem:[%s5870_s17 + $0x10] sm:$0xff] }
  0xe0   :  { %1359 = vperm.xlu0 %4979, %v1352_v50   ;;  %1364 = vperm.xlu1 %4980, %v1353_v51   ;;  %v2018_v50 = vld [vmem:[%s5869_s5 + $0x8] sm:$0xff]  ;;  %v2069_v51 = vld [vmem:[%s5870_s17 + $0x20] sm:$0xff] }
  0xe2   :  { %v253_v52 = vpop.permute.xlu0 %252  ;;  %v243_v54 = vpop.permute.xlu1 %242 }
  0xe3   :  { %v259_v58 = vmul.f32 %v253_v52, %v224_v40  ;;  %v257_v59 = vmul.f32 %v243_v54, %v222_v43  ;;  %v2019_v40 = vld [vmem:[%s5869_s5 + $0x10] sm:$0xff]  ;;  %v2066_v52 = vld [vmem:[%s5870_s17 + $0x8] sm:$0xff]  ;;  %v2065_v54 = vld [vmem:[%s5870_s17] sm:$0xff] }
  0xe5   :  { %v292_v4 = vadd.f32 %v278_v53, %v257_v59  ;;  %v2068_v53 = vld [vmem:[%s5870_s17 + $0x18] sm:$0xff] }
  0xe6   :  { %v2527_v59 = vld [vmem:[%s5871_s21 + $0x18] sm:$0xff] }
  0xe7   :  { %1399 = vperm.xlu2 %4981, %v1388_v55   ;;  %v297_v10 = vmax.f32 %v292_v4, 0.0  ;;  %v2526_v55 = vld [vmem:[%s5871_s21 + $0x10] sm:$0xff] }
  0xe8   :  { %1444 = vperm.xlu0 %4979, %v1425_v56   ;;  %1394 = vperm.xlu1 %4980, %v1387_v57   ;;  %v2498_v56 = vld [vmem:[%s5872_s29 + $0x10] sm:$0xff]  ;;  %v2499_v57 = vld [vmem:[%s5872_s29 + $0x18] sm:$0xff] }
  0xe9   :  { %v2592_v4 = vld [vmem:[%s5874_s8 + $0x10] sm:$0xff] }
  0xea   :  { %v288_v60 = vpop.permute.xlu0 %287  ;;  %v248_v62 = vpop.permute.xlu1 %247 }
  0xeb   :  { %v294_v61 = vadd.f32 %v288_v60, %v259_v58  ;;  %v258_v63 = vmul.f32 %v248_v62, %v223_v41  ;;  %v304_v41 = vld [vmem:[%s5868_s13 + $0x10] sm:$0xf]  ;;  %v2497_v58 = vld [vmem:[%s5872_s29 + $0x8] sm:$0xff]  ;;  %v2496_v60 = vld [vmem:[%s5872_s29] sm:$0xff]  ;;  %s5058_s29 = scalar_lea.hbm %s5358_s4, 32 }
  0xec   :  { %v347_v43 = vunpack.c.l.b16 %v304_v41  ;;  %v2554_v62 = vld [vmem:[%s5873_s3 + $0x10] sm:$0xff] }
  0xed   :  { %v299_v1 = vmax.f32 %v294_v61, 0.0  ;;  %v293_v5 = vadd.f32 %v283_v0, %v258_v63  ;;  %v2524_v61 = vld [vmem:[%s5871_s21] sm:$0xff]  ;;  %v2555_v63 = vld [vmem:[%s5873_s3 + $0x18] sm:$0xff]  ;;  %v2553_v0 = vld [vmem:[%s5873_s3 + $0x8] sm:$0xff] }
  0xee   :  { %v350_v48 = vpack.c.b16 %v347_v43, %v347_v43 }
  0xef   :  { %v307_v7 = vpack.c.bf16 %v299_v1, %v299_v1  ;;  %v298_v8 = vmax.f32 %v293_v5, 0.0  ;;  %1497 = vperm.xlu2 %4981, %v1474_v2   ;;  %v2525_v1 = vld [vmem:[%s5871_s21 + $0x8] sm:$0xff]  ;;  %v2552_v2 = vld [vmem:[%s5873_s3] sm:$0xff]  ;;  %v2593_v5 = vld [vmem:[%s5874_s8 + $0x18] sm:$0xff] }
  0xf0   :  { %1429 = vperm.xlu0 %4979, %v1422_v3   ;;  %1434 = vperm.xlu1 %4980, %v1423_v6   ;;  %v2590_v3 = vld [vmem:[%s5874_s8] sm:$0xff]  ;;  %v3067_v6 = vld [vmem:[%s5875_s14 + $0x18] sm:$0xff] }
  0xf1   :  { %v363_v9 = vsel %vm361_vm0, %v307_v7, 0  ;;  %v306_v13 = vpack.c.bf16 %v298_v8, %v297_v10  ;;  %v2591_v7 = vld [vmem:[%s5874_s8 + $0x8] sm:$0xff]  ;;  %v3066_v8 = vld [vmem:[%s5875_s14 + $0x10] sm:$0xff] }
  0xf2   :  { %v233_v11 = vpop.permute.xlu0 %232  ;;  %370 = vmatpush.bf16.msra.mxu0 %v363_v9  ;;  %v238_v17 = vpop.permute.xlu1 %237  ;;  %v3064_v9 = vld [vmem:[%s5875_s14] sm:$0xff]  ;;  %v3094_v10 = vld [vmem:[%s5876_s24 + $0x10] sm:$0xff] }
  0xf3   :  { %v255_v14 = vmul.f32 %v233_v11, %v5434_v12  ;;  %v256_v20 = vmul.f32 %v238_v17, %v221_v44  ;;  %v2017_v44 = vld [vmem:[%s5869_s5] sm:$0xff]  ;;  %v3095_v11 = vld [vmem:[%s5876_s24 + $0x18] sm:$0xff]  ;;  %s3920_s5 = sshll.u32 %s5358_s4, 4  ;;  %s3921_s5 = int_to_ptr.hbm [resolvable:$true] %s3920_s5 }
  0xf4   :  { %v3092_v17 = vld [vmem:[%s5876_s24] sm:$0xff]  ;;  %s5054_s17 = sshra.s32 %s3921_s5, 4  ;;  %s5055_s17 = int_to_ptr.hbm [resolvable:$true] %s5054_s17 }
  0xf5   :  { %v290_v21 = vadd.f32 %v268_v19, %v255_v14  ;;  %v3065_v14 = vld [vmem:[%s5875_s14 + $0x8] sm:$0xff]  ;;  %v3161_v19 = vld [vmem:[%s5878_s6 + $0x18] sm:$0xff]  ;;  %s5056_s21 = scalar_lea.hbm %s5055_s17, 32  ;;  %p5059_p11 = scmp.lt.s32.totalorder %s5055_s17, %s5358_s4 }
  0xf6   :  { %371 = vmatpush.bf16.msra.mxu0 %v306_v13  ;;  %v3123_v13 = vld [vmem:[%s5877_s30 + $0x18] sm:$0xff]  ;;  %p5057_p10 = scmp.ne.s32.totalorder %s5055_s17, %s5056_s21  ;;  %p5060_p12 = scmp.lt.s32.totalorder %s5058_s29, %s5056_s21 }
  0xf7   :  { %1477 = vperm.xlu2 %4981, %v1470_v15   ;;  %v295_v24 = vmax.f32 %v290_v21, 0.0  ;;  %v3122_v15 = vld [vmem:[%s5877_s30 + $0x10] sm:$0xff] }
  0xf8   :  { %1487 = vperm.xlu0 %4979, %v1472_v16   ;;  %1492 = vperm.xlu1 %4980, %v1473_v18   ;;  %v3120_v16 = vld [vmem:[%s5877_s30] sm:$0xff]  ;;  %v3093_v18 = vld [vmem:[%s5876_s24 + $0x8] sm:$0xff]  ;;  %v3160_v21 = vld [vmem:[%s5878_s6 + $0x10] sm:$0xff]  ;;  %p5061_p13 = por %p5060_p12, %p5059_p11 }
  0xfa   :  { %v273_v22 = vpop.permute.xlu0 %272  ;;  %p5062_p0 = pnand %p5061_p13, %p5057_p10 }
  0xfb   :  { %v291_v23 = vadd.f32 %v273_v22, %v256_v20  ;;  %v3121_v20 = vld [vmem:[%s5877_s30 + $0x8] sm:$0xff] }
  0xfd   :  { %v296_v25 = vmax.f32 %v291_v23, 0.0  ;;  %v3795_v23 = vld [vmem:[%s5879_s20] sm:$0xff] }
  0xff   :  { %v305_v29 = vpack.c.bf16 %v296_v25, %v295_v24  ;;  %2009 = vperm.xlu2 %4981, %v1986_v26   ;;  %v3158_v24 = vld [vmem:[%s5878_s6] sm:$0xff]  ;;  %v3159_v25 = vld [vmem:[%s5878_s6 + $0x8] sm:$0xff] }
 0x100   :  { %1482 = vperm.xlu0 %4979, %v1471_v27   ;;  %1974 = vperm.xlu1 %4980, %v1951_v28   ;;  %v3807_v27 = vld [vmem:[%s5353_s25] sm:$0xff]  ;;  %v3808_v28 = vld [vmem:[%s5353_s25 + $0x8] sm:$0xff]  ;;  %s5881_s25 = sld [smem:[#allocation13_spill]] }
 0x101   :  { %372 = vmatpush.bf16.msra.mxu0 %v305_v29 }
 0x104   :  { %3987 = vmatmul.msk.bf16.vlgmr.msra.gmra.mxu0 %vm351_vm1, %v4781_v30 }
 0x105   :  { %612 = vmatpush.bf16.msrb.mxu0 %v5410_v42 }
 0x107   :  { %1969 = vperm.xlu2 %4981, %v1950_v31   ;;  %v326_v31 = vpop.permute.xlu2 %325 }
 0x108   :  { %2044 = vperm.xlu0 %4979, %v2021_v32   ;;  %1964 = vperm.xlu1 %4980, %v1949_v33   ;;  %v336_v32 = vpop.permute.xlu1 %335  ;;  %v331_v33 = vpop.permute.xlu0 %330 }
 0x109   :  { %613 = vmatpush.bf16.msrb.mxu0 %v5416_v45 }
 0x10f   :  { %1954 = vperm.xlu2 %4981, %v1947_v34  }
 0x110   :  { %1999 = vperm.xlu0 %4979, %v1984_v35   ;;  %2004 = vperm.xlu1 %4980, %v1985_v36  }
 0x114   :  { %3988 = vmatmul.msk.bf16.gmra.mxu0 %vm351_vm1, %v4782_v37 }
 0x117   :  { %2039 = vperm.xlu2 %4981, %v2020_v38  }
 0x118   :  { %1959 = vperm.xlu0 %4979, %v1948_v39   ;;  %2034 = vperm.xlu1 %4980, %v2019_v40   ;;  %v321_v39 = vpop.permute.xlu2 %320 }
 0x11f   :  { %2024 = vperm.xlu2 %4981, %v2017_v44   ;;  %v316_v44 = vpop.permute.xlu1 %315 }
 0x120   :  { %1989 = vperm.xlu0 %4979, %v1982_v46   ;;  %1994 = vperm.xlu1 %4980, %v1983_v47  }
 0x124   :  { %3989 = vmatmul.msk.bf16.gmra.mxu0 %vm351_vm1, %v350_v48 }
 0x127   :  { %2082 = vperm.xlu2 %4981, %v2067_v49  }
 0x128   :  { %2029 = vperm.xlu0 %4979, %v2018_v50   ;;  %2092 = vperm.xlu1 %4980, %v2069_v51  }
 0x12f   :  { %2077 = vperm.xlu2 %4981, %v2066_v52  }
 0x130   :  { %2087 = vperm.xlu0 %4979, %v2068_v53   ;;  %2072 = vperm.xlu1 %4980, %v2065_v54   ;;  %v4785_v53 = vld [vmem:[%s5880_s27 + $0x14] sm:$0xff]  ;;  %v4786_v54 = vld [vmem:[%s5880_s27 + $0x1c] sm:$0xff] }
 0x137   :  { %2540 = vperm.xlu2 %4981, %v2526_v55   ;;  %v4005_v55 = vld [vmem:[%s5880_s27 + $0x24] sm:$0xf] }
 0x138   :  { %2512 = vperm.xlu0 %4979, %v2498_v56   ;;  %2517 = vperm.xlu1 %4980, %v2499_v57   ;;  %v468_v56 = vunpack.c.l.b16 %v4005_v55  ;;  %v4787_v57 = vld [vmem:[%s5880_s27 + $0x28] sm:$0xff] }
 0x13f   :  { %2507 = vperm.xlu2 %4981, %v2497_v58   ;;  %v4788_v58 = vld [vmem:[%s5880_s27 + $0x30] sm:$0xff] }
 0x140   :  { %2545 = vperm.xlu0 %4979, %v2527_v59   ;;  %2502 = vperm.xlu1 %4980, %v2496_v60   ;;  %v402_v59 = vld [vmem:[%s5880_s27 + $0x10] sm:$0xf]  ;;  %v4789_v60 = vld [vmem:[%s5880_s27 + $0x3c] sm:$0xff] }
 0x147   :  { %2530 = vperm.xlu2 %4981, %v2524_v61   ;;  %v4028_v61 = vld [vmem:[%s5880_s27 + $0x38] sm:$0xf] }
 0x148   :  { %2568 = vperm.xlu0 %4979, %v2554_v62   ;;  %2573 = vperm.xlu1 %4980, %v2555_v63   ;;  %v412_v62 = vunpack.c.l.b16 %v402_v59  ;;  %v596_v63 = vunpack.c.l.b16 %v4028_v61 }
 0x14f   :  { %2563 = vperm.xlu2 %4981, %v2553_v0   ;;  %v415_v0 = vpack.c.b16 %v412_v62, %v412_v62 }
 0x150   :  { %2535 = vperm.xlu0 %4979, %v2525_v1   ;;  %2558 = vperm.xlu1 %4980, %v2552_v2   ;;  %v599_v1 = vpack.c.b16 %v596_v63, %v596_v63  ;;  %v4790_v2 = vld [vmem:[%s5880_s27 + $0x44] sm:$0xff] }
 0x157   :  { %2596 = vperm.xlu2 %4981, %v2590_v3   ;;  %v4048_v3 = vld [vmem:[%s5880_s27 + $0x4c] sm:$0xf] }
 0x158   :  { %2606 = vperm.xlu0 %4979, %v2592_v4   ;;  %2611 = vperm.xlu1 %4980, %v2593_v5   ;;  %v692_v4 = vunpack.c.l.b16 %v4048_v3 }
 0x15a   :  { %v695_v5 = vpack.c.b16 %v692_v4, %v692_v4 }
 0x15f   :  { %3085 = vperm.xlu2 %4981, %v3067_v6   ;;  %v4017_v6 = vld [vmem:[%s5881_s25 + $0x1] sm:$0x1] }
 0x160   :  { %2601 = vperm.xlu0 %4979, %v2591_v7   ;;  %3080 = vperm.xlu1 %4980, %v3066_v8   ;;  %v521_v7 = vsel %vm519_vm3, %v4017_v6, 0 }
 0x161   :  { %530 = vmatpush.bf16.msra.mxu3 %v521_v7 }
 0x167   :  { %3070 = vperm.xlu2 %4981, %v3064_v9  }
 0x168   :  { %3108 = vperm.xlu0 %4979, %v3094_v10   ;;  %3113 = vperm.xlu1 %4980, %v3095_v11  }
 0x16f   :  { %3141 = vperm.xlu2 %4981, %v3123_v13   ;;  %v452_v13 = vld [vmem:[%s5881_s25] sm:$0x1] }
 0x170   :  { %3075 = vperm.xlu0 %4979, %v3065_v14   ;;  %3136 = vperm.xlu1 %4980, %v3122_v15   ;;  %v556_v14 = vsel %vm519_vm3, %v452_v13, 0  ;;  %v871_v13 = vpop.permute.xlu2 %870 }
 0x171   :  { %565 = vmatpush.bf16.msrb.mxu3 %v556_v14  ;;  %v836_v14 = vpop.permute.xlu1 %835 }
 0x177   :  { %3126 = vperm.xlu2 %4981, %v3120_v16  }
 0x178   :  { %3098 = vperm.xlu0 %4979, %v3092_v17   ;;  %3103 = vperm.xlu1 %4980, %v3093_v18  }
 0x17f   :  { %3179 = vperm.xlu2 %4981, %v3161_v19  }
 0x180   :  { %3131 = vperm.xlu0 %4979, %v3121_v20   ;;  %3174 = vperm.xlu1 %4980, %v3160_v21   ;;  %v4040_v20 = vld [vmem:[%s5881_s25 + $0x2] sm:$0x1] }
 0x181   :  { %v374_v22 = vpop.f32.mrf.mxu0 }
 0x182   :  { %v375_v46 = vadd.f32 %v374_v22, %v316_v44  ;;  %v647_v22 = vsel %vm519_vm3, %v4040_v20, 0  ;;  %v796_v20 = vpop.permute.xlu1 %795 }
 0x184   :  { %v388_v51 = vmax.f32 %v375_v46, 0.0 }
 0x187   :  { %3798 = vperm.xlu2 %4981, %v3795_v23  }
 0x188   :  { %3164 = vperm.xlu0 %4979, %v3158_v24   ;;  %3169 = vperm.xlu1 %4980, %v3159_v25  }
 0x189   :  { %v376_v26 = vpop.f32.mrf.mxu0 }
 0x18a   :  { %v377_v40 = vadd.f32 %v376_v26, %v321_v39 }
 0x18c   :  { %v389_v49 = vmax.f32 %v377_v40, 0.0 }
 0x18e   :  { %v393_v52 = vpack.c.bf16 %v389_v49, %v388_v51 }
 0x190   :  { %3811 = vperm.xlu0 %4979, %v3807_v27   ;;  %3816 = vperm.xlu1 %4980, %v3808_v28  }
 0x191   :  { %v379_v29 = vpop.f32.mrf.mxu0 }
 0x192   :  { %v380_v37 = vadd.f32 %v379_v29, %v326_v31 }
 0x194   :  { %v390_v47 = vmax.f32 %v380_v37, 0.0  ;;  %v4060_v37 = vld [vmem:[%s5881_s25 + $0x3] sm:$0x1] }
 0x195   :  { %v743_v39 = vsel %vm519_vm3, %v4060_v37, 0 }
 0x199   :  { %v381_v30 = vpop.f32.mrf.mxu0 }
 0x19a   :  { %v382_v35 = vadd.f32 %v381_v30, %v331_v33 }
 0x19c   :  { %v391_v41 = vmax.f32 %v382_v35, 0.0 }
 0x19e   :  { %v394_v50 = vpack.c.bf16 %v391_v41, %v390_v47 }
 0x1a1   :  { %v384_v34 = vpop.f32.mrf.mxu0 }
 0x1a2   :  { %v385_v36 = vadd.f32 %v384_v34, %v336_v32 }
 0x1a4   :  { %v392_v38 = vmax.f32 %v385_v36, 0.0 }
 0x1a6   :  { %v395_v43 = vpack.c.bf16 %v5434_v12, %v392_v38  ;;  %v4783_v12 = vld [vmem:[%s5880_s27] sm:$0xff] }
 0x1a8   :  { %431 = vmatpush.bf16.msra.mxu1 %v395_v43  ;;  %486 = vmatpush.bf16.msra.mxu2 %v395_v43 }
 0x1a9   :  { %614 = vmatpush.bf16.msrb.mxu0 %v395_v43  ;;  %v386_v48 = vpop.f32.mrf.mxu0 }
 0x1ac   :  { %432 = vmatpush.bf16.msra.mxu1 %v394_v50  ;;  %487 = vmatpush.bf16.msra.mxu2 %v394_v50 }
 0x1ad   :  { %615 = vmatpush.bf16.msrb.mxu0 %v394_v50 }
 0x1b0   :  { %433 = vmatpush.bf16.msra.mxu1 %v393_v52  ;;  %488 = vmatpush.bf16.msra.mxu2 %v393_v52 }
 0x1b1   :  { %616 = vmatpush.bf16.msrb.mxu0 %v393_v52 }
 0x1b3   :  { %4014 = vmatmul.msk.bf16.vlgmr.msra.gmra.mxu2 %vm416_vm2, %v4785_v53  ;;  %3998 = vmatmul.msk.bf16.vlgmr.msra.gmra.mxu1 %vm416_vm2, %v4783_v12 }
 0x1b4   :  { %708 = vmatpush.bf16.msrb.mxu2 %v5410_v42  ;;  %v4784_v42 = vld [vmem:[%s5880_s27 + $0x8] sm:$0xff]  ;;  %4037 = vmatmul.msk.bf16.vlgmr.msrb.gmra.mxu0 %vm416_vm2, %v4787_v57 }
 0x1b5   :  { %656 = vmatpush.bf16.msrb.mxu1 %v647_v22 }
 0x1b8   :  { %709 = vmatpush.bf16.msrb.mxu2 %v5416_v45  ;;  %v471_v45 = vpack.c.b16 %v468_v56, %v468_v56 }
 0x1bc   :  { %710 = vmatpush.bf16.msrb.mxu2 %v395_v43 }
 0x1c0   :  { %711 = vmatpush.bf16.msrb.mxu2 %v394_v50 }
 0x1c3   :  { %4015 = vmatmul.msk.bf16.gmra.mxu2 %vm416_vm2, %v4786_v54  ;;  %3999 = vmatmul.msk.bf16.gmra.mxu1 %vm416_vm2, %v4784_v42 }
 0x1c4   :  { %712 = vmatpush.bf16.msrb.mxu2 %v393_v52  ;;  %4038 = vmatmul.msk.bf16.gmra.mxu0 %vm416_vm2, %v4788_v58 }
 0x1d3   :  { %4016 = vmatmul.msk.bf16.gmra.mxu2 %vm416_vm2, %v471_v45  ;;  %4000 = vmatmul.msk.bf16.gmra.mxu1 %vm416_vm2, %v415_v0 }
 0x1d4   :  { %4039 = vmatmul.msk.bf16.gmra.mxu0 %vm416_vm2, %v599_v1 }
 0x1e3   :  { %4057 = vmatmul.msk.bf16.vlgmr.msrb.gmra.mxu2 %vm416_vm2, %v4789_v60 }
 0x1f3   :  { %4058 = vmatmul.msk.bf16.gmra.mxu2 %vm416_vm2, %v4790_v2 }
 0x203   :  { %4059 = vmatmul.msk.bf16.gmra.mxu2 %vm416_vm2, %v695_v5 }
 0x230   :  { %v435_v11 = vpop.f32.mrf.mxu1 }
 0x231   :  { %v618_v17 = vpop.f32.mrf.mxu0 }
 0x236   :  { %v490_v8 = vpop.f32.mrf.mxu2 }
 0x238   :  { %v437_v16 = vpop.f32.mrf.mxu1 }
 0x239   :  { %v620_v21 = vpop.f32.mrf.mxu0  ;;  %v449_v35 = vpack.c.bf16 %v437_v16, %v435_v11 }
 0x23a   :  { %v632_v24 = vpack.c.bf16 %v620_v21, %v618_v17 }
 0x23c   :  { %4041 = vmatmul.msk.bf16.vlgmr.msrb.gmra.mxu1 %vm509_vm4, %v632_v24 }
 0x23e   :  { %v492_v9 = vpop.f32.mrf.mxu2 }
 0x23f   :  { %v504_v10 = vpack.c.bf16 %v492_v9, %v490_v8 }
 0x240   :  { %v440_v23 = vpop.f32.mrf.mxu1 }
 0x241   :  { %4018 = vmatmul.msk.bf16.vlgmr.msra.gmra.mxu3 %vm509_vm4, %v504_v10  ;;  %v623_v26 = vpop.f32.mrf.mxu0  ;;  %v801_v10 = vpop.permute.xlu0 %800 }
 0x242   :  { %752 = vmatpush.bf16.msra.mxu3 %v743_v39 }
 0x246   :  { %v495_v15 = vpop.f32.mrf.mxu2 }
 0x248   :  { %v442_v28 = vpop.f32.mrf.mxu1 }
 0x249   :  { %v625_v30 = vpop.f32.mrf.mxu0  ;;  %v450_v43 = vpack.c.bf16 %v442_v28, %v440_v23 }
 0x24a   :  { %v633_v31 = vpack.c.bf16 %v625_v30, %v623_v26  ;;  %v781_v26 = vpop.permute.xlu1 %780 }
 0x24c   :  { %4042 = vmatmul.msk.bf16.gmra.mxu1 %vm509_vm4, %v633_v31 }
 0x24e   :  { %v497_v18 = vpop.f32.mrf.mxu2 }
 0x24f   :  { %v505_v19 = vpack.c.bf16 %v497_v18, %v495_v15  ;;  %v4102_v15 = vld [vmem:[%s5882_s7 + $0x4] sm:$0xf]  ;;  %v791_v18 = vpop.permute.xlu0 %790 }
 0x250   :  { %v445_v32 = vpop.f32.mrf.mxu1  ;;  %v1100_v16 = vsel %vm361_vm0, %v4102_v15, 0 }
 0x251   :  { %4019 = vmatmul.msk.bf16.gmra.mxu3 %vm509_vm4, %v505_v19  ;;  %v628_v36 = vpop.f32.mrf.mxu0  ;;  %v451_v47 = vpack.c.bf16 %v445_v32, %v445_v32  ;;  %v826_v19 = vpop.permute.xlu2 %825 }
 0x252   :  { %v634_v38 = vpack.c.bf16 %v628_v36, %v628_v36 }
 0x256   :  { %v500_v25 = vpop.f32.mrf.mxu2 }
 0x257   :  { %v506_v27 = vpack.c.bf16 %v500_v25, %v500_v25  ;;  %v831_v22 = vpop.permute.xlu0 %830 }
 0x258   :  { %v447_v34 = vpop.f32.mrf.mxu1 }
 0x259   :  { %v630_v41 = vpop.f32.mrf.mxu0  ;;  %v786_v24 = vpop.permute.xlu2 %785 }
 0x25c   :  { %4043 = vmatmul.msk.bf16.gmra.mxu1 %vm509_vm4, %v634_v38 }
 0x25e   :  { %v502_v29 = vpop.f32.mrf.mxu2 }
 0x25f   :  { %v861_v30 = vpop.permute.xlu0 %860 }
 0x261   :  { %4020 = vmatmul.msk.bf16.gmra.mxu3 %vm509_vm4, %v506_v27  ;;  %v816_v36 = vpop.permute.xlu2 %815 }
 0x266   :  { %v714_v33 = vpop.f32.mrf.mxu2 }
 0x26e   :  { %v716_v40 = vpop.f32.mrf.mxu2 }
 0x26f   :  { %v728_v50 = vpack.c.bf16 %v716_v40, %v714_v33  ;;  %v866_v40 = vpop.permute.xlu1 %865 }
 0x271   :  { %4021 = vmatmul.msk.bf16.vlgmr.msrb.gmra.mxu3 %vm509_vm4, %v449_v35 }
 0x272   :  { %1109 = vmatpush.bf16.msrb.mxu3 %v1100_v16 }
 0x276   :  { %v719_v44 = vpop.f32.mrf.mxu2 }
 0x27e   :  { %v721_v46 = vpop.f32.mrf.mxu2 }
 0x27f   :  { %v729_v51 = vpack.c.bf16 %v721_v46, %v719_v44 }
 0x281   :  { %4022 = vmatmul.msk.bf16.gmra.mxu3 %vm509_vm4, %v450_v43 }
 0x286   :  { %v724_v48 = vpop.f32.mrf.mxu2 }
 0x287   :  { %v730_v52 = vpack.c.bf16 %v724_v48, %v724_v48 }
 0x28e   :  { %v726_v49 = vpop.f32.mrf.mxu2 }
 0x291   :  { %4023 = vmatmul.msk.bf16.gmra.mxu3 %vm509_vm4, %v451_v47 }
 0x2a1   :  { %4061 = vmatmul.msk.bf16.vlgmr.msra.gmra.mxu3 %vm509_vm4, %v728_v50  ;;  %v821_v50 = vpop.permute.xlu0 %820 }
 0x2a9   :  { %v919_v15 = vpop.permute.xlu0 %918 }
 0x2b1   :  { %4062 = vmatmul.msk.bf16.gmra.mxu3 %vm509_vm4, %v729_v51 }
 0x2b9   :  { %v658_v55 = vpop.f32.mrf.mxu1 }
 0x2c1   :  { %4063 = vmatmul.msk.bf16.gmra.mxu3 %vm509_vm4, %v730_v52  ;;  %v660_v42 = vpop.f32.mrf.mxu1 }
 0x2c4   :  { %v532_v53 = vpop.f32.mrf.mxu3 }
 0x2c9   :  { %v663_v45 = vpop.f32.mrf.mxu1 }
 0x2cc   :  { %v534_v12 = vpop.f32.mrf.mxu3 }
 0x2d1   :  { %v665_v59 = vpop.f32.mrf.mxu1 }
 0x2d4   :  { %v537_v54 = vpop.f32.mrf.mxu3 }
 0x2d9   :  { %v668_v62 = vpop.f32.mrf.mxu1 }
 0x2dc   :  { %v539_v56 = vpop.f32.mrf.mxu3 }
 0x2e1   :  { %v670_v1 = vpop.f32.mrf.mxu1 }
 0x2e4   :  { %v542_v57 = vpop.f32.mrf.mxu3 }
 0x2ec   :  { %v544_v58 = vpop.f32.mrf.mxu3 }
 0x2f4   :  { %v567_v60 = vpop.f32.mrf.mxu3 }
 0x2f5   :  { %v568_v61 = vadd.f32 %v567_v60, %v532_v53  ;;  %v851_v60 = vpop.permute.xlu1 %850 }
 0x2f7   :  { %v672_v63 = vadd.f32 %v658_v55, %v568_v61 }
 0x2fc   :  { %v569_v0 = vpop.f32.mrf.mxu3 }
 0x2fd   :  { %v570_v27 = vadd.f32 %v569_v0, %v534_v12 }
 0x2ff   :  { %v673_v31 = vadd.f32 %v660_v42, %v570_v27 }
 0x304   :  { %v572_v2 = vpop.f32.mrf.mxu3 }
 0x305   :  { %v573_v3 = vadd.f32 %v572_v2, %v537_v54 }
 0x307   :  { %v674_v4 = vadd.f32 %v663_v45, %v573_v3 }
 0x30c   :  { %v574_v5 = vpop.f32.mrf.mxu3 }
 0x30d   :  { %v575_v23 = vadd.f32 %v574_v5, %v539_v56  ;;  %v4792_v5 = vld [vmem:[%s5883_s11 + $0x8] sm:$0xff] }
 0x30f   :  { %v675_v28 = vadd.f32 %v665_v59, %v575_v23 }
 0x314   :  { %v577_v6 = vpop.f32.mrf.mxu3 }
 0x315   :  { %v578_v7 = vadd.f32 %v577_v6, %v542_v57  ;;  %v856_v57 = vpop.permute.xlu2 %855  ;;  %v887_v6 = vld [vmem:[%s5883_s11 + $0x10] sm:$0xf] }
 0x317   :  { %v676_v8 = vadd.f32 %v668_v62, %v578_v7  ;;  %v930_v7 = vunpack.c.l.b16 %v887_v6 }
 0x31c   :  { %v579_v9 = vpop.f32.mrf.mxu3 }
 0x31d   :  { %v914_v16 = vpop.permute.xlu2 %913 }
 0x324   :  { %v754_v11 = vpop.f32.mrf.mxu3 }
 0x325   :  { %v768_v38 = vadd.f32 %v754_v11, %v672_v63 }
 0x327   :  { %v803_v48 = vadd.f32 %v781_v26, %v768_v38  ;;  %v899_v26 = vpop.permute.xlu0 %898  ;;  %v983_v38 = vld [vmem:[%s5884_s15 + $0x10] sm:$0xf] }
 0x329   :  { %v838_v56 = vmul.f32 %v816_v36, %v803_v48  ;;  %v4794_v36 = vld [vmem:[%s5884_s15 + $0x8] sm:$0xff] }
 0x32b   :  { %v873_v63 = vadd.f32 %v851_v60, %v838_v56 }
 0x32c   :  { %v756_v17 = vpop.f32.mrf.mxu3 }
 0x32d   :  { %v769_v33 = vadd.f32 %v756_v17, %v673_v31  ;;  %v878_v2 = vmax.f32 %v873_v63, 0.0 }
 0x32f   :  { %v804_v43 = vadd.f32 %v786_v24, %v769_v33 }
 0x331   :  { %v839_v52 = vmul.f32 %v821_v50, %v804_v43 }
 0x333   :  { %v874_v59 = vadd.f32 %v856_v57, %v839_v52 }
 0x334   :  { %v759_v21 = vpop.f32.mrf.mxu3 }
 0x335   :  { %v770_v32 = vadd.f32 %v759_v21, %v674_v4  ;;  %v879_v1 = vmax.f32 %v874_v59, 0.0  ;;  %v4791_v4 = vld [vmem:[%s5883_s11] sm:$0xff] }
 0x337   :  { %v805_v39 = vadd.f32 %v791_v18, %v770_v32  ;;  %v888_v3 = vpack.c.bf16 %v879_v1, %v878_v2 }
 0x339   :  { %v840_v49 = vmul.f32 %v826_v19, %v805_v39  ;;  %v5558_v54 = vpack.c.bf16 %v805_v39, %v804_v43  ;;  %v4090_v39 = vld [vmem:[%s5884_s15 + $0x24] sm:$0xf] }
 0x33b   :  { %v875_v42 = vadd.f32 %v861_v30, %v840_v49 }
 0x33c   :  { %v761_v25 = vpop.f32.mrf.mxu3 }
 0x33d   :  { %v771_v29 = vadd.f32 %v761_v25, %v675_v28  ;;  %v880_v62 = vmax.f32 %v875_v42, 0.0 }
 0x33f   :  { %v806_v34 = vadd.f32 %v796_v20, %v771_v29 }
 0x341   :  { %v841_v44 = vmul.f32 %v831_v22, %v806_v34 }
 0x343   :  { %v876_v12 = vadd.f32 %v866_v40, %v841_v44  ;;  %v993_v40 = vunpack.c.l.b16 %v983_v38 }
 0x344   :  { %v764_v35 = vpop.f32.mrf.mxu3 }
 0x345   :  { %v772_v37 = vadd.f32 %v764_v35, %v676_v8  ;;  %v881_v58 = vmax.f32 %v876_v12, 0.0  ;;  %v933_v8 = vpack.c.b16 %v930_v7, %v930_v7  ;;  %v4795_v35 = vld [vmem:[%s5884_s15 + $0x14] sm:$0xff]  ;;  %v996_v43 = vpack.c.b16 %v993_v40, %v993_v40 }
 0x347   :  { %v807_v41 = vadd.f32 %v801_v10, %v772_v37  ;;  %v889_v0 = vpack.c.bf16 %v881_v58, %v880_v62  ;;  %v4796_v37 = vld [vmem:[%s5884_s15 + $0x1c] sm:$0xff]  ;;  %v4125_v58 = vld [vmem:[%s5882_s7 + $0x8] sm:$0xf] }
 0x348   :  { %v1226_v60 = vsel %vm361_vm0, %v4125_v58, 0  ;;  %v1415_v58 = vpop.permute.xlu0 %1414 }
 0x349   :  { %v842_v46 = vmul.f32 %v836_v14, %v807_v41  ;;  %v5553_v47 = vpack.c.bf16 %v807_v41, %v806_v34  ;;  %v909_v14 = vpop.permute.xlu1 %908  ;;  %v4793_v34 = vld [vmem:[%s5884_s15] sm:$0xff]  ;;  %v1048_v41 = vunpack.c.l.b16 %v4090_v39 }
 0x34b   :  { %1009 = vmatpush.bf16.msra.mxu1 %v5553_v47  ;;  %1064 = vmatpush.bf16.msra.mxu2 %v5553_v47  ;;  %v877_v51 = vadd.f32 %v871_v13, %v842_v46  ;;  %v1051_v44 = vpack.c.b16 %v1048_v41, %v1048_v41  ;;  %v4797_v46 = vld [vmem:[%s5884_s15 + $0x28] sm:$0xff] }
 0x34c   :  { %1287 = vmatpush.bf16.msra.mxu3 %v5553_v47  ;;  %v766_v53 = vpop.f32.mrf.mxu3 }
 0x34d   :  { %v882_v55 = vmax.f32 %v877_v51, 0.0  ;;  %v1032_v51 = vld [vmem:[%s5882_s7] sm:$0xf] }
 0x34e   :  { %v1135_v52 = vsel %vm361_vm0, %v1032_v51, 0 }
 0x34f   :  { %1010 = vmatpush.bf16.msra.mxu1 %v5558_v54  ;;  %1065 = vmatpush.bf16.msra.mxu2 %v5558_v54  ;;  %v890_v45 = vpack.c.bf16 %v882_v55, %v882_v55 }
 0x350   :  { %1288 = vmatpush.bf16.msra.mxu3 %v5558_v54 }
 0x351   :  { %v944_v61 = vsel %vm361_vm0, %v890_v45, 0  ;;  %v904_v22 = vpop.permute.xlu1 %903 }
 0x352   :  { %951 = vmatpush.bf16.msra.mxu0 %v944_v61 }
 0x356   :  { %952 = vmatpush.bf16.msra.mxu0 %v889_v0 }
 0x35a   :  { %953 = vmatpush.bf16.msra.mxu0 %v888_v3 }
 0x35d   :  { %4072 = vmatmul.msk.bf16.vlgmr.msra.gmra.mxu0 %vm351_vm1, %v4791_v4 }
 0x35e   :  { %1144 = vmatpush.bf16.msrb.mxu0 %v1135_v52 }
 0x36d   :  { %4073 = vmatmul.msk.bf16.gmra.mxu0 %vm351_vm1, %v4792_v5 }
 0x37d   :  { %4074 = vmatmul.msk.bf16.gmra.mxu0 %vm351_vm1, %v933_v8 }
 0x3da   :  { %v955_v9 = vpop.f32.mrf.mxu0 }
 0x3db   :  { %v956_v27 = vadd.f32 %v955_v9, %v899_v26  ;;  %v4799_v9 = vld [vmem:[%s5884_s15 + $0x3c] sm:$0xff] }
 0x3dd   :  { %v969_v32 = vmax.f32 %v956_v27, 0.0 }
 0x3e2   :  { %v957_v10 = vpop.f32.mrf.mxu0 }
 0x3e3   :  { %v958_v23 = vadd.f32 %v957_v10, %v904_v22 }
 0x3e5   :  { %v970_v30 = vmax.f32 %v958_v23, 0.0 }
 0x3e7   :  { %v974_v33 = vpack.c.bf16 %v970_v30, %v969_v32 }
 0x3ea   :  { %v960_v11 = vpop.f32.mrf.mxu0 }
 0x3eb   :  { %v961_v20 = vadd.f32 %v960_v11, %v909_v14  ;;  %v4800_v14 = vld [vmem:[%s5884_s15 + $0x44] sm:$0xff] }
 0x3ed   :  { %v971_v28 = vmax.f32 %v961_v20, 0.0 }
 0x3f2   :  { %v962_v13 = vpop.f32.mrf.mxu0 }
 0x3f3   :  { %v963_v18 = vadd.f32 %v962_v13, %v914_v16  ;;  %v4133_v16 = vld [vmem:[%s5884_s15 + $0x4c] sm:$0xf] }
 0x3f5   :  { %v972_v24 = vmax.f32 %v963_v18, 0.0 }
 0x3f7   :  { %v975_v31 = vpack.c.bf16 %v972_v24, %v971_v28 }
 0x3fa   :  { %v965_v17 = vpop.f32.mrf.mxu0 }
 0x3fb   :  { %v966_v19 = vadd.f32 %v965_v17, %v919_v15 }
 0x3fd   :  { %v973_v21 = vmax.f32 %v966_v19, 0.0  ;;  %v1271_v19 = vunpack.c.l.b16 %v4133_v16 }
 0x3ff   :  { %v976_v25 = vpack.c.bf16 %v803_v48, %v973_v21  ;;  %v4113_v48 = vld [vmem:[%s5884_s15 + $0x38] sm:$0xf]  ;;  %v1274_v20 = vpack.c.b16 %v1271_v19, %v1271_v19 }
 0x400   :  { %v1175_v49 = vunpack.c.l.b16 %v4113_v48 }
 0x401   :  { %1011 = vmatpush.bf16.msra.mxu1 %v976_v25  ;;  %1066 = vmatpush.bf16.msra.mxu2 %v976_v25 }
 0x402   :  { %1289 = vmatpush.bf16.msra.mxu3 %v976_v25  ;;  %v967_v29 = vpop.f32.mrf.mxu0  ;;  %v1178_v50 = vpack.c.b16 %v1175_v49, %v1175_v49 }
 0x403   :  { %v4145_v29 = vld [vmem:[%s5882_s7 + $0xc] sm:$0xf] }
 0x405   :  { %1012 = vmatpush.bf16.msra.mxu1 %v975_v31  ;;  %1067 = vmatpush.bf16.msra.mxu2 %v975_v31 }
 0x406   :  { %1290 = vmatpush.bf16.msra.mxu3 %v975_v31 }
 0x409   :  { %1013 = vmatpush.bf16.msra.mxu1 %v974_v33  ;;  %1068 = vmatpush.bf16.msra.mxu2 %v974_v33 }
 0x40a   :  { %1291 = vmatpush.bf16.msra.mxu3 %v974_v33 }
 0x40c   :  { %4083 = vmatmul.msk.bf16.vlgmr.msra.gmra.mxu1 %vm416_vm2, %v4793_v34  ;;  %4099 = vmatmul.msk.bf16.vlgmr.msra.gmra.mxu2 %vm416_vm2, %v4795_v35 }
 0x40d   :  { %1191 = vmatpush.bf16.msrb.mxu1 %v5553_v47  ;;  %v4798_v47 = vld [vmem:[%s5884_s15 + $0x30] sm:$0xff]  ;;  %1235 = vmatpush.bf16.msrb.mxu2 %v1226_v60 }
 0x411   :  { %1192 = vmatpush.bf16.msrb.mxu1 %v5558_v54 }
 0x415   :  { %1193 = vmatpush.bf16.msrb.mxu1 %v976_v25 }
 0x419   :  { %1194 = vmatpush.bf16.msrb.mxu1 %v975_v31  ;;  %v1322_v31 = vsel %vm361_vm0, %v4145_v29, 0 }
 0x41a   :  { %1331 = vmatpush.bf16.msra.mxu0 %v1322_v31 }
 0x41c   :  { %4084 = vmatmul.msk.bf16.gmra.mxu1 %vm416_vm2, %v4794_v36  ;;  %4100 = vmatmul.msk.bf16.gmra.mxu2 %vm416_vm2, %v4796_v37 }
 0x41d   :  { %1195 = vmatpush.bf16.msrb.mxu1 %v974_v33 }
 0x42c   :  { %4085 = vmatmul.msk.bf16.gmra.mxu1 %vm416_vm2, %v996_v43  ;;  %4101 = vmatmul.msk.bf16.gmra.mxu2 %vm416_vm2, %v1051_v44 }
 0x43c   :  { %4122 = vmatmul.msk.bf16.vlgmr.msrb.gmra.mxu1 %vm416_vm2, %v4797_v46 }
 0x44c   :  { %4123 = vmatmul.msk.bf16.gmra.mxu1 %vm416_vm2, %v4798_v47 }
 0x45c   :  { %4124 = vmatmul.msk.bf16.gmra.mxu1 %vm416_vm2, %v1178_v50 }
 0x489   :  { %v1015_v53 = vpop.f32.mrf.mxu1 }
 0x48f   :  { %v1070_v12 = vpop.f32.mrf.mxu2 }
 0x491   :  { %v1017_v54 = vpop.f32.mrf.mxu1 }
 0x492   :  { %v1029_v55 = vpack.c.bf16 %v1017_v54, %v1015_v53 }
 0x494   :  { %4106 = vmatmul.msk.bf16.vlgmr.msrb.gmra.mxu0 %vm1089_vm5, %v1029_v55 }
 0x497   :  { %v1072_v56 = vpop.f32.mrf.mxu2 }
 0x498   :  { %v1084_v42 = vpack.c.bf16 %v1072_v56, %v1070_v12 }
 0x499   :  { %v1020_v57 = vpop.f32.mrf.mxu1 }
 0x49a   :  { %4103 = vmatmul.msk.bf16.vlgmr.msrb.gmra.mxu3 %vm1089_vm5, %v1084_v42  ;;  %v1380_v42 = vpop.permute.xlu2 %1379 }
 0x49f   :  { %v1075_v45 = vpop.f32.mrf.mxu2 }
 0x4a1   :  { %v1022_v59 = vpop.f32.mrf.mxu1 }
 0x4a2   :  { %v1030_v61 = vpack.c.bf16 %v1022_v59, %v1020_v57  ;;  %v4808_v59 = vld [vmem:[%s5885_s18 + $0x8] sm:$0xff] }
 0x4a3   :  { %1693 = vmatpush.bf16.msrb.mxu0 %v4808_v59 }
 0x4a4   :  { %4107 = vmatmul.msk.bf16.gmra.mxu0 %vm1089_vm5, %v1030_v61  ;;  %v1370_v61 = vpop.permute.xlu2 %1369 }
 0x4a7   :  { %v1077_v62 = vpop.f32.mrf.mxu2 }
 0x4a8   :  { %v1085_v63 = vpack.c.bf16 %v1077_v62, %v1075_v45  ;;  %v1450_v45 = vpop.permute.xlu1 %1449 }
 0x4a9   :  { %v1025_v0 = vpop.f32.mrf.mxu1 }
 0x4aa   :  { %4104 = vmatmul.msk.bf16.gmra.mxu3 %vm1089_vm5, %v1085_v63  ;;  %v1031_v2 = vpack.c.bf16 %v1025_v0, %v1025_v0  ;;  %v1375_v63 = vpop.permute.xlu0 %1374 }
 0x4af   :  { %v1080_v1 = vpop.f32.mrf.mxu2 }
 0x4b0   :  { %v1086_v4 = vpack.c.bf16 %v1080_v1, %v1080_v1  ;;  %v1405_v62 = vpop.permute.xlu1 %1404  ;;  %v1410_v1 = vpop.permute.xlu2 %1409 }
 0x4b1   :  { %v1027_v3 = vpop.f32.mrf.mxu1 }
 0x4b4   :  { %4108 = vmatmul.msk.bf16.gmra.mxu0 %vm1089_vm5, %v1031_v2 }
 0x4b7   :  { %v1082_v5 = vpop.f32.mrf.mxu2 }
 0x4b8   :  { %v1365_v2 = vpop.permute.xlu1 %1364  ;;  %v1360_v5 = vpop.permute.xlu0 %1359 }
 0x4b9   :  { %v1197_v6 = vpop.f32.mrf.mxu1 }
 0x4ba   :  { %4105 = vmatmul.msk.bf16.gmra.mxu3 %vm1089_vm5, %v1086_v4 }
 0x4c0   :  { %v1395_v16 = vpop.permute.xlu1 %1394 }
 0x4c1   :  { %v1199_v7 = vpop.f32.mrf.mxu1 }
 0x4c2   :  { %v1211_v8 = vpack.c.bf16 %v1199_v7, %v1197_v6 }
 0x4c4   :  { %4126 = vmatmul.msk.bf16.vlgmr.msrb.gmra.mxu2 %vm1089_vm5, %v1211_v8 }
 0x4c9   :  { %v1202_v10 = vpop.f32.mrf.mxu1 }
 0x4ca   :  { %4142 = vmatmul.msk.bf16.vlgmr.msra.gmra.mxu3 %vm416_vm2, %v4799_v9  ;;  %v1440_v9 = vpop.permute.xlu2 %1439 }
 0x4d1   :  { %v1204_v11 = vpop.f32.mrf.mxu1 }
 0x4d2   :  { %v1212_v13 = vpack.c.bf16 %v1204_v11, %v1202_v10 }
 0x4d4   :  { %4127 = vmatmul.msk.bf16.gmra.mxu2 %vm1089_vm5, %v1212_v13 }
 0x4d9   :  { %v1207_v15 = vpop.f32.mrf.mxu1 }
 0x4da   :  { %4143 = vmatmul.msk.bf16.gmra.mxu3 %vm416_vm2, %v4800_v14  ;;  %v1213_v17 = vpack.c.bf16 %v1207_v15, %v1207_v15 }
 0x4e1   :  { %v1209_v18 = vpop.f32.mrf.mxu1 }
 0x4e4   :  { %4128 = vmatmul.msk.bf16.gmra.mxu2 %vm1089_vm5, %v1213_v17 }
 0x4ea   :  { %4144 = vmatmul.msk.bf16.gmra.mxu3 %vm416_vm2, %v1274_v20  ;;  %v1445_v20 = vpop.permute.xlu0 %1444 }
 0x511   :  { %v1146_v21 = vpop.f32.mrf.mxu0 }
 0x519   :  { %v1148_v22 = vpop.f32.mrf.mxu0 }
 0x51d   :  { %v1111_v23 = vpop.f32.mrf.mxu3 }
 0x51e   :  { %v1147_v24 = vadd.f32 %v1146_v21, %v1111_v23 }
 0x521   :  { %v1151_v25 = vpop.f32.mrf.mxu0 }
 0x525   :  { %v1113_v26 = vpop.f32.mrf.mxu3 }
 0x526   :  { %v1149_v7 = vadd.f32 %v1148_v22, %v1113_v26  ;;  %v1400_v26 = vpop.permute.xlu2 %1399 }
 0x529   :  { %v1153_v27 = vpop.f32.mrf.mxu0 }
 0x52d   :  { %v1116_v28 = vpop.f32.mrf.mxu3 }
 0x52e   :  { %v1152_v30 = vadd.f32 %v1151_v25, %v1116_v28 }
 0x531   :  { %v1156_v32 = vpop.f32.mrf.mxu0 }
 0x535   :  { %v1118_v33 = vpop.f32.mrf.mxu3 }
 0x536   :  { %v1154_v3 = vadd.f32 %v1153_v27, %v1118_v33 }
 0x539   :  { %v1158_v34 = vpop.f32.mrf.mxu0 }
 0x53d   :  { %v1121_v35 = vpop.f32.mrf.mxu3 }
 0x53e   :  { %v1157_v36 = vadd.f32 %v1156_v32, %v1121_v35 }
 0x545   :  { %v1123_v37 = vpop.f32.mrf.mxu3 }
 0x546   :  { %v1435_v37 = vpop.permute.xlu1 %1434 }
 0x547   :  { %v1237_v38 = vpop.f32.mrf.mxu2 }
 0x548   :  { %v1251_v39 = vadd.f32 %v1237_v38, %v1147_v24 }
 0x54d   :  { %v1293_v40 = vpop.f32.mrf.mxu3 }
 0x54e   :  { %v1493_v59 = vpop.permute.xlu1 %1492 }
 0x54f   :  { %v1239_v41 = vpop.f32.mrf.mxu2 }
 0x550   :  { %v1252_v10 = vadd.f32 %v1239_v41, %v1149_v7  ;;  %v1430_v41 = vpop.permute.xlu0 %1429 }
 0x555   :  { %v1295_v43 = vpop.f32.mrf.mxu3 }
 0x556   :  { %v1307_v44 = vpack.c.bf16 %v1295_v43, %v1293_v40 }
 0x557   :  { %v1242_v46 = vpop.f32.mrf.mxu2 }
 0x558   :  { %v1253_v47 = vadd.f32 %v1242_v46, %v1152_v30  ;;  %4146 = vmatmul.msk.bf16.vlgmr.msra.gmra.mxu0 %vm1089_vm5, %v1307_v44 }
 0x55d   :  { %v1298_v48 = vpop.f32.mrf.mxu3 }
 0x55f   :  { %v1244_v49 = vpop.f32.mrf.mxu2 }
 0x560   :  { %v1254_v6 = vadd.f32 %v1244_v49, %v1154_v3 }
 0x565   :  { %v1300_v50 = vpop.f32.mrf.mxu3 }
 0x566   :  { %v1308_v51 = vpack.c.bf16 %v1300_v50, %v1298_v48 }
 0x567   :  { %v1247_v52 = vpop.f32.mrf.mxu2 }
 0x568   :  { %v1255_v53 = vadd.f32 %v1247_v52, %v1157_v36  ;;  %4147 = vmatmul.msk.bf16.gmra.mxu0 %vm1089_vm5, %v1308_v51  ;;  %v4801_v51 = vld [vmem:[%s5886_s22] sm:$0xff]  ;;  %v4802_v52 = vld [vmem:[%s5886_s22 + $0x8] sm:$0xff] }
 0x56d   :  { %v1303_v12 = vpop.f32.mrf.mxu3 }
 0x56e   :  { %v1309_v55 = vpack.c.bf16 %v1303_v12, %v1303_v12 }
 0x56f   :  { %v1249_v54 = vpop.f32.mrf.mxu2 }
 0x575   :  { %v1305_v56 = vpop.f32.mrf.mxu3 }
 0x578   :  { %4148 = vmatmul.msk.bf16.gmra.mxu0 %vm1089_vm5, %v1309_v55 }
 0x5d5   :  { %v1333_v57 = vpop.f32.mrf.mxu0 }
 0x5d6   :  { %v1347_v18 = vadd.f32 %v1333_v57, %v1251_v39 }
 0x5d8   :  { %v1382_v28 = vadd.f32 %v1360_v5, %v1347_v18  ;;  %v1562_v18 = vld [vmem:[%s5887_s0 + $0x10] sm:$0xf] }
 0x5da   :  { %v1417_v35 = vmul.f32 %v1395_v16, %v1382_v28  ;;  %v4804_v16 = vld [vmem:[%s5887_s0 + $0x8] sm:$0xff] }
 0x5dc   :  { %v1452_v46 = vadd.f32 %v1430_v41, %v1417_v35 }
 0x5dd   :  { %v1335_v60 = vpop.f32.mrf.mxu0 }
 0x5de   :  { %v1348_v13 = vadd.f32 %v1335_v60, %v1252_v10  ;;  %v1457_v49 = vmax.f32 %v1452_v46, 0.0 }
 0x5e0   :  { %v1383_v23 = vadd.f32 %v1365_v2, %v1348_v13 }
 0x5e2   :  { %v1418_v30 = vmul.f32 %v1400_v26, %v1383_v23 }
 0x5e4   :  { %v1453_v40 = vadd.f32 %v1435_v37, %v1418_v30 }
 0x5e5   :  { %v1338_v0 = vpop.f32.mrf.mxu0 }
 0x5e6   :  { %v1349_v11 = vadd.f32 %v1338_v0, %v1253_v47  ;;  %v1458_v48 = vmax.f32 %v1453_v40, 0.0 }
 0x5e8   :  { %v1384_v19 = vadd.f32 %v1370_v61, %v1349_v11  ;;  %v1467_v50 = vpack.c.bf16 %v1458_v48, %v1457_v49 }
 0x5ea   :  { %v1419_v22 = vmul.f32 %v1405_v62, %v1384_v19  ;;  %v5620_v33 = vpack.c.bf16 %v1384_v19, %v1383_v23  ;;  %v4175_v19 = vld [vmem:[%s5887_s0 + $0x24] sm:$0xf] }
 0x5ec   :  { %v1454_v36 = vadd.f32 %v1440_v9, %v1419_v22 }
 0x5ed   :  { %v1340_v4 = vpop.f32.mrf.mxu0 }
 0x5ee   :  { %v1350_v8 = vadd.f32 %v1340_v4, %v1254_v6  ;;  %v1459_v44 = vmax.f32 %v1454_v36, 0.0 }
 0x5f0   :  { %v1385_v14 = vadd.f32 %v1375_v63, %v1350_v8 }
 0x5f2   :  { %v1420_v24 = vmul.f32 %v1410_v1, %v1385_v14 }
 0x5f4   :  { %v1455_v32 = vadd.f32 %v1445_v20, %v1420_v24  ;;  %v1572_v20 = vunpack.c.l.b16 %v1562_v18 }
 0x5f5   :  { %v1343_v15 = vpop.f32.mrf.mxu0 }
 0x5f6   :  { %v1351_v17 = vadd.f32 %v1343_v15, %v1255_v53  ;;  %v1460_v39 = vmax.f32 %v1455_v32, 0.0  ;;  %v1466_v53 = vld [vmem:[%s5886_s22 + $0x10] sm:$0xf]  ;;  %v4806_v15 = vld [vmem:[%s5887_s0 + $0x14] sm:$0xff]  ;;  %v1575_v23 = vpack.c.b16 %v1572_v20, %v1572_v20 }
 0x5f7   :  { %v1509_v12 = vunpack.c.l.b16 %v1466_v53 }
 0x5f8   :  { %v1386_v21 = vadd.f32 %v1380_v42, %v1351_v17  ;;  %v1468_v47 = vpack.c.bf16 %v1460_v39, %v1459_v44  ;;  %v4807_v17 = vld [vmem:[%s5887_s0 + $0x1c] sm:$0xff] }
 0x5f9   :  { %v1512_v54 = vpack.c.b16 %v1509_v12, %v1509_v12 }
 0x5fa   :  { %v1421_v25 = vmul.f32 %v1415_v58, %v1386_v21  ;;  %v5615_v27 = vpack.c.bf16 %v1386_v21, %v1385_v14  ;;  %v1498_v58 = vpop.permute.xlu2 %1497  ;;  %v4803_v14 = vld [vmem:[%s5887_s0] sm:$0xff]  ;;  %v1628_v21 = vunpack.c.l.b16 %v4175_v19 }
 0x5fc   :  { %1588 = vmatpush.bf16.msra.mxu2 %v5615_v27  ;;  %1644 = vmatpush.bf16.msrb.mxu3 %v5615_v27  ;;  %v1456_v29 = vadd.f32 %v1450_v45, %v1421_v25  ;;  %v1488_v45 = vpop.permute.xlu0 %1487  ;;  %v1631_v24 = vpack.c.b16 %v1628_v21, %v1628_v21  ;;  %v4809_v25 = vld [vmem:[%s5887_s0 + $0x28] sm:$0xff] }
 0x5fd   :  { %1878 = vmatpush.bf16.msra.mxu0 %v5615_v27  ;;  %v1345_v31 = vpop.f32.mrf.mxu0 }
 0x5fe   :  { %v1461_v34 = vmax.f32 %v1456_v29, 0.0  ;;  %v4805_v29 = vld [vmem:[%s5885_s18] sm:$0xff] }
 0x600   :  { %1589 = vmatpush.bf16.msra.mxu2 %v5620_v33  ;;  %1645 = vmatpush.bf16.msrb.mxu3 %v5620_v33  ;;  %v1469_v38 = vpack.c.bf16 %v1461_v34, %v1461_v34 }
 0x601   :  { %1879 = vmatpush.bf16.msra.mxu0 %v5620_v33 }
 0x602   :  { %v1523_v43 = vsel %vm361_vm0, %v1469_v38, 0  ;;  %v1478_v5 = vpop.permute.xlu2 %1477  ;;  %v4811_v38 = vld [vmem:[%s5885_s18 + $0x10] sm:$0xff] }
 0x603   :  { %1530 = vmatpush.bf16.msra.mxu1 %v1523_v43 }
 0x604   :  { %v1483_v1 = vpop.permute.xlu0 %1482 }
 0x607   :  { %1531 = vmatpush.bf16.msra.mxu1 %v1468_v47 }
 0x60b   :  { %1532 = vmatpush.bf16.msra.mxu1 %v1467_v50 }
 0x60e   :  { %4157 = vmatmul.msk.bf16.vlgmr.msra.gmra.mxu1 %vm351_vm1, %v4801_v51 }
 0x60f   :  { %1731 = vmatpush.bf16.msrb.mxu1 %v4805_v29 }
 0x61e   :  { %4158 = vmatmul.msk.bf16.gmra.mxu1 %vm351_vm1, %v4802_v52  ;;  %v4812_v52 = vld [vmem:[%s5887_s0 + $0x3c] sm:$0xff] }
 0x62e   :  { %4159 = vmatmul.msk.bf16.gmra.mxu1 %vm351_vm1, %v1512_v54 }
 0x68b   :  { %v1534_v55 = vpop.f32.mrf.mxu1 }
 0x68c   :  { %v1535_v6 = vadd.f32 %v1534_v55, %v1478_v5  ;;  %v4813_v55 = vld [vmem:[%s5887_s0 + $0x44] sm:$0xff]  ;;  %v4814_v5 = vld [vmem:[%s5885_s18 + $0x18] sm:$0xff] }
 0x68d   :  { %1926 = vmatpush.bf16.msra.mxu1 %v4814_v5 }
 0x68e   :  { %v1548_v11 = vmax.f32 %v1535_v6, 0.0 }
 0x693   :  { %v1536_v56 = vpop.f32.mrf.mxu1 }
 0x694   :  { %v1537_v2 = vadd.f32 %v1536_v56, %v1483_v1 }
 0x696   :  { %v1549_v9 = vmax.f32 %v1537_v2, 0.0 }
 0x698   :  { %v1553_v13 = vpack.c.bf16 %v1549_v9, %v1548_v11 }
 0x69b   :  { %v1539_v42 = vpop.f32.mrf.mxu1 }
 0x69c   :  { %v1540_v63 = vadd.f32 %v1539_v42, %v1488_v45  ;;  %v4232_v45 = vld [vmem:[%s5887_s0 + $0x4c] sm:$0xf] }
 0x69e   :  { %v1550_v7 = vmax.f32 %v1540_v63, 0.0 }
 0x6a3   :  { %v1541_v57 = vpop.f32.mrf.mxu1 }
 0x6a4   :  { %v1542_v61 = vadd.f32 %v1541_v57, %v1493_v59 }
 0x6a6   :  { %v1551_v3 = vmax.f32 %v1542_v61, 0.0 }
 0x6a8   :  { %v1554_v10 = vpack.c.bf16 %v1551_v3, %v1550_v7 }
 0x6ab   :  { %v1544_v60 = vpop.f32.mrf.mxu1 }
 0x6ac   :  { %v1545_v62 = vadd.f32 %v1544_v60, %v1498_v58  ;;  %v1862_v58 = vunpack.c.l.b16 %v4232_v45 }
 0x6ae   :  { %v1552_v0 = vmax.f32 %v1545_v62, 0.0  ;;  %v1865_v60 = vpack.c.b16 %v1862_v58, %v1862_v58 }
 0x6b0   :  { %v1555_v4 = vpack.c.bf16 %v1382_v28, %v1552_v0  ;;  %v4207_v28 = vld [vmem:[%s5887_s0 + $0x38] sm:$0xf] }
 0x6b1   :  { %v1762_v22 = vunpack.c.l.b16 %v4207_v28 }
 0x6b2   :  { %1590 = vmatpush.bf16.msra.mxu2 %v1555_v4  ;;  %1646 = vmatpush.bf16.msrb.mxu3 %v1555_v4 }
 0x6b3   :  { %1880 = vmatpush.bf16.msra.mxu0 %v1555_v4  ;;  %v1546_v8 = vpop.f32.mrf.mxu1  ;;  %v1765_v26 = vpack.c.b16 %v1762_v22, %v1762_v22 }
 0x6b6   :  { %1591 = vmatpush.bf16.msra.mxu2 %v1554_v10  ;;  %1647 = vmatpush.bf16.msrb.mxu3 %v1554_v10 }
 0x6b7   :  { %1881 = vmatpush.bf16.msra.mxu0 %v1554_v10 }
 0x6ba   :  { %1592 = vmatpush.bf16.msra.mxu2 %v1553_v13  ;;  %1648 = vmatpush.bf16.msrb.mxu3 %v1553_v13 }
 0x6bb   :  { %1882 = vmatpush.bf16.msra.mxu0 %v1553_v13 }
 0x6bd   :  { %4168 = vmatmul.msk.bf16.vlgmr.msra.gmra.mxu2 %vm416_vm2, %v4803_v14  ;;  %4184 = vmatmul.msk.bf16.vlgmr.msrb.gmra.mxu3 %vm416_vm2, %v4806_v15 }
 0x6be   :  { %1778 = vmatpush.bf16.msrb.mxu2 %v5615_v27  ;;  %v4810_v27 = vld [vmem:[%s5887_s0 + $0x30] sm:$0xff]  ;;  %1826 = vmatpush.bf16.msra.mxu3 %v4811_v38 }
 0x6bf   :  { %v4823_v38 = vld [vmem:[%s5888_s23 + $0x10] sm:$0xff] }
 0x6c2   :  { %1779 = vmatpush.bf16.msrb.mxu2 %v5620_v33 }
 0x6c6   :  { %1780 = vmatpush.bf16.msrb.mxu2 %v1555_v4 }
 0x6ca   :  { %1781 = vmatpush.bf16.msrb.mxu2 %v1554_v10 }
 0x6cd   :  { %4169 = vmatmul.msk.bf16.gmra.mxu2 %vm416_vm2, %v4804_v16  ;;  %4185 = vmatmul.msk.bf16.gmra.mxu3 %vm416_vm2, %v4807_v17 }
 0x6ce   :  { %1782 = vmatpush.bf16.msrb.mxu2 %v1553_v13 }
 0x6dd   :  { %4170 = vmatmul.msk.bf16.gmra.mxu2 %vm416_vm2, %v1575_v23  ;;  %4186 = vmatmul.msk.bf16.gmra.mxu3 %vm416_vm2, %v1631_v24 }
 0x6ed   :  { %4216 = vmatmul.msk.bf16.vlgmr.msrb.gmra.mxu2 %vm416_vm2, %v4809_v25 }
 0x6fd   :  { %4217 = vmatmul.msk.bf16.gmra.mxu2 %vm416_vm2, %v4810_v27 }
 0x70d   :  { %4218 = vmatmul.msk.bf16.gmra.mxu2 %vm416_vm2, %v1765_v26 }
 0x740   :  { %v1594_v30 = vpop.f32.mrf.mxu2  ;;  %v1650_v31 = vpop.f32.mrf.mxu3 }
 0x748   :  { %v1596_v32 = vpop.f32.mrf.mxu2  ;;  %v1652_v33 = vpop.f32.mrf.mxu3 }
 0x749   :  { %v1608_v34 = vpack.c.bf16 %v1596_v32, %v1594_v30  ;;  %v1664_v35 = vpack.c.bf16 %v1652_v33, %v1650_v31  ;;  %v1975_v33 = vpop.permute.xlu1 %1974 }
 0x74b   :  { %4193 = vmatmul.msk.bf16.vlgmr.msrb.gmra.mxu0 %vm1676_vm6, %v1664_v35  ;;  %4200 = vmatmul.msk.bf16.vlgmr.msrb.gmra.mxu1 %vm1676_vm6, %v1608_v34  ;;  %v4824_v35 = vld [vmem:[%s5888_s23 + $0x18] sm:$0xff] }
 0x74c   :  { %2270 = vmatpush.bf16.msrb.mxu1 %v4824_v35 }
 0x750   :  { %v1599_v36 = vpop.f32.mrf.mxu2  ;;  %v1655_v37 = vpop.f32.mrf.mxu3  ;;  %2271 = vmatpush.bf16.msrb.mxu1 %v4823_v38 }
 0x758   :  { %v1601_v39 = vpop.f32.mrf.mxu2  ;;  %v1657_v40 = vpop.f32.mrf.mxu3 }
 0x759   :  { %v1609_v41 = vpack.c.bf16 %v1601_v39, %v1599_v36  ;;  %v1665_v43 = vpack.c.bf16 %v1657_v40, %v1655_v37  ;;  %v2045_v36 = vpop.permute.xlu0 %2044  ;;  %v2010_v37 = vpop.permute.xlu2 %2009 }
 0x75a   :  { %v1965_v40 = vpop.permute.xlu1 %1964 }
 0x75b   :  { %4194 = vmatmul.msk.bf16.gmra.mxu0 %vm1676_vm6, %v1665_v43  ;;  %4201 = vmatmul.msk.bf16.gmra.mxu1 %vm1676_vm6, %v1609_v41 }
 0x760   :  { %v1604_v44 = vpop.f32.mrf.mxu2  ;;  %v1660_v46 = vpop.f32.mrf.mxu3 }
 0x761   :  { %v1610_v47 = vpack.c.bf16 %v1604_v44, %v1604_v44  ;;  %v1666_v48 = vpack.c.bf16 %v1660_v46, %v1660_v46  ;;  %v2000_v41 = vpop.permute.xlu0 %1999  ;;  %v1970_v43 = vpop.permute.xlu2 %1969 }
 0x762   :  { %v2005_v46 = vpop.permute.xlu1 %2004 }
 0x768   :  { %v1606_v49 = vpop.f32.mrf.mxu2  ;;  %v1662_v50 = vpop.f32.mrf.mxu3 }
 0x769   :  { %v1955_v50 = vpop.permute.xlu2 %1954 }
 0x76b   :  { %4195 = vmatmul.msk.bf16.gmra.mxu0 %vm1676_vm6, %v1666_v48  ;;  %4202 = vmatmul.msk.bf16.gmra.mxu1 %vm1676_vm6, %v1610_v47  ;;  %v1960_v47 = vpop.permute.xlu0 %1959 }
 0x770   :  { %v1784_v51 = vpop.f32.mrf.mxu2 }
 0x773   :  { %v1990_v45 = vpop.permute.xlu0 %1989 }
 0x778   :  { %v1786_v53 = vpop.f32.mrf.mxu2 }
 0x779   :  { %v1798_v12 = vpack.c.bf16 %v1786_v53, %v1784_v51 }
 0x77b   :  { %4225 = vmatmul.msk.bf16.vlgmr.msra.gmra.mxu3 %vm1676_vm6, %v1798_v12  ;;  %4241 = vmatmul.msk.bf16.vlgmr.msra.gmra.mxu0 %vm416_vm2, %v4812_v52  ;;  %v2035_v12 = vpop.permute.xlu1 %2034 }
 0x780   :  { %v1789_v54 = vpop.f32.mrf.mxu2 }
 0x788   :  { %v1791_v56 = vpop.f32.mrf.mxu2 }
 0x789   :  { %v1799_v42 = vpack.c.bf16 %v1791_v56, %v1789_v54 }
 0x78b   :  { %4226 = vmatmul.msk.bf16.gmra.mxu3 %vm1676_vm6, %v1799_v42  ;;  %4242 = vmatmul.msk.bf16.gmra.mxu0 %vm416_vm2, %v4813_v55 }
 0x790   :  { %v1794_v57 = vpop.f32.mrf.mxu2 }
 0x791   :  { %v1800_v59 = vpack.c.bf16 %v1794_v57, %v1794_v57 }
 0x798   :  { %v1796_v61 = vpop.f32.mrf.mxu2 }
 0x799   :  { %v2040_v61 = vpop.permute.xlu2 %2039 }
 0x79b   :  { %4227 = vmatmul.msk.bf16.gmra.mxu3 %vm1676_vm6, %v1800_v59  ;;  %4243 = vmatmul.msk.bf16.gmra.mxu0 %vm416_vm2, %v1865_v60 }
 0x7c8   :  { %v1695_v62 = vpop.f32.mrf.mxu0  ;;  %v1733_v63 = vpop.f32.mrf.mxu1 }
 0x7c9   :  { %v1734_v0 = vadd.f32 %v1733_v63, %v1695_v62 }
 0x7d0   :  { %v1697_v1 = vpop.f32.mrf.mxu0  ;;  %v1735_v2 = vpop.f32.mrf.mxu1 }
 0x7d1   :  { %v1736_v52 = vadd.f32 %v1735_v2, %v1697_v1  ;;  %v1995_v2 = vpop.permute.xlu1 %1994 }
 0x7d8   :  { %v1700_v3 = vpop.f32.mrf.mxu0  ;;  %v1738_v4 = vpop.f32.mrf.mxu1 }
 0x7d9   :  { %v1739_v6 = vadd.f32 %v1738_v4, %v1700_v3 }
 0x7e0   :  { %v1702_v7 = vpop.f32.mrf.mxu0  ;;  %v1740_v8 = vpop.f32.mrf.mxu1 }
 0x7e1   :  { %v1741_v48 = vadd.f32 %v1740_v8, %v1702_v7 }
 0x7e8   :  { %v1705_v9 = vpop.f32.mrf.mxu0  ;;  %v1743_v10 = vpop.f32.mrf.mxu1 }
 0x7e9   :  { %v1744_v11 = vadd.f32 %v1743_v10, %v1705_v9 }
 0x7f0   :  { %v1707_v13 = vpop.f32.mrf.mxu0  ;;  %v1745_v14 = vpop.f32.mrf.mxu1 }
 0x7f8   :  { %v1884_v15 = vpop.f32.mrf.mxu0 }
 0x7fe   :  { %v1828_v16 = vpop.f32.mrf.mxu3 }
 0x7ff   :  { %v1842_v17 = vadd.f32 %v1828_v16, %v1734_v0 }
 0x800   :  { %v1886_v18 = vpop.f32.mrf.mxu0 }
 0x801   :  { %v1898_v19 = vpack.c.bf16 %v1886_v18, %v1884_v15  ;;  %v2030_v15 = vpop.permute.xlu0 %2029 }
 0x803   :  { %4250 = vmatmul.msk.bf16.vlgmr.msra.gmra.mxu1 %vm1676_vm6, %v1898_v19  ;;  %v2025_v19 = vpop.permute.xlu2 %2024 }
 0x806   :  { %v1830_v20 = vpop.f32.mrf.mxu3 }
 0x807   :  { %v1843_v54 = vadd.f32 %v1830_v20, %v1736_v52 }
 0x808   :  { %v1889_v21 = vpop.f32.mrf.mxu0 }
 0x809   :  { %v2088_v38 = vpop.permute.xlu0 %2087 }
 0x80e   :  { %v1833_v23 = vpop.f32.mrf.mxu3 }
 0x80f   :  { %v1844_v24 = vadd.f32 %v1833_v23, %v1739_v6 }
 0x810   :  { %v1891_v25 = vpop.f32.mrf.mxu0 }
 0x811   :  { %v1899_v27 = vpack.c.bf16 %v1891_v25, %v1889_v21 }
 0x813   :  { %4251 = vmatmul.msk.bf16.gmra.mxu1 %vm1676_vm6, %v1899_v27 }
 0x816   :  { %v1835_v28 = vpop.f32.mrf.mxu3 }
 0x817   :  { %v1845_v51 = vadd.f32 %v1835_v28, %v1741_v48 }
 0x818   :  { %v1894_v22 = vpop.f32.mrf.mxu0 }
 0x819   :  { %v1900_v29 = vpack.c.bf16 %v1894_v22, %v1894_v22  ;;  %v4815_v22 = vld [vmem:[%s5889_s26] sm:$0xff] }
 0x81e   :  { %v1838_v26 = vpop.f32.mrf.mxu3 }
 0x81f   :  { %v1846_v30 = vadd.f32 %v1838_v26, %v1744_v11  ;;  %v4816_v26 = vld [vmem:[%s5889_s26 + $0x8] sm:$0xff] }
 0x820   :  { %v1896_v31 = vpop.f32.mrf.mxu0 }
 0x823   :  { %4252 = vmatmul.msk.bf16.gmra.mxu1 %vm1676_vm6, %v1900_v29  ;;  %v2061_v29 = vld [vmem:[%s5889_s26 + $0x10] sm:$0xf] }
 0x826   :  { %v1840_v32 = vpop.f32.mrf.mxu3 }
 0x880   :  { %v1928_v34 = vpop.f32.mrf.mxu1 }
 0x881   :  { %v1942_v59 = vadd.f32 %v1928_v34, %v1842_v17 }
 0x883   :  { %v1977_v5 = vadd.f32 %v1955_v50, %v1942_v59  ;;  %v4825_v59 = vld [vmem:[%s5890_s28 + $0x20] sm:$0xff] }
 0x885   :  { %v2012_v13 = vmul.f32 %v1990_v45, %v1977_v5  ;;  %v4818_v45 = vld [vmem:[%s5890_s28 + $0x8] sm:$0xff] }
 0x887   :  { %v2047_v23 = vadd.f32 %v2025_v19, %v2012_v13  ;;  %v4830_v19 = vld [vmem:[%s5890_s28 + $0x38] sm:$0xff] }
 0x888   :  { %v1930_v39 = vpop.f32.mrf.mxu1 }
 0x889   :  { %v1943_v56 = vadd.f32 %v1930_v39, %v1843_v54  ;;  %v2052_v27 = vmax.f32 %v2047_v23, 0.0 }
 0x88b   :  { %v1978_v63 = vadd.f32 %v1960_v47, %v1943_v56 }
 0x88d   :  { %v2013_v7 = vmul.f32 %v1995_v2, %v1978_v63 }
 0x88f   :  { %v2048_v18 = vadd.f32 %v2030_v15, %v2013_v7  ;;  %v4829_v15 = vld [vmem:[%s5890_s28 + $0x30] sm:$0xff] }
 0x890   :  { %v1933_v44 = vpop.f32.mrf.mxu1 }
 0x891   :  { %v1944_v55 = vadd.f32 %v1933_v44, %v1844_v24  ;;  %v2053_v25 = vmax.f32 %v2048_v18, 0.0 }
 0x893   :  { %v1979_v60 = vadd.f32 %v1965_v40, %v1944_v55  ;;  %v2062_v28 = vpack.c.bf16 %v2053_v25, %v2052_v27  ;;  %v4831_v25 = vld [vmem:[%s5888_s23 + $0x30] sm:$0xff] }
 0x895   :  { %v2014_v1 = vmul.f32 %v2000_v41, %v1979_v60  ;;  %v5680_v10 = vpack.c.bf16 %v1979_v60, %v1978_v63  ;;  %v4826_v60 = vld [vmem:[%s5890_s28 + $0x28] sm:$0xff] }
 0x897   :  { %v2049_v14 = vadd.f32 %v2035_v12, %v2014_v1  ;;  %v4827_v1 = vld [vmem:[%s5888_s23 + $0x20] sm:$0xff] }
 0x898   :  { %v1935_v49 = vpop.f32.mrf.mxu1 }
 0x899   :  { %v1945_v53 = vadd.f32 %v1935_v49, %v1845_v51  ;;  %v2054_v21 = vmax.f32 %v2049_v14, 0.0 }
 0x89b   :  { %v1980_v42 = vadd.f32 %v1970_v43, %v1945_v53 }
 0x89d   :  { %v2015_v0 = vmul.f32 %v2005_v46, %v1980_v42 }
 0x89f   :  { %v2050_v9 = vadd.f32 %v2040_v61, %v2015_v0  ;;  %v4820_v61 = vld [vmem:[%s5888_s23 + $0x8] sm:$0xff] }
 0x8a0   :  { %v1938_v57 = vpop.f32.mrf.mxu1 }
 0x8a1   :  { %v1946_v58 = vadd.f32 %v1938_v57, %v1846_v30  ;;  %v2055_v17 = vmax.f32 %v2050_v9, 0.0  ;;  %v2104_v30 = vunpack.c.l.b16 %v2061_v29  ;;  %v4821_v57 = vld [vmem:[%s5890_s28 + $0x10] sm:$0xff] }
 0x8a3   :  { %v1981_v62 = vadd.f32 %v1975_v33, %v1946_v58  ;;  %v2063_v24 = vpack.c.bf16 %v2055_v17, %v2054_v21  ;;  %v2107_v31 = vpack.c.b16 %v2104_v30, %v2104_v30  ;;  %v4822_v58 = vld [vmem:[%s5890_s28 + $0x18] sm:$0xff] }
 0x8a5   :  { %v2016_v3 = vmul.f32 %v2010_v37, %v1981_v62  ;;  %v5675_v4 = vpack.c.bf16 %v1981_v62, %v1980_v42  ;;  %v2093_v37 = vpop.permute.xlu1 %2092  ;;  %v4817_v42 = vld [vmem:[%s5890_s28] sm:$0xff] }
 0x8a6   :  { %v4819_v62 = vld [vmem:[%s5888_s23] sm:$0xff] }
 0x8a7   :  { %2176 = vmatpush.bf16.msrb.mxu3 %v5675_v4  ;;  %2222 = vmatpush.bf16.msrb.mxu0 %v5675_v4  ;;  %v2051_v6 = vadd.f32 %v2045_v36, %v2016_v3  ;;  %v2083_v36 = vpop.permute.xlu2 %2082  ;;  %v4828_v3 = vld [vmem:[%s5888_s23 + $0x28] sm:$0xff] }
 0x8a8   :  { %2432 = vmatpush.bf16.msra.mxu1 %v5675_v4  ;;  %v1940_v8 = vpop.f32.mrf.mxu1 }
 0x8a9   :  { %v2056_v11 = vmax.f32 %v2051_v6, 0.0 }
 0x8ab   :  { %2177 = vmatpush.bf16.msrb.mxu3 %v5680_v10  ;;  %2223 = vmatpush.bf16.msrb.mxu0 %v5680_v10  ;;  %v2064_v16 = vpack.c.bf16 %v2056_v11, %v2056_v11 }
 0x8ac   :  { %2433 = vmatpush.bf16.msra.mxu1 %v5680_v10 }
 0x8ad   :  { %v2118_v20 = vsel %vm361_vm0, %v2064_v16, 0  ;;  %v2073_v50 = vpop.permute.xlu1 %2072 }
 0x8ae   :  { %2125 = vmatpush.bf16.msra.mxu2 %v2118_v20 }
 0x8af   :  { %v2078_v46 = vpop.permute.xlu2 %2077 }
 0x8b2   :  { %2126 = vmatpush.bf16.msra.mxu2 %v2063_v24  ;;  %v4832_v24 = vld [vmem:[%s5888_s23 + $0x38] sm:$0xff] }
 0x8b6   :  { %2127 = vmatpush.bf16.msra.mxu2 %v2062_v28 }
 0x8b9   :  { %4261 = vmatmul.msk.bf16.vlgmr.msra.gmra.mxu2 %vm351_vm1, %v4815_v22 }
 0x8ba   :  { %2307 = vmatpush.bf16.msrb.mxu2 %v4820_v61 }
 0x8be   :  { %2308 = vmatpush.bf16.msrb.mxu2 %v4819_v62 }
 0x8c2   :  { %2479 = vmatpush.bf16.msra.mxu2 %v4832_v24 }
 0x8c6   :  { %2480 = vmatpush.bf16.msra.mxu2 %v4831_v25 }
 0x8c9   :  { %4262 = vmatmul.msk.bf16.gmra.mxu2 %vm351_vm1, %v4816_v26 }
 0x8d9   :  { %4263 = vmatmul.msk.bf16.gmra.mxu2 %vm351_vm1, %v2107_v31 }
 0x93c   :  { %v2129_v32 = vpop.f32.mrf.mxu2 }
 0x93d   :  { %v2130_v51 = vadd.f32 %v2129_v32, %v2073_v50 }
 0x93f   :  { %v2143_v55 = vmax.f32 %v2130_v51, 0.0  ;;  %v4843_v51 = vld [vmem:[#allocation2 + $0x20] sm:$0xff] }
 0x944   :  { %v2131_v33 = vpop.f32.mrf.mxu2 }
 0x945   :  { %v2132_v47 = vadd.f32 %v2131_v33, %v2078_v46 }
 0x947   :  { %v2144_v12 = vmax.f32 %v2132_v47, 0.0 }
 0x949   :  { %v2148_v56 = vpack.c.bf16 %v2144_v12, %v2143_v55 }
 0x94c   :  { %v2134_v34 = vpop.f32.mrf.mxu2 }
 0x94d   :  { %v2135_v43 = vadd.f32 %v2134_v34, %v2083_v36  ;;  %v2513_v36 = vpop.permute.xlu0 %2512 }
 0x94f   :  { %v2145_v52 = vmax.f32 %v2135_v43, 0.0 }
 0x954   :  { %v2136_v35 = vpop.f32.mrf.mxu2 }
 0x955   :  { %v2137_v40 = vadd.f32 %v2136_v35, %v2088_v38 }
 0x957   :  { %v2146_v48 = vmax.f32 %v2137_v40, 0.0  ;;  %v4846_v40 = vld [vmem:[#allocation2 + $0x38] sm:$0xff] }
 0x959   :  { %v2149_v54 = vpack.c.bf16 %v2146_v48, %v2145_v52  ;;  %v4844_v48 = vld [vmem:[#allocation2 + $0x28] sm:$0xff] }
 0x95c   :  { %v2139_v39 = vpop.f32.mrf.mxu2 }
 0x95d   :  { %v2140_v41 = vadd.f32 %v2139_v39, %v2093_v37  ;;  %v2518_v37 = vpop.permute.xlu1 %2517  ;;  %v2541_v39 = vpop.permute.xlu2 %2540 }
 0x95f   :  { %v2147_v44 = vmax.f32 %v2140_v41, 0.0  ;;  %v4845_v41 = vld [vmem:[#allocation2 + $0x30] sm:$0xff] }
 0x961   :  { %v2150_v49 = vpack.c.bf16 %v1977_v5, %v2147_v44  ;;  %v2546_v44 = vpop.permute.xlu0 %2545 }
 0x963   :  { %2178 = vmatpush.bf16.msrb.mxu3 %v2150_v49  ;;  %2224 = vmatpush.bf16.msrb.mxu0 %v2150_v49 }
 0x964   :  { %2434 = vmatpush.bf16.msra.mxu1 %v2150_v49  ;;  %v2141_v53 = vpop.f32.mrf.mxu2 }
 0x965   :  { %v2503_v46 = vpop.permute.xlu1 %2502 }
 0x967   :  { %2179 = vmatpush.bf16.msrb.mxu3 %v2149_v54  ;;  %2225 = vmatpush.bf16.msrb.mxu0 %v2149_v54 }
 0x968   :  { %2435 = vmatpush.bf16.msra.mxu1 %v2149_v54 }
 0x96b   :  { %2180 = vmatpush.bf16.msrb.mxu3 %v2148_v56  ;;  %2226 = vmatpush.bf16.msrb.mxu0 %v2148_v56 }
 0x96c   :  { %2436 = vmatpush.bf16.msra.mxu1 %v2148_v56 }
 0x96d   :  { %v2574_v55 = vpop.permute.xlu1 %2573 }
 0x96e   :  { %4272 = vmatmul.msk.bf16.vlgmr.msrb.gmra.mxu3 %vm416_vm2, %v4817_v42  ;;  %4286 = vmatmul.msk.bf16.vlgmr.msrb.gmra.mxu0 %vm416_vm2, %v4821_v57 }
 0x96f   :  { %2344 = vmatpush.bf16.msra.mxu3 %v5675_v4  ;;  %2391 = vmatpush.bf16.msra.mxu0 %v4828_v3 }
 0x973   :  { %2345 = vmatpush.bf16.msra.mxu3 %v5680_v10  ;;  %2392 = vmatpush.bf16.msra.mxu0 %v4827_v1 }
 0x977   :  { %2346 = vmatpush.bf16.msra.mxu3 %v2150_v49  ;;  %v2508_v49 = vpop.permute.xlu2 %2507 }
 0x97b   :  { %2347 = vmatpush.bf16.msra.mxu3 %v2149_v54 }
 0x97e   :  { %4273 = vmatmul.msk.bf16.gmra.mxu3 %vm416_vm2, %v4818_v45  ;;  %4287 = vmatmul.msk.bf16.gmra.mxu0 %vm416_vm2, %v4822_v58 }
 0x97f   :  { %2348 = vmatpush.bf16.msra.mxu3 %v2148_v56  ;;  %v2569_v56 = vpop.permute.xlu0 %2568  ;;  %v2531_v42 = vpop.permute.xlu2 %2530 }
 0x987   :  { %v2536_v3 = vpop.permute.xlu0 %2535 }
 0x98e   :  { %4324 = vmatmul.msk.bf16.vlgmr.msra.gmra.mxu3 %vm416_vm2, %v4825_v59 }
 0x99e   :  { %4325 = vmatmul.msk.bf16.gmra.mxu3 %vm416_vm2, %v4826_v60 }
 0x9eb   :  { %v2228_v63 = vpop.f32.mrf.mxu0 }
 0x9f1   :  { %v2182_v0 = vpop.f32.mrf.mxu3 }
 0x9f3   :  { %v2230_v4 = vpop.f32.mrf.mxu0 }
 0x9f4   :  { %v2238_v5 = vpack.c.bf16 %v2230_v4, %v2228_v63 }
 0x9f6   :  { %4300 = vmatmul.msk.bf16.vlgmr.msrb.gmra.mxu1 %vm2257_vm7, %v2238_v5 }
 0x9f9   :  { %v2184_v2 = vpop.f32.mrf.mxu3 }
 0x9fa   :  { %v2192_v6 = vpack.c.bf16 %v2184_v2, %v2182_v0  ;;  %v2559_v0 = vpop.permute.xlu1 %2558 }
 0x9fb   :  { %v2233_v7 = vpop.f32.mrf.mxu0 }
 0x9fc   :  { %4310 = vmatmul.msk.bf16.vlgmr.msrb.gmra.mxu2 %vm2257_vm7, %v2192_v6  ;;  %v2564_v6 = vpop.permute.xlu2 %2563 }
 0x9fd   :  { %2792 = vmatpush.bf16.msrb.mxu2 %v4846_v40 }
 0xa01   :  { %v2187_v8 = vpop.f32.mrf.mxu3  ;;  %2793 = vmatpush.bf16.msrb.mxu2 %v4845_v41 }
 0xa03   :  { %v2235_v9 = vpop.f32.mrf.mxu0 }
 0xa04   :  { %v2239_v10 = vpack.c.bf16 %v2235_v9, %v2233_v7 }
 0xa05   :  { %2794 = vmatpush.bf16.msrb.mxu2 %v4844_v48 }
 0xa06   :  { %4301 = vmatmul.msk.bf16.gmra.mxu1 %vm2257_vm7, %v2239_v10 }
 0xa09   :  { %v2189_v11 = vpop.f32.mrf.mxu3  ;;  %2795 = vmatpush.bf16.msrb.mxu2 %v4843_v51 }
 0xa0a   :  { %v2193_v13 = vpack.c.bf16 %v2189_v11, %v2187_v8 }
 0xa0c   :  { %4311 = vmatmul.msk.bf16.gmra.mxu2 %vm2257_vm7, %v2193_v13 }
 0xa11   :  { %v2350_v14 = vpop.f32.mrf.mxu3 }
 0xa16   :  { %4352 = vmatmul.msk.bf16.vlgmr.msra.gmra.mxu1 %vm416_vm2, %v4829_v15 }
 0xa19   :  { %v2352_v16 = vpop.f32.mrf.mxu3 }
 0xa1a   :  { %v2360_v17 = vpack.c.bf16 %v2352_v16, %v2350_v14 }
 0xa1c   :  { %4338 = vmatmul.msk.bf16.vlgmr.msra.gmra.mxu0 %vm2257_vm7, %v2360_v17 }
 0xa21   :  { %v2355_v18 = vpop.f32.mrf.mxu3 }
 0xa26   :  { %4353 = vmatmul.msk.bf16.gmra.mxu1 %vm416_vm2, %v4830_v19 }
 0xa29   :  { %v2357_v20 = vpop.f32.mrf.mxu3 }
 0xa2a   :  { %v2361_v21 = vpack.c.bf16 %v2357_v20, %v2355_v18 }
 0xa2c   :  { %4339 = vmatmul.msk.bf16.gmra.mxu0 %vm2257_vm7, %v2361_v21 }
 0xa73   :  { %v2273_v23 = vpop.f32.mrf.mxu1 }
 0xa7b   :  { %v2275_v27 = vpop.f32.mrf.mxu1 }
 0xa7f   :  { %v2310_v34 = vpop.f32.mrf.mxu2 }
 0xa80   :  { %v2311_v50 = vadd.f32 %v2310_v34, %v2273_v23  ;;  %v2607_v34 = vpop.permute.xlu0 %2606 }
 0xa83   :  { %v2278_v28 = vpop.f32.mrf.mxu1 }
 0xa87   :  { %v2312_v35 = vpop.f32.mrf.mxu2 }
 0xa88   :  { %v2313_v57 = vadd.f32 %v2312_v35, %v2275_v27 }
 0xa8b   :  { %v2280_v22 = vpop.f32.mrf.mxu1 }
 0xa8f   :  { %v2315_v38 = vpop.f32.mrf.mxu2 }
 0xa90   :  { %v2316_v4 = vadd.f32 %v2315_v38, %v2278_v28  ;;  %v2602_v38 = vpop.permute.xlu0 %2601 }
 0xa93   :  { %v2438_v26 = vpop.f32.mrf.mxu1 }
 0xa97   :  { %v2317_v47 = vpop.f32.mrf.mxu2 }
 0xa98   :  { %v2318_v16 = vadd.f32 %v2317_v47, %v2280_v22 }
 0xa99   :  { %v2394_v43 = vpop.f32.mrf.mxu0 }
 0xa9a   :  { %v2404_v52 = vadd.f32 %v2394_v43, %v2311_v50  ;;  %v2597_v43 = vpop.permute.xlu2 %2596 }
 0xa9b   :  { %v2440_v29 = vpop.f32.mrf.mxu1 }
 0xa9c   :  { %v2448_v30 = vpack.c.bf16 %v2440_v29, %v2438_v26 }
 0xa9e   :  { %4366 = vmatmul.msk.bf16.vlgmr.msra.gmra.mxu2 %vm2257_vm7, %v2448_v30  ;;  %v4833_v30 = vld [vmem:[%s5891_s1] sm:$0xff] }
 0xaa1   :  { %v2396_v53 = vpop.f32.mrf.mxu0 }
 0xaa2   :  { %v2405_v58 = vadd.f32 %v2396_v53, %v2313_v57  ;;  %v4841_v53 = vld [vmem:[%s5892_s2 + $0x10] sm:$0xff] }
 0xaa3   :  { %v2443_v31 = vpop.f32.mrf.mxu1  ;;  %v4839_v57 = vld [vmem:[#allocation2 + $0x10] sm:$0xff] }
 0xaa9   :  { %v2399_v62 = vpop.f32.mrf.mxu0 }
 0xaaa   :  { %v2406_v7 = vadd.f32 %v2399_v62, %v2316_v4 }
 0xaab   :  { %v2445_v32 = vpop.f32.mrf.mxu1 }
 0xaac   :  { %v2449_v33 = vpack.c.bf16 %v2445_v32, %v2443_v31  ;;  %v4834_v31 = vld [vmem:[%s5891_s1 + $0x8] sm:$0xff] }
 0xaae   :  { %4367 = vmatmul.msk.bf16.gmra.mxu2 %vm2257_vm7, %v2449_v33 }
 0xab1   :  { %v2401_v15 = vpop.f32.mrf.mxu0 }
 0xab2   :  { %v2407_v18 = vadd.f32 %v2401_v15, %v2318_v16 }
 0xb21   :  { %v2482_v12 = vpop.f32.mrf.mxu2 }
 0xb22   :  { %v2492_v54 = vadd.f32 %v2482_v12, %v2404_v52  ;;  %v4835_v52 = vld [vmem:[%s5892_s2] sm:$0xff]  ;;  %v4836_v12 = vld [vmem:[%s5892_s2 + $0x8] sm:$0xff] }
 0xb24   :  { %v2520_v45 = vadd.f32 %v2503_v46, %v2492_v54  ;;  %v4842_v54 = vld [vmem:[%s5892_s2 + $0x18] sm:$0xff] }
 0xb26   :  { %v2548_v60 = vmul.f32 %v2531_v42, %v2520_v45  ;;  %v4848_v42 = vld [vmem:[%s5892_s2 + $0x28] sm:$0xff] }
 0xb28   :  { %v2576_v2 = vadd.f32 %v2559_v0, %v2548_v60  ;;  %v4851_v60 = vld [vmem:[#allocation2 + $0x50] sm:$0xff]  ;;  %v4849_v0 = vld [vmem:[#allocation2 + $0x40] sm:$0xff] }
 0xb29   :  { %v2484_v59 = vpop.f32.mrf.mxu2 }
 0xb2a   :  { %v2493_v61 = vadd.f32 %v2484_v59, %v2405_v58  ;;  %v2580_v11 = vmax.f32 %v2576_v2, 0.0  ;;  %v4837_v58 = vld [vmem:[#allocation2] sm:$0xff]  ;;  %v4852_v59 = vld [vmem:[#allocation2 + $0x58] sm:$0xff] }
 0xb2c   :  { %v2521_v63 = vadd.f32 %v2508_v49, %v2493_v61 }
 0xb2e   :  { %v2549_v5 = vmul.f32 %v2536_v3, %v2521_v63  ;;  %v5724_v1 = vpack.c.bf16 %v2521_v63, %v2520_v45  ;;  %v4838_v45 = vld [vmem:[#allocation2 + $0x8] sm:$0xff] }
 0xb2f   :  { %v4850_v63 = vld [vmem:[#allocation2 + $0x48] sm:$0xff] }
 0xb30   :  { %v2577_v8 = vadd.f32 %v2564_v6, %v2549_v5 }
 0xb31   :  { %v2487_v9 = vpop.f32.mrf.mxu2 }
 0xb32   :  { %v2494_v10 = vadd.f32 %v2487_v9, %v2406_v7  ;;  %v2581_v13 = vmax.f32 %v2577_v8, 0.0 }
 0xb34   :  { %v2588_v14 = vpack.c.bf16 %v2581_v13, %v2580_v11  ;;  %v2522_v17 = vadd.f32 %v2513_v36, %v2494_v10  ;;  %v2612_v36 = vpop.permute.xlu1 %2611  ;;  %v4853_v13 = vld [vmem:[%s5892_s2 + $0x30] sm:$0xff] }
 0xb36   :  { %v2550_v20 = vmul.f32 %v2541_v39, %v2522_v17 }
 0xb38   :  { %v2578_v24 = vadd.f32 %v2569_v56, %v2550_v20  ;;  %v4847_v56 = vld [vmem:[%s5892_s2 + $0x20] sm:$0xff]  ;;  %v4858_v20 = vld [vmem:[#allocation2 + $0x78] sm:$0xff] }
 0xb39   :  { %v2489_v19 = vpop.f32.mrf.mxu2 }
 0xb3a   :  { %v2495_v21 = vadd.f32 %v2489_v19, %v2407_v18  ;;  %v2582_v26 = vmax.f32 %v2578_v24, 0.0  ;;  %v4856_v24 = vld [vmem:[#allocation2 + $0x68] sm:$0xff] }
 0xb3c   :  { %v2523_v23 = vadd.f32 %v2518_v37, %v2495_v21  ;;  %v4857_v21 = vld [vmem:[#allocation2 + $0x70] sm:$0xff] }
 0xb3e   :  { %v2551_v25 = vmul.f32 %v2546_v44, %v2523_v23  ;;  %v2656_v27 = vpack.c.bf16 %v2523_v23, %v2522_v17  ;;  %v4854_v17 = vld [vmem:[%s5892_s2 + $0x38] sm:$0xff] }
 0xb40   :  { %v2579_v28 = vadd.f32 %v2574_v55, %v2551_v25  ;;  %2682 = vmatpush.bf16.msrb.mxu0 %v2656_v27  ;;  %2732 = vmatpush.bf16.msrb.mxu1 %v2656_v27  ;;  %v4840_v55 = vld [vmem:[#allocation2 + $0x18] sm:$0xff]  ;;  %v4855_v25 = vld [vmem:[#allocation2 + $0x60] sm:$0xff] }
 0xb41   :  { %2985 = vmatpush.bf16.msra.mxu2 %v2656_v27 }
 0xb42   :  { %v2583_v29 = vmax.f32 %v2579_v28, 0.0 }
 0xb44   :  { %2683 = vmatpush.bf16.msrb.mxu0 %v5724_v1  ;;  %2733 = vmatpush.bf16.msrb.mxu1 %v5724_v1  ;;  %v2589_v22 = vpack.c.bf16 %v2583_v29, %v2582_v26 }
 0xb45   :  { %2986 = vmatpush.bf16.msra.mxu2 %v5724_v1 }
 0xb46   :  { %2636 = vmatpush.bf16.msrb.mxu3 %v2589_v22 }
 0xb4a   :  { %2637 = vmatpush.bf16.msrb.mxu3 %v2588_v14 }
 0xb4d   :  { %4376 = vmatmul.msk.bf16.vlgmr.msrb.gmra.mxu3 %vm2257_vm7, %v4833_v30 }
 0xb4e   :  { %2841 = vmatpush.bf16.msra.mxu3 %v4840_v55 }
 0xb52   :  { %2842 = vmatpush.bf16.msra.mxu3 %v4839_v57 }
 0xb56   :  { %2843 = vmatpush.bf16.msra.mxu3 %v4838_v45 }
 0xb5a   :  { %2844 = vmatpush.bf16.msra.mxu3 %v4837_v58 }
 0xb5d   :  { %4377 = vmatmul.msk.bf16.gmra.mxu3 %vm2257_vm7, %v4834_v31 }
 0xb5e   :  { %3045 = vmatpush.bf16.msrb.mxu3 %v4858_v20 }
 0xb62   :  { %3046 = vmatpush.bf16.msrb.mxu3 %v4857_v21 }
 0xb66   :  { %3047 = vmatpush.bf16.msrb.mxu3 %v4856_v24 }
 0xb6a   :  { %3048 = vmatpush.bf16.msrb.mxu3 %v4855_v25 }
 0xbd0   :  { %v2639_v32 = vpop.f32.mrf.mxu3 }
 0xbd1   :  { %v2640_v44 = vadd.f32 %v2639_v32, %v2597_v43  ;;  %v4557_v43 = vld [vmem:[#allocation5 + $0xd0] sm:$0xf] }
 0xbd3   :  { %v2649_v50 = vmax.f32 %v2640_v44, 0.0  ;;  %v4888_v44 = vld [vmem:[#allocation5 + $0xd4] sm:$0xf0] }
 0xbd8   :  { %v2641_v33 = vpop.f32.mrf.mxu3 }
 0xbd9   :  { %v2642_v40 = vadd.f32 %v2641_v33, %v2602_v38 }
 0xbdb   :  { %v2650_v48 = vmax.f32 %v2642_v40, 0.0  ;;  %v4890_v40 = vld [vmem:[#allocation5 + $0xe4] sm:$0xf0] }
 0xbdd   :  { %v2653_v51 = vpack.c.bf16 %v2650_v48, %v2649_v50  ;;  %v4886_v48 = vld [vmem:[#allocation5 + $0xc4] sm:$0xf0] }
 0xbe0   :  { %v2644_v35 = vpop.f32.mrf.mxu3 }
 0xbe1   :  { %v2645_v37 = vadd.f32 %v2644_v35, %v2607_v34  ;;  %v4573_v35 = vld [vmem:[#allocation5 + $0xf0] sm:$0xf] }
 0xbe3   :  { %v2651_v46 = vmax.f32 %v2645_v37, 0.0 }
 0xbe8   :  { %v2646_v39 = vpop.f32.mrf.mxu3 }
 0xbe9   :  { %v2647_v41 = vadd.f32 %v2646_v39, %v2612_v36  ;;  %v4892_v36 = vld [vmem:[#allocation5 + $0xf4] sm:$0xf0]  ;;  %v4565_v39 = vld [vmem:[#allocation5 + $0xe0] sm:$0xf] }
 0xbea   :  { %v4574_v37 = vor.u32 %v4892_v36, %v4573_v35 }
 0xbeb   :  { %v2652_v47 = vmax.f32 %v2647_v41, 0.0  ;;  %v4566_v41 = vor.u32 %v4890_v40, %v4565_v39 }
 0xbed   :  { %v2654_v49 = vpack.c.bf16 %v2652_v47, %v2651_v46  ;;  %v4558_v46 = vor.u32 %v4888_v44, %v4557_v43  ;;  %v4549_v47 = vld [vmem:[#allocation5 + $0xc0] sm:$0xf] }
 0xbee   :  { %v4550_v50 = vor.u32 %v4886_v48, %v4549_v47 }
 0xbef   :  { %2684 = vmatpush.bf16.msrb.mxu0 %v2654_v49  ;;  %2734 = vmatpush.bf16.msrb.mxu1 %v2654_v49 }
 0xbf0   :  { %2987 = vmatpush.bf16.msra.mxu2 %v2654_v49 }
 0xbf3   :  { %2685 = vmatpush.bf16.msrb.mxu0 %v2653_v51  ;;  %2735 = vmatpush.bf16.msrb.mxu1 %v2653_v51 }
 0xbf4   :  { %2988 = vmatpush.bf16.msra.mxu2 %v2653_v51 }
 0xbf6   :  { %4386 = vmatmul.msk.bf16.vlgmr.msrb.gmra.mxu0 %vm2671_vm8, %v4835_v52  ;;  %4400 = vmatmul.msk.bf16.vlgmr.msrb.gmra.mxu1 %vm2671_vm8, %v4841_v53  ;;  %v3109_v53 = vpop.permute.xlu0 %3108 }
 0xbf7   :  { %2881 = vmatpush.bf16.msra.mxu0 %v2656_v27  ;;  %2941 = vmatpush.bf16.msra.mxu1 %v4852_v59 }
 0xbfb   :  { %2882 = vmatpush.bf16.msra.mxu0 %v5724_v1  ;;  %2942 = vmatpush.bf16.msra.mxu1 %v4851_v60 }
 0xbff   :  { %2883 = vmatpush.bf16.msra.mxu0 %v2654_v49  ;;  %2943 = vmatpush.bf16.msra.mxu1 %v4850_v63  ;;  %v5764_v49 = vpop.permute.xlu2 %3085 }
 0xc03   :  { %2884 = vmatpush.bf16.msra.mxu0 %v2653_v51  ;;  %2944 = vmatpush.bf16.msra.mxu1 %v4849_v0  ;;  %v3081_v51 = vpop.permute.xlu1 %3080  ;;  %v3076_v0 = vpop.permute.xlu0 %3075 }
 0xc06   :  { %4387 = vmatmul.msk.bf16.gmra.mxu0 %vm2671_vm8, %v4836_v12  ;;  %4401 = vmatmul.msk.bf16.gmra.mxu1 %vm2671_vm8, %v4842_v54  ;;  %v4541_v12 = vld [vmem:[#allocation5 + $0xb0] sm:$0xf]  ;;  %v4884_v54 = vld [vmem:[#allocation5 + $0xb4] sm:$0xf0] }
 0xc07   :  { %v4542_v55 = vor.u32 %v4884_v54, %v4541_v12  ;;  %v3071_v58 = vpop.permute.xlu2 %3070 }
 0xc0b   :  { %v3114_v59 = vpop.permute.xlu1 %3113 }
 0xc16   :  { %4450 = vmatmul.msk.bf16.vlgmr.msra.gmra.mxu0 %vm2671_vm8, %v4847_v56  ;;  %v4533_v56 = vld [vmem:[#allocation5 + $0xa0] sm:$0xf] }
 0xc26   :  { %4451 = vmatmul.msk.bf16.gmra.mxu0 %vm2671_vm8, %v4848_v42  ;;  %v4882_v42 = vld [vmem:[#allocation5 + $0xa4] sm:$0xf0] }
 0xc27   :  { %v4534_v57 = vor.u32 %v4882_v42, %v4533_v56 }
 0xc73   :  { %v2687_v61 = vpop.f32.mrf.mxu0  ;;  %v2737_v62 = vpop.f32.mrf.mxu1 }
 0xc7b   :  { %v2689_v3 = vpop.f32.mrf.mxu0  ;;  %v2739_v4 = vpop.f32.mrf.mxu1 }
 0xc7c   :  { %v2697_v5 = vpack.c.bf16 %v2689_v3, %v2687_v61  ;;  %v2747_v1 = vpack.c.bf16 %v2739_v4, %v2737_v62  ;;  %v4525_v61 = vld [vmem:[#allocation5 + $0x90] sm:$0xf]  ;;  %v4880_v62 = vld [vmem:[#allocation5 + $0x94] sm:$0xf0]  ;;  %v4517_v3 = vld [vmem:[#allocation5 + $0x80] sm:$0xf] }
 0xc7d   :  { %v4526_v63 = vor.u32 %v4880_v62, %v4525_v61  ;;  %v4878_v4 = vld [vmem:[#allocation5 + $0x84] sm:$0xf0] }
 0xc7e   :  { %4418 = vmatmul.msk.bf16.vlgmr.msrb.gmra.mxu2 %vm2671_vm8, %v2747_v1  ;;  %4436 = vmatmul.msk.bf16.vlgmr.msra.gmra.mxu3 %vm2671_vm8, %v2697_v5  ;;  %v4518_v1 = vor.u32 %v4878_v4, %v4517_v3 }
 0xc7f   :  { %3375 = vmatpush.bf16.msra.mxu3 %v4574_v37 }
 0xc83   :  { %v2692_v2 = vpop.f32.mrf.mxu0  ;;  %v2742_v6 = vpop.f32.mrf.mxu1  ;;  %3376 = vmatpush.bf16.msra.mxu3 %v4566_v41 }
 0xc87   :  { %3377 = vmatpush.bf16.msra.mxu3 %v4558_v46 }
 0xc8b   :  { %v2694_v7 = vpop.f32.mrf.mxu0  ;;  %v2744_v8 = vpop.f32.mrf.mxu1  ;;  %3378 = vmatpush.bf16.msra.mxu3 %v4550_v50 }
 0xc8c   :  { %v2698_v9 = vpack.c.bf16 %v2694_v7, %v2692_v2  ;;  %v2748_v10 = vpack.c.bf16 %v2744_v8, %v2742_v6 }
 0xc8e   :  { %4419 = vmatmul.msk.bf16.gmra.mxu2 %vm2671_vm8, %v2748_v10  ;;  %4437 = vmatmul.msk.bf16.gmra.mxu3 %vm2671_vm8, %v2698_v9  ;;  %v3142_v9 = vpop.permute.xlu2 %3141  ;;  %v3137_v10 = vpop.permute.xlu1 %3136 }
 0xc8f   :  { %3379 = vmatpush.bf16.msra.mxu3 %v4542_v55 }
 0xc93   :  { %v2886_v11 = vpop.f32.mrf.mxu0  ;;  %3380 = vmatpush.bf16.msra.mxu3 %v4534_v57 }
 0xc96   :  { %v3127_v21 = vpop.permute.xlu2 %3126 }
 0xc97   :  { %3381 = vmatpush.bf16.msra.mxu3 %v4526_v63 }
 0xc9b   :  { %v2888_v14 = vpop.f32.mrf.mxu0  ;;  %3382 = vmatpush.bf16.msra.mxu3 %v4518_v1  ;;  %v4639_v1 = vld [vmem:[#allocation5 + $0x78] sm:$0xf0] }
 0xc9c   :  { %v2896_v15 = vpack.c.bf16 %v2888_v14, %v2886_v11  ;;  %v3099_v11 = vpop.permute.xlu0 %3098 }
 0xc9e   :  { %4468 = vmatmul.msk.bf16.vlgmr.msra.gmra.mxu1 %vm2671_vm8, %v2896_v15  ;;  %4482 = vmatmul.msk.bf16.vlgmr.msra.gmra.mxu2 %vm2671_vm8, %v4853_v13  ;;  %v3180_v42 = vpop.permute.xlu2 %3179 }
 0xca3   :  { %v2891_v16 = vpop.f32.mrf.mxu0 }
 0xcab   :  { %v2893_v18 = vpop.f32.mrf.mxu0 }
 0xcac   :  { %v2897_v19 = vpack.c.bf16 %v2893_v18, %v2891_v16 }
 0xcae   :  { %4469 = vmatmul.msk.bf16.gmra.mxu1 %vm2671_vm8, %v2897_v19  ;;  %4483 = vmatmul.msk.bf16.gmra.mxu2 %vm2671_vm8, %v4854_v17 }
 0xd01   :  { %v2797_v23 = vpop.f32.mrf.mxu2  ;;  %v2846_v34 = vpop.f32.mrf.mxu3 }
 0xd02   :  { %v2847_v5 = vadd.f32 %v2846_v34, %v2797_v23  ;;  %v3104_v23 = vpop.permute.xlu1 %3103 }
 0xd09   :  { %v5756_v27 = vpop.f32.mrf.mxu2  ;;  %v2848_v38 = vpop.f32.mrf.mxu3 }
 0xd0a   :  { %v2849_v13 = vadd.f32 %v2848_v38, %v5756_v27  ;;  %v3175_v55 = vpop.permute.xlu1 %3174 }
 0xd11   :  { %v5758_v28 = vpop.f32.mrf.mxu2  ;;  %v2851_v52 = vpop.f32.mrf.mxu3 }
 0xd12   :  { %v2852_v24 = vadd.f32 %v2851_v52, %v5758_v28 }
 0xd19   :  { %v5760_v26 = vpop.f32.mrf.mxu2  ;;  %v2853_v60 = vpop.f32.mrf.mxu3 }
 0xd1a   :  { %v2854_v38 = vadd.f32 %v2853_v60, %v5760_v26 }
 0xd1b   :  { %v2946_v45 = vpop.f32.mrf.mxu1 }
 0xd1c   :  { %v2956_v2 = vadd.f32 %v2946_v45, %v2847_v5  ;;  %v3170_v45 = vpop.permute.xlu1 %3169  ;;  %v4875_v5 = vld [vmem:[#allocation5 + $0x74] sm:$0xf] }
 0xd21   :  { %v2990_v29 = vpop.f32.mrf.mxu2 }
 0xd23   :  { %v2948_v6 = vpop.f32.mrf.mxu1 }
 0xd24   :  { %v2957_v15 = vadd.f32 %v2948_v6, %v2849_v13  ;;  %v4642_v6 = vor.u32 %v4875_v5, %v4639_v1  ;;  %v4881_v5 = vld [vmem:[#allocation5 + $0xa4] sm:$0xf]  ;;  %v4535_v1 = vld [vmem:[#allocation5 + $0xa8] sm:$0xf0] }
 0xd29   :  { %v2992_v22 = vpop.f32.mrf.mxu2 }
 0xd2a   :  { %v3000_v30 = vpack.c.bf16 %v2992_v22, %v2990_v29 }
 0xd2b   :  { %v2951_v19 = vpop.f32.mrf.mxu1 }
 0xd2c   :  { %4500 = vmatmul.msk.bf16.vlgmr.msrb.gmra.mxu3 %vm2671_vm8, %v3000_v30  ;;  %v3132_v30 = vpop.permute.xlu0 %3131 }
 0xd31   :  { %v2995_v31 = vpop.f32.mrf.mxu2 }
 0xd33   :  { %v2953_v37 = vpop.f32.mrf.mxu1 }
 0xd34   :  { %v2959_v40 = vadd.f32 %v2953_v37, %v2854_v38  ;;  %v3165_v61 = vpop.permute.xlu0 %3164  ;;  %v4599_v38 = vld [vmem:[#allocation5 + $0x28] sm:$0xf0] }
 0xd39   :  { %v2997_v32 = vpop.f32.mrf.mxu2 }
 0xd3a   :  { %v3001_v33 = vpack.c.bf16 %v2997_v32, %v2995_v31  ;;  %v2958_v31 = vadd.f32 %v2951_v19, %v2852_v24  ;;  %v4876_v24 = vld [vmem:[#allocation5 + $0x74] sm:$0xf0] }
 0xd3c   :  { %4501 = vmatmul.msk.bf16.gmra.mxu3 %vm2671_vm8, %v3001_v33 }
 0xdaf   :  { %v3050_v7 = vpop.f32.mrf.mxu3 }
 0xdb0   :  { %v3060_v8 = vadd.f32 %v3050_v7, %v2956_v2 }
 0xdb2   :  { %v3088_v14 = vadd.f32 %v3071_v58, %v3060_v8  ;;  %v4873_v8 = vld [vmem:[#allocation5 + $0x64] sm:$0xf] }
 0xdb4   :  { %v3116_v17 = vmul.f32 %v3099_v11, %v3088_v14  ;;  %v3225_v11 = vld [vmem:[%s5894_s9] sm:$0xf] }
 0xdb6   :  { %v3144_v22 = vadd.f32 %v3127_v21, %v3116_v17  ;;  %v4869_v17 = vld [vmem:[#allocation5 + $0x44] sm:$0xf]  ;;  %v4607_v21 = vld [vmem:[#allocation5 + $0x38] sm:$0xf0] }
 0xdb7   :  { %v3052_v16 = vpop.f32.mrf.mxu3 }
 0xdb8   :  { %v3061_v18 = vadd.f32 %v3052_v16, %v2957_v15  ;;  %v3148_v34 = vmax.f32 %v3144_v22, 0.0  ;;  %v4623_v15 = vld [vmem:[#allocation5 + $0x58] sm:$0xf0] }
 0xdba   :  { %v3089_v20 = vadd.f32 %v3076_v0, %v3061_v18  ;;  %v4615_v18 = vld [vmem:[#allocation5 + $0x48] sm:$0xf0] }
 0xdbb   :  { %v4618_v19 = vor.u32 %v4869_v17, %v4615_v18  ;;  %v4908_v17 = vld [vmem:[#allocation5 + $0x174] sm:$0xf0] }
 0xdbc   :  { %v3117_v25 = vmul.f32 %v3104_v23, %v3089_v20  ;;  %v5768_v29 = vpack.c.bf16 %v3089_v20, %v3088_v14  ;;  %v4871_v14 = vld [vmem:[#allocation5 + $0x54] sm:$0xf]  ;;  %v4637_v23 = vld [vmem:[#allocation5 + $0x70] sm:$0xf] }
 0xdbd   :  { %v4626_v16 = vor.u32 %v4871_v14, %v4623_v15  ;;  %v4867_v20 = vld [vmem:[#allocation5 + $0x34] sm:$0xf]  ;;  %v4638_v22 = vor.u32 %v4876_v24, %v4637_v23  ;;  %v4519_v14 = vld [vmem:[#allocation5 + $0x88] sm:$0xf0]  ;;  %v4771_v23 = vld [vmem:[#allocation5 + $0x1f8] sm:$0xf0] }
 0xdbe   :  { %v3145_v32 = vadd.f32 %v3132_v30, %v3117_v25  ;;  %v4891_v25 = vld [vmem:[#allocation5 + $0xf4] sm:$0xf]  ;;  %v4575_v30 = vld [vmem:[#allocation5 + $0xf8] sm:$0xf0] }
 0xdbf   :  { %v3055_v33 = vpop.f32.mrf.mxu3 }
 0xdc0   :  { %v3062_v27 = vadd.f32 %v3055_v33, %v2958_v31  ;;  %v3149_v35 = vmax.f32 %v3145_v32, 0.0  ;;  %v4629_v31 = vld [vmem:[#allocation5 + $0x60] sm:$0xf]  ;;  %v4874_v32 = vld [vmem:[#allocation5 + $0x64] sm:$0xf0]  ;;  %v4578_v33 = vor.u32 %v4891_v25, %v4575_v30 }
 0xdc1   :  { %v4630_v37 = vor.u32 %v4874_v32, %v4629_v31  ;;  %v4695_v25 = vld [vmem:[#allocation5 + $0x160] sm:$0xf]  ;;  %v4905_v30 = vld [vmem:[#allocation5 + $0x164] sm:$0xf]  ;;  %v4697_v32 = vld [vmem:[#allocation5 + $0x168] sm:$0xf0] }
 0xdc2   :  { %v3156_v36 = vpack.c.bf16 %v3149_v35, %v3148_v34  ;;  %v3090_v39 = vadd.f32 %v3081_v51, %v3062_v27  ;;  %v4889_v27 = vld [vmem:[#allocation5 + $0xe4] sm:$0xf]  ;;  %v4567_v34 = vld [vmem:[#allocation5 + $0xe8] sm:$0xf0]  ;;  %v4610_v35 = vor.u32 %v4867_v20, %v4607_v21  ;;  %v4705_v20 = vld [vmem:[#allocation5 + $0x178] sm:$0xf0] }
 0xdc3   :  { %v4923_v21 = vld [vmem:[#allocation5 + $0x1f4] sm:$0xf] }
 0xdc4   :  { %v3118_v43 = vmul.f32 %v3109_v53, %v3090_v39  ;;  %v4860_v53 = vld [vmem:[%s5893_s10 + $0x8] sm:$0xff] }
 0xdc6   :  { %v3146_v46 = vadd.f32 %v3137_v10, %v3118_v43  ;;  %v4513_v10 = vld [vmem:[%s5894_s9 + $0x4] sm:$0xf] }
 0xdc7   :  { %v3057_v41 = vpop.f32.mrf.mxu3 }
 0xdc8   :  { %v3063_v28 = vadd.f32 %v3057_v41, %v2959_v40  ;;  %v3150_v26 = vmax.f32 %v3146_v46, 0.0  ;;  %v4621_v40 = vld [vmem:[#allocation5 + $0x50] sm:$0xf]  ;;  %v4872_v41 = vld [vmem:[#allocation5 + $0x54] sm:$0xf0] }
 0xdc9   :  { %v4591_v46 = vld [vmem:[#allocation5 + $0x18] sm:$0xf0] }
 0xdca   :  { %v3091_v44 = vadd.f32 %v5764_v49, %v3063_v28  ;;  %v4859_v49 = vld [vmem:[%s5893_s10] sm:$0xff]  ;;  %v4622_v28 = vor.u32 %v4872_v41, %v4621_v40  ;;  %v4919_v41 = vld [vmem:[#allocation5 + $0x1d4] sm:$0xf] }
 0xdcc   :  { %v3119_v47 = vmul.f32 %v3114_v59, %v3091_v44  ;;  %v5772_v48 = vpack.c.bf16 %v3091_v44, %v3090_v39  ;;  %v4570_v39 = vor.u32 %v4889_v27, %v4567_v34  ;;  %v4863_v44 = vld [vmem:[#allocation5 + $0x14] sm:$0xf]  ;;  %v4774_v34 = vor.u32 %v4923_v21, %v4771_v23 }
 0xdcd   :  { %v4899_v21 = vld [vmem:[#allocation5 + $0x134] sm:$0xf] }
 0xdce   :  { %v3147_v50 = vadd.f32 %v3142_v9, %v3119_v47  ;;  %3233 = vmatpush.bf16.msrb.mxu1 %v5772_v48  ;;  %3268 = vmatpush.bf16.msrb.mxu2 %v5772_v48  ;;  %v4631_v9 = vld [vmem:[#allocation5 + $0x68] sm:$0xf0]  ;;  %v4594_v47 = vor.u32 %v4863_v44, %v4591_v46 }
 0xdcf   :  { %3516 = vmatpush.bf16.msrb.mxu3 %v5772_v48  ;;  %v4634_v13 = vor.u32 %v4873_v8, %v4631_v9  ;;  %v4879_v9 = vld [vmem:[#allocation5 + $0x94] sm:$0xf] }
 0xdd0   :  { %v3151_v51 = vmax.f32 %v3147_v50, 0.0  ;;  %v4861_v50 = vld [vmem:[#allocation5 + $0x4] sm:$0xf] }
 0xdd2   :  { %3234 = vmatpush.bf16.msrb.mxu1 %v5768_v29  ;;  %3269 = vmatpush.bf16.msrb.mxu2 %v5768_v29  ;;  %v3157_v52 = vpack.c.bf16 %v3151_v51, %v3150_v26  ;;  %v4583_v26 = vld [vmem:[#allocation5 + $0x8] sm:$0xf0] }
 0xdd3   :  { %3517 = vmatpush.bf16.msrb.mxu3 %v5768_v29  ;;  %v4586_v51 = vor.u32 %v4861_v50, %v4583_v26  ;;  %v4922_v50 = vld [vmem:[#allocation5 + $0x1e4] sm:$0xf0] }
 0xdd4   :  { %3204 = vmatpush.bf16.msrb.mxu0 %v3157_v52  ;;  %v4613_v52 = vld [vmem:[#allocation5 + $0x40] sm:$0xf] }
 0xdd8   :  { %3205 = vmatpush.bf16.msrb.mxu0 %v3156_v36  ;;  %v4865_v36 = vld [vmem:[#allocation5 + $0x24] sm:$0xf] }
 0xdd9   :  { %v4602_v43 = vor.u32 %v4865_v36, %v4599_v38  ;;  %v4921_v36 = vld [vmem:[#allocation5 + $0x1e4] sm:$0xf]  ;;  %v4769_v38 = vld [vmem:[#allocation5 + $0x1f0] sm:$0xf] }
 0xddb   :  { %4510 = vmatmul.msk.bf16.vlgmr.msrb.gmra.mxu0 %vm2257_vm7, %v4859_v49  ;;  %v4870_v49 = vld [vmem:[#allocation5 + $0x44] sm:$0xf0] }
 0xddc   :  { %3388 = vmatpush.bf16.msra.mxu0 %v4578_v33  ;;  %v4700_v33 = vor.u32 %v4905_v30, %v4697_v32  ;;  %v4721_v30 = vld [vmem:[#allocation5 + $0x190] sm:$0xf]  ;;  %v4911_v32 = vld [vmem:[#allocation5 + $0x194] sm:$0xf] }
 0xde0   :  { %3389 = vmatpush.bf16.msra.mxu0 %v4570_v39  ;;  %v4924_v39 = vld [vmem:[#allocation5 + $0x1f4] sm:$0xf0] }
 0xde1   :  { %v4770_v44 = vor.u32 %v4924_v39, %v4769_v38  ;;  %v4665_v39 = vld [vmem:[#allocation5 + $0x128] sm:$0xf0] }
 0xdeb   :  { %4511 = vmatmul.msk.bf16.gmra.mxu0 %vm2257_vm7, %v4860_v53  ;;  %v4614_v53 = vor.u32 %v4870_v49, %v4613_v52  ;;  %v4753_v49 = vld [vmem:[#allocation5 + $0x1d0] sm:$0xf] }
 0xe58   :  { %v3207_v12 = vpop.f32.mrf.mxu0 }
 0xe59   :  { %v3208_v62 = vadd.f32 %v3207_v12, %v3165_v61  ;;  %v4887_v12 = vld [vmem:[#allocation5 + $0xd4] sm:$0xf] }
 0xe5a   :  { %v4883_v61 = vld [vmem:[#allocation5 + $0xb4] sm:$0xf] }
 0xe5b   :  { %v3217_v2 = vmax.f32 %v3208_v62, 0.0  ;;  %v4543_v62 = vld [vmem:[#allocation5 + $0xb8] sm:$0xf0] }
 0xe60   :  { %v3209_v54 = vpop.f32.mrf.mxu0 }
 0xe61   :  { %v3210_v59 = vadd.f32 %v3209_v54, %v3170_v45  ;;  %v4559_v54 = vld [vmem:[#allocation5 + $0xd8] sm:$0xf0]  ;;  %v4885_v45 = vld [vmem:[#allocation5 + $0xc4] sm:$0xf] }
 0xe63   :  { %v3218_v3 = vmax.f32 %v3210_v59, 0.0 }
 0xe65   :  { %v3221_v7 = vpack.c.bf16 %v3218_v3, %v3217_v2  ;;  %v4864_v3 = vld [vmem:[#allocation5 + $0x14] sm:$0xf0]  ;;  %v4538_v2 = vor.u32 %v4881_v5, %v4535_v1  ;;  %v4915_v5 = vld [vmem:[#allocation5 + $0x1b4] sm:$0xf] }
 0xe68   :  { %v3212_v56 = vpop.f32.mrf.mxu0 }
 0xe69   :  { %v3213_v57 = vadd.f32 %v3212_v56, %v3175_v55  ;;  %v4562_v55 = vor.u32 %v4887_v12, %v4559_v54  ;;  %v4605_v56 = vld [vmem:[#allocation5 + $0x30] sm:$0xf] }
 0xe6b   :  { %v3219_v63 = vmax.f32 %v3213_v57, 0.0  ;;  %3390 = vmatpush.bf16.msra.mxu0 %v4562_v55  ;;  %v4709_v55 = vld [vmem:[%s5894_s9 + $0xc] sm:$0xf] }
 0xe70   :  { %v3214_v58 = vpop.f32.mrf.mxu0 }
 0xe71   :  { %v3215_v60 = vadd.f32 %v3214_v58, %v3180_v42  ;;  %v4868_v42 = vld [vmem:[#allocation5 + $0x34] sm:$0xf0]  ;;  %v4551_v58 = vld [vmem:[#allocation5 + $0xc8] sm:$0xf0] }
 0xe72   :  { %v4606_v57 = vor.u32 %v4868_v42, %v4605_v56  ;;  %v4554_v59 = vor.u32 %v4885_v45, %v4551_v58  ;;  %v4643_v56 = vld [vmem:[%s5894_s9 + $0x8] sm:$0xf]  ;;  %v4745_v42 = vld [vmem:[#allocation5 + $0x1c0] sm:$0xf]  ;;  %v4917_v45 = vld [vmem:[#allocation5 + $0x1c4] sm:$0xf] }
 0xe73   :  { %v3220_v0 = vmax.f32 %v3215_v60, 0.0 }
 0xe74   :  { %3391 = vmatpush.bf16.msra.mxu0 %v4554_v59  ;;  %v4747_v59 = vld [vmem:[#allocation5 + $0x1c8] sm:$0xf0] }
 0xe75   :  { %v5784_v4 = vpack.c.bf16 %v3220_v0, %v3219_v63  ;;  %v4546_v63 = vor.u32 %v4883_v61, %v4543_v62  ;;  %v4589_v0 = vld [vmem:[#allocation5 + $0x10] sm:$0xf]  ;;  %v4750_v61 = vor.u32 %v4917_v45, %v4747_v59 }
 0xe77   :  { %3235 = vmatpush.bf16.msrb.mxu1 %v5784_v4  ;;  %3270 = vmatpush.bf16.msrb.mxu2 %v5784_v4 }
 0xe78   :  { %3518 = vmatpush.bf16.msrb.mxu3 %v5784_v4  ;;  %3392 = vmatpush.bf16.msra.mxu0 %v4546_v63  ;;  %v4689_v63 = vld [vmem:[#allocation5 + $0x158] sm:$0xf0] }
 0xe7b   :  { %3236 = vmatpush.bf16.msrb.mxu1 %v3221_v7  ;;  %3271 = vmatpush.bf16.msrb.mxu2 %v3221_v7 }
 0xe7c   :  { %3519 = vmatpush.bf16.msrb.mxu3 %v3221_v7  ;;  %3393 = vmatpush.bf16.msra.mxu0 %v4538_v2  ;;  %v4739_v2 = vld [vmem:[#allocation5 + $0x1b8] sm:$0xf0] }
 0xe7e   :  { %4514 = vmatmul.msk.bf16.vlgmr.msrb.gmra.mxu2 %vm2671_vm8, %v4513_v10  ;;  %4512 = vmatmul.msk.bf16.vlgmr.msrb.gmra.mxu1 %vm2671_vm8, %v3225_v11  ;;  %v4527_v10 = vld [vmem:[#allocation5 + $0x98] sm:$0xf0] }
 0xe7f   :  { %3494 = vmatpush.bf16.msra.mxu2 %v4642_v6  ;;  %3481 = vmatpush.bf16.msra.mxu1 %v4638_v22  ;;  %v4581_v6 = vld [vmem:[#allocation5] sm:$0xf]  ;;  %v4530_v11 = vor.u32 %v4879_v9, %v4527_v10  ;;  %v4906_v22 = vld [vmem:[#allocation5 + $0x164] sm:$0xf0]  ;;  %v4742_v9 = vor.u32 %v4915_v5, %v4739_v2 }
 0xe80   :  { %v4696_v31 = vor.u32 %v4906_v22, %v4695_v25  ;;  %v4673_v25 = vld [vmem:[#allocation5 + $0x138] sm:$0xf0] }
 0xe81   :  { %3394 = vmatpush.bf16.msra.mxu0 %v4530_v11  ;;  %v4681_v11 = vld [vmem:[#allocation5 + $0x148] sm:$0xf0]  ;;  %v4676_v22 = vor.u32 %v4899_v21, %v4673_v25 }
 0xe83   :  { %3495 = vmatpush.bf16.msra.mxu2 %v4634_v13  ;;  %3482 = vmatpush.bf16.msra.mxu1 %v4630_v37  ;;  %v4877_v13 = vld [vmem:[#allocation5 + $0x84] sm:$0xf]  ;;  %v4763_v37 = vld [vmem:[#allocation5 + $0x1e8] sm:$0xf0] }
 0xe84   :  { %v4522_v15 = vor.u32 %v4877_v13, %v4519_v14  ;;  %v4766_v40 = vor.u32 %v4921_v36, %v4763_v37  ;;  %v4729_v14 = vld [vmem:[#allocation5 + $0x1a0] sm:$0xf]  ;;  %v4897_v36 = vld [vmem:[#allocation5 + $0x124] sm:$0xf] }
 0xe86   :  { %3395 = vmatpush.bf16.msra.mxu0 %v4522_v15  ;;  %v4914_v15 = vld [vmem:[#allocation5 + $0x1a4] sm:$0xf0] }
 0xe87   :  { %3496 = vmatpush.bf16.msra.mxu2 %v4626_v16  ;;  %3483 = vmatpush.bf16.msra.mxu1 %v4622_v28  ;;  %v4703_v16 = vld [vmem:[#allocation5 + $0x170] sm:$0xf] }
 0xe88   :  { %v4704_v18 = vor.u32 %v4908_v17, %v4703_v16  ;;  %v4913_v16 = vld [vmem:[#allocation5 + $0x1a4] sm:$0xf]  ;;  %v4730_v17 = vor.u32 %v4914_v15, %v4729_v14 }
 0xe8a   :  { %3623 = vmatpush.bf16.msrb.mxu0 %v4704_v18  ;;  %v4731_v18 = vld [vmem:[#allocation5 + $0x1a8] sm:$0xf0] }
 0xe8b   :  { %3497 = vmatpush.bf16.msra.mxu2 %v4618_v19  ;;  %3484 = vmatpush.bf16.msra.mxu1 %v4614_v53  ;;  %v4907_v19 = vld [vmem:[#allocation5 + $0x174] sm:$0xf]  ;;  %v4920_v53 = vld [vmem:[#allocation5 + $0x1d4] sm:$0xf0]  ;;  %v4734_v23 = vor.u32 %v4913_v16, %v4731_v18  ;;  %v3799_v16 = vpop.permute.xlu2 %3798 }
 0xe8c   :  { %v4708_v24 = vor.u32 %v4907_v19, %v4705_v20  ;;  %v4754_v54 = vor.u32 %v4920_v53, %v4753_v49  ;;  %v4671_v19 = vld [vmem:[#allocation5 + $0x130] sm:$0xf]  ;;  %v4900_v20 = vld [vmem:[#allocation5 + $0x134] sm:$0xf0]  ;;  %v4715_v49 = vld [vmem:[#allocation5 + $0x188] sm:$0xf0] }
 0xe8e   :  { %3624 = vmatpush.bf16.msrb.mxu0 %v4696_v31  ;;  %v4912_v31 = vld [vmem:[#allocation5 + $0x194] sm:$0xf0] }
 0xe8f   :  { %3498 = vmatpush.bf16.msra.mxu2 %v4610_v35  ;;  %3485 = vmatpush.bf16.msra.mxu1 %v4606_v57  ;;  %v4918_v57 = vld [vmem:[#allocation5 + $0x1c4] sm:$0xf0] }
 0xe90   :  { %v4746_v58 = vor.u32 %v4918_v57, %v4745_v42  ;;  %v4649_v42 = vld [vmem:[#allocation5 + $0x108] sm:$0xf0] }
 0xe93   :  { %3499 = vmatpush.bf16.msra.mxu2 %v4602_v43  ;;  %v4755_v43 = vld [vmem:[#allocation5 + $0x1d8] sm:$0xf0] }
 0xe97   :  { %3500 = vmatpush.bf16.msra.mxu2 %v4594_v47  ;;  %v4761_v47 = vld [vmem:[#allocation5 + $0x1e0] sm:$0xf] }
 0xe98   :  { %v4762_v52 = vor.u32 %v4922_v50, %v4761_v47  ;;  %v4713_v47 = vld [vmem:[#allocation5 + $0x180] sm:$0xf]  ;;  %v4910_v50 = vld [vmem:[#allocation5 + $0x184] sm:$0xf0] }
 0xe9b   :  { %3501 = vmatpush.bf16.msra.mxu2 %v4586_v51  ;;  %v4758_v51 = vor.u32 %v4919_v41, %v4755_v43  ;;  %v4655_v41 = vld [vmem:[#allocation5 + $0x110] sm:$0xf]  ;;  %v4896_v43 = vld [vmem:[#allocation5 + $0x114] sm:$0xf0] }
 0xe9f   :  { %3660 = vmatpush.bf16.msrb.mxu2 %v5772_v48  ;;  %v4597_v48 = vld [vmem:[#allocation5 + $0x20] sm:$0xf] }
 0xea3   :  { %3661 = vmatpush.bf16.msrb.mxu2 %v5768_v29  ;;  %v4866_v29 = vld [vmem:[#allocation5 + $0x24] sm:$0xf0] }
 0xea4   :  { %v4598_v60 = vor.u32 %v4866_v29, %v4597_v48  ;;  %v4687_v48 = vld [vmem:[#allocation5 + $0x150] sm:$0xf]  ;;  %v4904_v29 = vld [vmem:[#allocation5 + $0x154] sm:$0xf0] }
 0xea5   :  { %v4688_v62 = vor.u32 %v4904_v29, %v4687_v48 }
 0xea6   :  { %3486 = vmatpush.bf16.msra.mxu1 %v4598_v60  ;;  %v4903_v60 = vld [vmem:[#allocation5 + $0x154] sm:$0xf] }
 0xea7   :  { %3662 = vmatpush.bf16.msrb.mxu2 %v5784_v4  ;;  %v4590_v4 = vor.u32 %v4864_v3, %v4589_v0  ;;  %v4692_v0 = vor.u32 %v4903_v60, %v4689_v63  ;;  %v4737_v3 = vld [vmem:[#allocation5 + $0x1b0] sm:$0xf]  ;;  %3625 = vmatpush.bf16.msrb.mxu0 %v4688_v62 }
 0xeaa   :  { %3487 = vmatpush.bf16.msra.mxu1 %v4590_v4  ;;  %v4916_v4 = vld [vmem:[#allocation5 + $0x1b4] sm:$0xf0] }
 0xeab   :  { %3663 = vmatpush.bf16.msrb.mxu2 %v3221_v7  ;;  %v4862_v7 = vld [vmem:[#allocation5 + $0x4] sm:$0xf0]  ;;  %v4738_v1 = vor.u32 %v4916_v4, %v4737_v3 }
 0xeac   :  { %v4582_v8 = vor.u32 %v4862_v7, %v4581_v6  ;;  %v4679_v6 = vld [vmem:[#allocation5 + $0x140] sm:$0xf]  ;;  %v4902_v7 = vld [vmem:[#allocation5 + $0x144] sm:$0xf0] }
 0xead   :  { %v4680_v10 = vor.u32 %v4902_v7, %v4679_v6 }
 0xeae   :  { %3488 = vmatpush.bf16.msra.mxu1 %v4582_v8  ;;  %v4901_v8 = vld [vmem:[#allocation5 + $0x144] sm:$0xf] }
 0xeaf   :  { %v4684_v13 = vor.u32 %v4901_v8, %v4681_v11  ;;  %3626 = vmatpush.bf16.msrb.mxu0 %v4680_v10 }
 0xeb2   :  { %3636 = vmatpush.bf16.msrb.mxu1 %v4708_v24  ;;  %v4672_v24 = vor.u32 %v4900_v20, %v4671_v19 }
 0xeb4   :  { %3627 = vmatpush.bf16.msrb.mxu0 %v4672_v24 }
 0xeb6   :  { %3637 = vmatpush.bf16.msrb.mxu1 %v4700_v33  ;;  %v4722_v33 = vor.u32 %v4912_v31, %v4721_v30 }
 0xeba   :  { %3638 = vmatpush.bf16.msrb.mxu1 %v4692_v0 }
 0xebe   :  { %3639 = vmatpush.bf16.msrb.mxu1 %v4684_v13 }
 0xec2   :  { %3640 = vmatpush.bf16.msrb.mxu1 %v4676_v22  ;;  %v4925_v22 = vld [vmem:[%s5348_s12] sm:$0xff]  ;;  %s5124_s12 = smov [#allocation7]  }
 0xec3   :  { %s3918_s13 = sshll.u32 %s5124_s12, 4  ;;  %s3919_s13 = int_to_ptr.vmem [resolvable:$true] %s3918_s13 }
 0xefb   :  { %v3238_v27 = vpop.f32.mrf.mxu1 }
 0xefc   :  { %v3242_v35 = vpack.c.bf16 %v3238_v27, %v3238_v27  ;;  %v4723_v27 = vld [vmem:[#allocation5 + $0x198] sm:$0xf0] }
 0xefd   :  { %v4726_v37 = vor.u32 %v4911_v32, %v4723_v27  ;;  %v3817_v27 = vpop.permute.xlu1 %3816 }
 0xefe   :  { %3502 = vmatmul.bf16.vlgmr.msra.gmra.mxu2 %v3242_v35  ;;  %3489 = vmatmul.bf16.vlgmr.msra.gmra.mxu1 %v3242_v35  ;;  %v4898_v35 = vld [vmem:[#allocation5 + $0x124] sm:$0xf0] }
 0xeff   :  { %3780 = vmatpush.bf16.msra.mxu2 %v4774_v34  ;;  %v4663_v34 = vld [vmem:[#allocation5 + $0x120] sm:$0xf] }
 0xf00   :  { %v4664_v38 = vor.u32 %v4898_v35, %v4663_v34  ;;  %v3812_v34 = vpop.permute.xlu0 %3811 }
 0xf01   :  { %v3273_v28 = vpop.f32.mrf.mxu2 }
 0xf02   :  { %v3277_v46 = vpack.c.bf16 %v3273_v28, %v3273_v28  ;;  %v4895_v28 = vld [vmem:[#allocation5 + $0x114] sm:$0xf]  ;;  %3628 = vmatpush.bf16.msrb.mxu0 %v4664_v38 }
 0xf03   :  { %v3240_v26 = vpop.f32.mrf.mxu1  ;;  %3781 = vmatpush.bf16.msra.mxu2 %v4766_v40  ;;  %v4668_v40 = vor.u32 %v4897_v36, %v4665_v39 }
 0xf04   :  { %3383 = vmatmul.bf16.vlgmr.msra.gmra.mxu3 %v3277_v46  ;;  %3396 = vmatmul.bf16.vlgmr.msra.gmra.mxu0 %v3277_v46  ;;  %v4657_v46 = vld [vmem:[#allocation5 + $0x118] sm:$0xf0] }
 0xf05   :  { %3767 = vmatpush.bf16.msra.mxu3 %v4770_v44  ;;  %v4656_v44 = vor.u32 %v4896_v43, %v4655_v41  ;;  %3641 = vmatpush.bf16.msrb.mxu1 %v4668_v40  ;;  %v4660_v26 = vor.u32 %v4895_v28, %v4657_v46 }
 0xf07   :  { %3782 = vmatpush.bf16.msra.mxu2 %v4758_v51  ;;  %v4714_v51 = vor.u32 %v4910_v50, %v4713_v47  ;;  %3629 = vmatpush.bf16.msrb.mxu0 %v4656_v44 }
 0xf09   :  { %v3275_v12 = vpop.f32.mrf.mxu2  ;;  %3768 = vmatpush.bf16.msra.mxu3 %v4762_v52  ;;  %v4909_v52 = vld [vmem:[#allocation5 + $0x184] sm:$0xf]  ;;  %3642 = vmatpush.bf16.msrb.mxu1 %v4660_v26 }
 0xf0a   :  { %v4718_v53 = vor.u32 %v4909_v52, %v4715_v49  ;;  %v4647_v12 = vld [vmem:[#allocation5 + $0x100] sm:$0xf] }
 0xf0b   :  { %3783 = vmatpush.bf16.msra.mxu2 %v4750_v61 }
 0xf0d   :  { %3769 = vmatpush.bf16.msra.mxu3 %v4754_v54  ;;  %v4894_v54 = vld [vmem:[#allocation5 + $0x104] sm:$0xf0] }
 0xf0e   :  { %4710 = vmatmul.msk.bf16.vlgmr.msrb.gmra.mxu2 %vm2671_vm8, %v4709_v55  ;;  %v4893_v55 = vld [vmem:[#allocation5 + $0x104] sm:$0xf] }
 0xf0f   :  { %3784 = vmatpush.bf16.msra.mxu2 %v4742_v9  ;;  %v4652_v57 = vor.u32 %v4893_v55, %v4649_v42 }
 0xf11   :  { %3770 = vmatpush.bf16.msra.mxu3 %v4746_v58  ;;  %3643 = vmatpush.bf16.msrb.mxu1 %v4652_v57 }
 0xf13   :  { %3785 = vmatpush.bf16.msra.mxu2 %v4734_v23 }
 0xf14   :  { %4644 = vmatmul.msk.bf16.vlgmr.msrb.gmra.mxu3 %vm2671_vm8, %v4643_v56  ;;  %v4648_v56 = vor.u32 %v4894_v54, %v4647_v12 }
 0xf15   :  { %3771 = vmatpush.bf16.msra.mxu3 %v4738_v1 }
 0xf16   :  { %3630 = vmatpush.bf16.msrb.mxu0 %v4648_v56 }
 0xf17   :  { %3786 = vmatpush.bf16.msra.mxu2 %v4726_v37 }
 0xf19   :  { %3772 = vmatpush.bf16.msra.mxu3 %v4730_v17 }
 0xf1b   :  { %3787 = vmatpush.bf16.msra.mxu2 %v4718_v53 }
 0xf1d   :  { %3773 = vmatpush.bf16.msra.mxu3 %v4722_v33 }
 0xf21   :  { %3774 = vmatpush.bf16.msra.mxu3 %v4714_v51 }
 0xf7b   :  { %v3490_v45 = vpop.f32.mrf.mxu1 }
 0xf81   :  { %v3503_v58 = vpop.f32.mrf.mxu2  ;;  %v3397_v59 = vpop.f32.mrf.mxu0 }
 0xf82   :  { %v3504_v48 = vadd.f32 %v3503_v58, %v3397_v59 }
 0xf83   :  { %v3492_v29 = vpop.f32.mrf.mxu1 }
 0xf87   :  { %v3384_v60 = vpop.f32.mrf.mxu3 }
 0xf88   :  { %v3491_v61 = vadd.f32 %v3490_v45, %v3384_v60 }
 0xf89   :  { %v3505_v62 = vpop.f32.mrf.mxu2  ;;  %v3399_v63 = vpop.f32.mrf.mxu0 }
 0xf8f   :  { %v3386_v0 = vpop.f32.mrf.mxu3 }
 0xf91   :  { %v3665_v3 = vpop.f32.mrf.mxu2 }
 0xf92   :  { %v3669_v4 = vpack.c.bf16 %v3665_v3, %v3665_v3 }
 0xf94   :  { %3775 = vmatmul.bf16.vlgmr.msra.gmra.mxu3 %v3669_v4  ;;  %3788 = vmatmul.bf16.vlgmr.msra.gmra.mxu2 %v3669_v4 }
 0xf97   :  { %v3521_v5 = vpop.f32.mrf.mxu3 }
 0xf98   :  { %v3525_v1 = vpack.c.bf16 %v3521_v5, %v3521_v5 }
 0xf99   :  { %v3667_v2 = vpop.f32.mrf.mxu2 }
 0xf9a   :  { %3631 = vmatmul.bf16.vlgmr.msrb.gmra.mxu0 %v3525_v1  ;;  %3644 = vmatmul.bf16.vlgmr.msrb.gmra.mxu1 %v3525_v1 }
 0xf9f   :  { %v3523_v6 = vpop.f32.mrf.mxu3 }
0x1017   :  { %v3632_v7 = vpop.f32.mrf.mxu0  ;;  %v3645_v8 = vpop.f32.mrf.mxu1 }
0x1018   :  { %v3649_v9 = vadd.f32 %v3632_v7, %v3491_v61  ;;  %v3650_v10 = vadd.f32 %v3645_v8, %v3504_v48  ;;  %v3776_v11 = vpop.f32.mrf.mxu3  ;;  %v3789_v13 = vpop.f32.mrf.mxu2 }
0x101a   :  { %v3793_v14 = vadd.f32 %v3776_v11, %v3649_v9  ;;  %v3794_v15 = vadd.f32 %v3789_v13, %v3650_v10 }
0x101c   :  { %v3801_v17 = vadd.f32 %v3799_v16, %v3793_v14  ;;  %v3802_v18 = vadd.f32 %v3799_v16, %v3794_v15 }
0x101e   :  { %v3805_v19 = vpack.c.bf16 %v3801_v17, %v3801_v17  ;;  %v3806_v20 = vpack.c.bf16 %v3802_v18, %v3802_v18 }
0x101f   :  { %v3634_v21 = vpop.f32.mrf.mxu0  ;;  %v3647_v23 = vpop.f32.mrf.mxu1 }
0x1020   :  { %v3828_v24 = vsel %vm361_vm0, %v3805_v19, 0  ;;  %v3831_v25 = vsel %vm361_vm0, %v3806_v20, 0  ;;  %v3778_v30 = vpop.f32.mrf.mxu3  ;;  %v3791_v31 = vpop.f32.mrf.mxu2 }
0x1021   :  { %3840 = vmatpush.bf16.msra.mxu0 %v3828_v24  ;;  %3854 = vmatpush.bf16.msra.mxu1 %v3831_v25 }
0x1024   :  { %4779 = vmatmul.msk.bf16.vlgmr.msra.gmra.mxu0 %vm1089_vm5, %v4925_v22  ;;  %4780 = vmatmul.msk.bf16.vlgmr.msra.gmra.mxu1 %vm1089_vm5, %v4925_v22 }
0x10a1   :  { %v3842_v32 = vpop.f32.mrf.mxu0  ;;  %v3856_v33 = vpop.f32.mrf.mxu1 }
0x10a2   :  { %v3843_v37 = vadd.f32 %v3842_v32, %v3812_v34  ;;  %v3857_v38 = vadd.f32 %v3856_v33, %v3812_v34 }
0x10a9   :  { %v3844_v35 = vpop.f32.mrf.mxu0  ;;  %v3858_v36 = vpop.f32.mrf.mxu1 }
0x10aa   :  { %v3845_v39 = vadd.f32 %v3844_v35, %v3817_v27  ;;  %v3859_v40 = vadd.f32 %v3858_v36, %v3817_v27 }
0x10ac   :  { %v3861_v41 = vmax.f32 %v3843_v37, %v3845_v39  ;;  %v3868_v43 = vmax.f32 %v3857_v38, %v3859_v40 }
0x10ae   :  { %v3862_v28 = vrot.slane %v3861_v41, 4  ;;  %v3869_v44 = vrot.slane %v3868_v43, 4 }
0x10b0   :  { %v3863_v46 = vmax.f32 %v3861_v41, %v3862_v28  ;;  %v3870_v47 = vmax.f32 %v3868_v43, %v3869_v44 }
0x10b2   :  { %v3864_v50 = vrot.slane %v3863_v46, 2  ;;  %v3871_v26 = vrot.slane %v3870_v47, 2 }
0x10b4   :  { %v3865_v51 = vmax.f32 %v3863_v46, %v3864_v50  ;;  %v3872_v52 = vmax.f32 %v3870_v47, %v3871_v26 }
0x10b6   :  { %v3866_v49 = vrot.slane %v3865_v51, 1  ;;  %v3873_v53 = vrot.slane %v3872_v52, 1 }
0x10b8   :  { %v3867_v12 = vmax.f32 %v3865_v51, %v3866_v49  ;;  %v3874_v54 = vmax.f32 %v3872_v52, %v3873_v53 }
0x10ba   :  { %v3875_v55 = vsub.f32 %v3843_v37, %v3867_v12  ;;  %v3877_v56 = vsub.f32 %v3845_v39, %v3867_v12  ;;  %v3876_v42 = vsub.f32 %v3857_v38, %v3874_v54  ;;  %v3878_v57 = vsub.f32 %v3859_v40, %v3874_v54 }
0x10bc   :  { %v3879_v45 = vmul.f32 1.442695, %v3875_v55  ;;  %v3883_v58 = vmul.f32 1.442695, %v3877_v56  ;;  %v3881_v59 = vmul.f32 1.442695, %v3876_v42 }
0x10bd   :  { %v3885_v48 = vmul.f32 1.442695, %v3878_v57 }
0x10be   :  { %4982 = vpow2.f32 %v3879_v45 }
0x10bf   :  { %4984 = vpow2.f32 %v3883_v58 }
0x10c0   :  { %4986 = vpow2.f32 %v3881_v59 }
0x10c1   :  { %4988 = vpow2.f32 %v3885_v48 }
0x10c4   :  { %v4983_v29 = vpop.eup %4982 }
0x10c5   :  { %v4985_v60 = vpop.eup %4984 }
0x10c6   :  { %v4987_v61 = vpop.eup %4986  ;;  %v3887_v62 = vadd.f32 %v4985_v60, %v4983_v29 }
0x10c7   :  { %v4989_v63 = vpop.eup %4988 }
0x10c8   :  { %v3888_v0 = vrot.slane %v3887_v62, 4  ;;  %v3894_v3 = vadd.f32 %v4989_v63, %v4987_v61 }
0x10ca   :  { %v3889_v4 = vadd.f32 %v3888_v0, %v3887_v62  ;;  %v3895_v5 = vrot.slane %v3894_v3, 4 }
0x10cc   :  { %v3890_v1 = vrot.slane %v3889_v4, 2  ;;  %v3896_v2 = vadd.f32 %v3895_v5, %v3894_v3 }
0x10ce   :  { %v3891_v6 = vadd.f32 %v3890_v1, %v3889_v4  ;;  %v3897_v7 = vrot.slane %v3896_v2, 2 }
0x10d0   :  { %v3892_v8 = vrot.slane %v3891_v6, 1  ;;  %v3898_v9 = vadd.f32 %v3897_v7, %v3896_v2 }
0x10d2   :  { %v3893_v10 = vadd.f32 %v3892_v8, %v3891_v6  ;;  %v3899_v11 = vrot.slane %v3898_v9, 1 }
0x10d4   :  { %4990 = vlog2.f32 %v3893_v10  ;;  %v3900_v13 = vadd.f32 %v3899_v11, %v3898_v9 }
0x10d6   :  { %4992 = vlog2.f32 %v3900_v13 }
0x10da   :  { %v4991_v14 = vpop.eup %4990 }
0x10db   :  { %v3902_v15 = vmul.f32 0.6931472, %v4991_v14 }
0x10dc   :  { %v4993_v16 = vpop.eup %4992 }
0x10dd   :  { %v3905_v17 = vsub.f32 %v3875_v55, %v3902_v15  ;;  %v3907_v18 = vsub.f32 %v3877_v56, %v3902_v15  ;;  %v3904_v19 = vmul.f32 0.6931472, %v4993_v16 }
0x10df   :  { %3909 = vst [vmem:[#allocation7] sm:$0xff] %v3905_v17  ;;  %v3906_v20 = vsub.f32 %v3876_v42, %v3904_v19  ;;  %v3908_v21 = vsub.f32 %v3878_v57, %v3904_v19 }
0x10e0   :  { %3910 = vst [vmem:[#allocation7 + $0x8] sm:$0xff] %v3907_v18 }
0x10e1   :  { %3912 = vst [vmem:[#allocation7 + $0x10] sm:$0xff] %v3906_v20 }
0x10e2   :  { %3913 = vst [vmem:[#allocation7 + $0x18] sm:$0xff] %v3908_v21 }
0x10e3   :  { %5065 = shalt.err (!%p5062_p0)
}
0x10e4   :  { %3926 = dma.vmem_to_hbm [thread:$0]  %s3919_s13, 512, %s3921_s5, [#allocation4], %s5121_s19, %s5121_s19, %s5122_s16  }
0x10e5   :  { %5070 = dma.done.wait [#allocation4], 512  }
0x10e6   :  { %5071 = vsyncadd [#allocation4], 4294966784 }
0x10e7   :  { %3931 = vsyncpa [#allocation3], 1 }
0x10e8   :  { %3932 = vsyncpa [#allocation6], 1 }
0x10e9   :  { %3933 = vsyncpa [#allocation4], 1 }

</bundles_post_ra>
